<compile_context>
chip_gen: v7x
topology: tpu7x:2x2x1
jax: 0.10.0
libtpu: 0.0.40
codegen_flags: <defaults>
</compile_context>

<pallas_src>
import functools

import jax
import jax.numpy as jnp
from jax import lax
from jax.experimental import pallas as pl
from jax.experimental.pallas import tpu as pltpu

EPS = 1e-5          # nn.BatchNorm2d default eps
LANE = 128          # pad channel dims to multiples of the 128-lane vreg/MXU tile


# ---------------------------------------------------------------------------
# small helpers
# ---------------------------------------------------------------------------
def _ceil_to(x, m):
    return ((x + m - 1) // m) * m


@functools.lru_cache(maxsize=1)
def _vmem_limit_bytes():
    # Generation-aware VMEM budget (v7x: 64 MiB physical vs 128 MiB v5e/v6e).
    try:
        cap = int(pltpu.get_tpu_info().vmem_capacity_bytes)
    except Exception:
        cap = 64 * 1024 * 1024
    return int(min(cap * 3 // 4, 96 * 1024 * 1024))


def _row_tile_target():
    # Bigger tiles amortize the ~0.35us/step overhead; keep them smaller on
    # v7x (half the VMEM of v5e/v6e).
    return 1024 if _vmem_limit_bytes() >= 64 * 1024 * 1024 else 512


def _pick_row_tile(m, target):
    """Largest multiple of 8 that divides m and is <= target (else m)."""
    best = 0
    t = 8
    top = min(target, m)
    while t <= top:
        if m % t == 0:
            best = t
        t += 8
    if best:
        return best
    # TODO(synk): for pathological m (no multiple-of-8 divisor) pad m to a
    # tile multiple and mask the padded rows out of the BN stats instead of
    # falling back to one whole-matrix block.
    return m


def _compiler_params(sem):
    return pltpu.CompilerParams(dimension_semantics=sem,
                                vmem_limit_bytes=_vmem_limit_bytes())


# ---------------------------------------------------------------------------
# Pallas kernels
# ---------------------------------------------------------------------------
def _conv1x1_stats_kernel(x_ref, w_ref, y_ref, sum_ref, ssq_ref):
    """Row tile of a 1x1 conv (= bf16 MXU matmul) + per-tile BN stat partials."""
    y = jnp.dot(x_ref[...], w_ref[...], preferred_element_type=jnp.float32)
    y_ref[...] = y.astype(y_ref.dtype)
    sum_ref[0] = jnp.sum(y, axis=0, keepdims=True)
    ssq_ref[0] = jnp.sum(y * y, axis=0, keepdims=True)


def _act_conv1x1_stats_kernel(x_ref, scale_ref, shift_ref, w_ref,
                              y_ref, sum_ref, ssq_ref):
    """Same, with the previous stage's BN affine + ReLU fused onto the input."""
    act = jnp.maximum(
        x_ref[...].astype(jnp.float32) * scale_ref[...] + shift_ref[...], 0.0)
    y = jnp.dot(act.astype(jnp.bfloat16), w_ref[...],
                preferred_element_type=jnp.float32)
    y_ref[...] = y.astype(y_ref.dtype)
    sum_ref[0] = jnp.sum(y, axis=0, keepdims=True)
    ssq_ref[0] = jnp.sum(y * y, axis=0, keepdims=True)


def _conv3x3_stats_kernel(x_ref, scale_ref, shift_ref, w_ref,
                          y_ref, sum_ref, ssq_ref, *, H, W):
    """3x3 / pad=1 / stride=1 conv of one image, on flattened (H*W, C) rows.

    bn1 affine + ReLU are applied to the raw conv1 rows in-kernel.  Each of
    the 9 taps is a pltpu.roll of the activation along the flattened row axis
    (dh*W + dw) plus a boundary mask (zero padding), followed by an
    accumulating bf16 MXU dot.  No zero-padded slab and no strided slices.
    """
    HW = H * W
    cout = y_ref.shape[-1]
    act = jnp.maximum(
        x_ref[0].astype(jnp.float32) * scale_ref[...] + shift_ref[...], 0.0)

    p = lax.broadcasted_iota(jnp.int32, (HW, 1), 0)      # output row index h*W + w
    col = p % W                                          # output column w

    acc = jnp.zeros((HW, cout), jnp.float32)
    for dh in (-1, 0, 1):
        for dw in (-1, 0, 1):
            s = dh * W + dw                              # flat input offset
            tap = act if s == 0 else pltpu.roll(act, (-s) % HW, axis=0)
            valid = None
            if dh == -1:
                valid = p >= W                           # needs row h-1 >= 0
            elif dh == 1:
                valid = p < (H - 1) * W                  # needs row h+1 <= H-1
            if dw == -1:
                c = col >= 1                             # needs col w-1 >= 0
                valid = c if valid is None else jnp.logical_and(valid, c)
            elif dw == 1:
                c = col <= W - 2                         # needs col w+1 <= W-1
                valid = c if valid is None else jnp.logical_and(valid, c)
            if valid is not None:
                tap = jnp.where(valid, tap, 0.0)
            acc = acc + jnp.dot(tap.astype(jnp.bfloat16),
                                w_ref[(dh + 1) * 3 + (dw + 1)],
                                preferred_element_type=jnp.float32)

    y_ref[0] = acc.astype(y_ref.dtype)
    sum_ref[0] = jnp.sum(acc, axis=0, keepdims=True)
    ssq_ref[0] = jnp.sum(acc * acc, axis=0, keepdims=True)


def _bn_residual_relu_kernel(y_ref, scale_ref, shift_ref, x_ref, s_ref, o_ref):
    """bn3 affine + out.index_add_(1, indices, identity) (= x @ one-hot S) + ReLU."""
    out = y_ref[...].astype(jnp.float32) * scale_ref[...] + shift_ref[...]
    out = out + jnp.dot(x_ref[...], s_ref[...],
                        preferred_element_type=jnp.float32)
    o_ref[...] = jnp.maximum(out, 0.0)


# ---------------------------------------------------------------------------
# pallas_call stage wrappers
# ---------------------------------------------------------------------------
def _conv1x1_stage(x_rows, w, scale_in=None, shift_in=None, *, tm):
    m, k = x_rows.shape
    co = w.shape[1]
    g = m // tm
    fused = scale_in is not None
    kern = _act_conv1x1_stats_kernel if fused else _conv1x1_stats_kernel

    in_specs = [pl.BlockSpec((tm, k), lambda i: (i, 0))]          # activation row tile
    args = [x_rows]
    if fused:
        in_specs += [pl.BlockSpec((1, k), lambda i: (0, 0)),      # bn scale (resident)
                     pl.BlockSpec((1, k), lambda i: (0, 0))]      # bn shift (resident)
        args += [scale_in, shift_in]
    in_specs.append(pl.BlockSpec((k, co), lambda i: (0, 0)))      # weights   (resident)
    args.append(w)

    cost = pl.CostEstimate(
        flops=2 * m * k * co, transcendentals=0,
        bytes_accessed=m * k * 2 + k * co * 2 + m * co * 2 + 2 * g * co * 4)
    return pl.pallas_call(
        kern,
        out_shape=(jax.ShapeDtypeStruct((m, co), jnp.bfloat16),   # conv output (bf16)
                   jax.ShapeDtypeStruct((g, 1, co), jnp.float32), # per-tile sum
                   jax.ShapeDtypeStruct((g, 1, co), jnp.float32)),# per-tile sum-of-sq
        grid=(g,),
        in_specs=in_specs,
        out_specs=(pl.BlockSpec((tm, co), lambda i: (i, 0)),
                   pl.BlockSpec((1, 1, co), lambda i: (i, 0, 0)),
                   pl.BlockSpec((1, 1, co), lambda i: (i, 0, 0))),
        compiler_params=_compiler_params(("parallel",)),          # no cross-tile state
        cost_estimate=cost,
    )(*args)


def _conv3x3_stage(y1_img, scale1, shift1, w2, *, H, W):
    # TODO(synk): for very large H*W, additionally tile this grid over row
    # blocks (with a W-row halo on the flattened axis) to bound per-step VMEM
    # on v7x and expose more parallelism than the batch dimension alone.
    n, hw, cin = y1_img.shape
    co = w2.shape[-1]
    cost = pl.CostEstimate(
        flops=2 * n * hw * 9 * cin * co, transcendentals=0,
        bytes_accessed=n * hw * cin * 2 + w2.size * 2 + n * hw * co * 2 + 2 * n * co * 4)
    return pl.pallas_call(
        functools.partial(_conv3x3_stats_kernel, H=H, W=W),
        out_shape=(jax.ShapeDtypeStruct((n, hw, co), jnp.bfloat16),
                   jax.ShapeDtypeStruct((n, 1, co), jnp.float32),
                   jax.ShapeDtypeStruct((n, 1, co), jnp.float32)),
        grid=(n,),
        in_specs=[pl.BlockSpec((1, hw, cin), lambda i: (i, 0, 0)),  # raw conv1 rows
                  pl.BlockSpec((1, cin), lambda i: (0, 0)),         # bn1 scale (resident)
                  pl.BlockSpec((1, cin), lambda i: (0, 0)),         # bn1 shift (resident)
                  pl.BlockSpec((9, cin, co), lambda i: (0, 0, 0))], # 9 tap weights
        out_specs=(pl.BlockSpec((1, hw, co), lambda i: (i, 0, 0)),
                   pl.BlockSpec((1, 1, co), lambda i: (i, 0, 0)),
                   pl.BlockSpec((1, 1, co), lambda i: (i, 0, 0))),
        compiler_params=_compiler_params(("parallel",)),
        cost_estimate=cost,
    )(y1_img, scale1, shift1, w2)


def _bn_residual_relu_stage(y, scale, shift, x_rows, smat, *, tm):
    m, co = y.shape
    k = x_rows.shape[1]
    g = m // tm
    cost = pl.CostEstimate(
        flops=2 * m * k * co + 3 * m * co, transcendentals=0,
        bytes_accessed=m * co * 2 + m * k * 2 + k * co * 2 + m * co * 4)
    return pl.pallas_call(
        _bn_residual_relu_kernel,
        out_shape=jax.ShapeDtypeStruct((m, co), jnp.float32),
        grid=(g,),
        in_specs=[pl.BlockSpec((tm, co), lambda i: (i, 0)),
                  pl.BlockSpec((1, co), lambda i: (0, 0)),
                  pl.BlockSpec((1, co), lambda i: (0, 0)),
                  pl.BlockSpec((tm, k), lambda i: (i, 0)),
                  pl.BlockSpec((k, co), lambda i: (0, 0))],
        out_specs=pl.BlockSpec((tm, co), lambda i: (i, 0)),
        compiler_params=_compiler_params(("parallel",)),
        cost_estimate=cost,
    )(y, scale, shift, x_rows, smat)


# ---------------------------------------------------------------------------
# glue: BN finalize, weight packing, forward
# ---------------------------------------------------------------------------
def _pad_vec(v, cp):
    v = v.astype(jnp.float32).reshape(-1)
    return jnp.pad(v, (0, cp - v.shape[0]))


def _bn_scale_shift(sum_part, ssq_part, count, gamma, beta):
    """Finalize training-mode BatchNorm into per-channel y*scale + shift.

    TODO(synk): E[x^2]-E[x]^2 in f32 can cancel for very large batches with
    large activation means; a shifted / Welford accumulation would be safer.
    """
    cp = sum_part.shape[-1]
    s = jnp.sum(sum_part, axis=(0, 1))
    q = jnp.sum(ssq_part, axis=(0, 1))
    mean = s / count
    var = jnp.maximum(q / count - mean * mean, 0.0)     # biased batch variance
    rstd = lax.rsqrt(var + EPS)
    scale = _pad_vec(gamma, cp) * rstd
    shift = _pad_vec(beta, cp) - mean * scale
    return scale.reshape(1, cp), shift.reshape(1, cp)


def _w1x1_mat(w, cin_p, cout_p):
    cout, cin = w.shape[0], w.shape[1]
    m = w.reshape(cout, cin).T                          # (cin, cout)
    return jnp.pad(m, ((0, cin_p - cin), (0, cout_p - cout))).astype(jnp.bfloat16)


def _w3x3_mat(w, cin_p, cout_p):
    cout, cin = w.shape[0], w.shape[1]
    m = jnp.transpose(w, (2, 3, 1, 0)).reshape(9, cin, cout)   # tap-major
    return jnp.pad(m, ((0, 0), (0, cin_p - cin), (0, cout_p - cout))).astype(jnp.bfloat16)


def bottleneck_forward(x_nchw, params, indices, stride=1):
    """Bottleneck.forward (BatchNorm in training mode).  NCHW in, NCHW out."""
    if stride != 1:
        # TODO(synk): strided conv2 (and a non-None downsample module) is not
        # implemented in the Pallas path; constructor default is stride=1.
        raise NotImplementedError("stride != 1 not supported")

    n, cin, h, w = x_nchw.shape
    c1, c2, c3 = params["w1"].shape[0], params["w2"].shape[0], params["w3"].shape[0]
    cin_p, c1p, c2p, c3p = (_ceil_to(c, LANE) for c in (cin, c1, c2, c3))
    hw = h * w
    m = n * hw
    tm = _pick_row_tile(m, _row_tile_target())

    # NCHW -> lane-dense bf16 NHWC rows.  TODO(synk): when stacking blocks,
    # keep activations in this (N*H*W, C_pad) layout between blocks and drop
    # the boundary transpose/pad/slice passes.
    x_rows = jnp.transpose(x_nchw, (0, 2, 3, 1)).reshape(m, cin)
    x_rows = jnp.pad(x_rows, ((0, 0), (0, cin_p - cin))).astype(jnp.bfloat16)

    # ---- stage 1: conv1 (1x1) + BN1 batch-stat partials ----------------------
    w1 = _w1x1_mat(params["w1"], cin_p, c1p)
    y1, s1, q1 = _conv1x1_stage(x_rows, w1, tm=tm)
    scale1, shift1 = _bn_scale_shift(s1, q1, m, params["gamma1"], params["beta1"])

    # ---- stage 2: relu(bn1) fused in-kernel -> conv2 (3x3, pad=1) + BN2 stats
    w2 = _w3x3_mat(params["w2"], c1p, c2p)
    y2, s2, q2 = _conv3x3_stage(y1.reshape(n, hw, c1p), scale1, shift1, w2, H=h, W=w)
    scale2, shift2 = _bn_scale_shift(s2, q2, m, params["gamma2"], params["beta2"])

    # ---- stage 3: relu(bn2) fused in-kernel -> conv3 (1x1) + BN3 stats -------
    w3 = _w1x1_mat(params["w3"], c2p, c3p)
    y3, s3, q3 = _conv1x1_stage(y2.reshape(m, c2p), w3, scale2, shift2, tm=tm)
    scale3, shift3 = _bn_scale_shift(s3, q3, m, params["gamma3"], params["beta3"])

    # ---- epilogue: bn3 affine + out.index_add_(1, indices, identity) + ReLU --
    # index_add_ over channels == identity_rows @ one-hot scatter matrix S
    # (duplicate indices accumulate correctly); S is exact in bf16.
    # TODO(synk): downsample module is None in this configuration; if provided
    # it would transform `identity` before the add.
    smat = (jnp.zeros((cin_p, c3p), jnp.float32)
            .at[jnp.arange(cin), indices].set(1.0)).astype(jnp.bfloat16)
    out_rows = _bn_residual_relu_stage(y3, scale3, shift3, x_rows, smat, tm=tm)

    out = out_rows.reshape(n, h, w, c3p)[..., :c3]
    return jnp.transpose(out, (0, 3, 1, 2))             # NHWC -> NCHW


# ---------------------------------------------------------------------------
# pure-JAX reference (loose numerical check of the bf16 MXU path)
# ---------------------------------------------------------------------------
def _reference_forward(x, params, indices):
    def bn(y, gamma, beta):
        mean = jnp.mean(y, axis=(0, 2, 3), keepdims=True)
        var = jnp.var(y, axis=(0, 2, 3), keepdims=True)
        yh = (y - mean) * lax.rsqrt(var + EPS)
        return yh * gamma.reshape(1, -1, 1, 1) + beta.reshape(1, -1, 1, 1)

    def conv(y, wgt, pad):
        return lax.conv_general_dilated(
            y, wgt, (1, 1), ((pad, pad), (pad, pad)),
            dimension_numbers=("NCHW", "OIHW", "NCHW"))

    out = jax.nn.relu(bn(conv(x, params["w1"], 0), params["gamma1"], params["beta1"]))
    out = jax.nn.relu(bn(conv(out, params["w2"], 1), params["gamma2"], params["beta2"]))
    out = bn(conv(out, params["w3"], 0), params["gamma3"], params["beta3"])
    out = out.at[:, indices, :, :].add(x)               # index_add_(1, indices, identity)
    return jax.nn.relu(out)


# ---------------------------------------------------------------------------
# deterministic demo
# ---------------------------------------------------------------------------
if __name__ == "__main__":
    N, C_IN, H, W = 2, 4, 16, 16
    PLANES = 4
    C_OUT = PLANES * 4            # Bottleneck expansion = 4

    key = jax.random.PRNGKey(0)
    kx, k1, k2, k3, kg, kb = jax.random.split(key, 6)

    x = jax.random.normal(kx, (N, C_IN, H, W), jnp.float32)
    params = {
        # conv1x1 / conv3x3 weights (bias=False, as in the reference helpers)
        "w1": 0.1 * jax.random.normal(k1, (PLANES, C_IN, 1, 1), jnp.float32),
        "gamma1": 1.0 + 0.1 * jax.random.normal(kg, (PLANES,), jnp.float32),
        "beta1": 0.1 * jax.random.normal(kb, (PLANES,), jnp.float32),
        "w2": 0.1 * jax.random.normal(k2, (PLANES, PLANES, 3, 3), jnp.float32),
        "gamma2": jnp.ones((PLANES,), jnp.float32),
        "beta2": jnp.full((PLANES,), 0.05, jnp.float32),
        "w3": 0.1 * jax.random.normal(k3, (C_OUT, PLANES, 1, 1), jnp.float32),
        "gamma3": jnp.ones((C_OUT,), jnp.float32),
        "beta3": jnp.zeros((C_OUT,), jnp.float32),
    }
    # register_buffer('indices', torch.zeros(sizes['indices'], dtype=torch.int))
    indices = jnp.zeros((C_IN,), jnp.int32)

    fwd = jax.jit(bottleneck_forward, static_argnames=("stride",))
    out = fwd(x, params, indices, stride=1)
    jax.block_until_ready(out)

    assert out.shape == (N, C_OUT, H, W), out.shape
    assert out.dtype == jnp.float32
    assert bool(jnp.all(out >= 0.0))                    # final ReLU

    ref = _reference_forward(x, params, indices)
    err = float(jnp.max(jnp.abs(out - ref)))
    tol = 0.06 * max(float(jnp.max(jnp.abs(ref))), 1.0) + 0.15  # bf16 path vs f32 ref
    assert err <= tol, (err, tol)

    print("KERNEL_OK")
</pallas_src>

<mosaic_0001>
module attributes {stable_mosaic.version = 11 : i64} {
  func.func @_act_conv1x1_stats_kernel(%arg0: i32, %arg1: memref<512x128xbf16, #tpu.memory_space<vmem>>, %arg2: memref<1x128xf32, #tpu.memory_space<vmem>>, %arg3: memref<1x128xf32, #tpu.memory_space<vmem>>, %arg4: memref<128x128xbf16, #tpu.memory_space<vmem>>, %arg5: memref<512x128xbf16, #tpu.memory_space<vmem>>, %arg6: memref<1x1x128xf32, #tpu.memory_space<vmem>>, %arg7: memref<1x1x128xf32, #tpu.memory_space<vmem>>) attributes {dimension_semantics = [#tpu.dimension_semantics<parallel>], iteration_bounds = array<i64: 1>, scalar_prefetch = 0 : i64, scratch_operands = 0 : i64, tpu.core_type = #tpu.core_type<tc>, window_params = [{transform_indices = @transform_0, window_bounds = array<i64: 512, 128>}, {pipeline_mode = #tpu.pipeline_mode<synchronous>, transform_indices = @transform_1, window_bounds = array<i64: 1, 128>}, {pipeline_mode = #tpu.pipeline_mode<synchronous>, transform_indices = @transform_2, window_bounds = array<i64: 1, 128>}, {pipeline_mode = #tpu.pipeline_mode<synchronous>, transform_indices = @transform_3, window_bounds = array<i64: 128, 128>}, {transform_indices = @transform_4, window_bounds = array<i64: 512, 128>}, {transform_indices = @transform_5, window_bounds = array<i64: 1, 1, 128>}, {transform_indices = @transform_6, window_bounds = array<i64: 1, 1, 128>}]} {
    %c0 = arith.constant 0 : index
    %c0_0 = arith.constant 0 : index
    %0 = vector.load %arg1[%c0, %c0_0] : memref<512x128xbf16, #tpu.memory_space<vmem>>, vector<512x128xbf16>
    %1 = arith.extf %0 : vector<512x128xbf16> to vector<512x128xf32>
    %c0_1 = arith.constant 0 : index
    %c0_2 = arith.constant 0 : index
    %2 = vector.load %arg2[%c0_1, %c0_2] : memref<1x128xf32, #tpu.memory_space<vmem>>, vector<1x128xf32>
    %3 = vector.broadcast %2 : vector<1x128xf32> to vector<512x128xf32>
    %4 = arith.mulf %1, %3 : vector<512x128xf32>
    %c0_3 = arith.constant 0 : index
    %c0_4 = arith.constant 0 : index
    %5 = vector.load %arg3[%c0_3, %c0_4] : memref<1x128xf32, #tpu.memory_space<vmem>>, vector<1x128xf32>
    %6 = vector.broadcast %5 : vector<1x128xf32> to vector<512x128xf32>
    %7 = arith.addf %4, %6 : vector<512x128xf32>
    %cst = arith.constant 0.000000e+00 : f32
    %8 = vector.broadcast %cst : f32 to vector<512x128xf32>
    %9 = arith.maximumf %7, %8 : vector<512x128xf32>
    %10 = arith.truncf %9 : vector<512x128xf32> to vector<512x128xbf16>
    %c0_5 = arith.constant 0 : index
    %c0_6 = arith.constant 0 : index
    %11 = vector.load %arg4[%c0_5, %c0_6] : memref<128x128xbf16, #tpu.memory_space<vmem>>, vector<128x128xbf16>
    %cst_7 = arith.constant dense<0.000000e+00> : vector<512x128xf32>
    %12 = tpu.matmul %10, %11, %cst_7 {dimension_numbers = #tpu.dot_dimension_numbers<[1], [0], [0], [1], [0, 0, 1, 1], [], []>} : vector<512x128xbf16>, vector<128x128xbf16>, vector<512x128xf32> -> vector<512x128xf32>
    %13 = arith.truncf %12 : vector<512x128xf32> to vector<512x128xbf16>
    %c0_8 = arith.constant 0 : index
    %c0_9 = arith.constant 0 : index
    %14 = vector.load %arg5[%c0_8, %c0_9] : memref<512x128xbf16, #tpu.memory_space<vmem>>, vector<512x128xbf16>
    tpu.vector_store %arg5[%c0_8, %c0_9], %13 {strides = array<i32>} : memref<512x128xbf16, #tpu.memory_space<vmem>>, vector<512x128xbf16>,
    %cst_10 = arith.constant dense<0.000000e+00> : vector<128xf32>
    %15 = vector.multi_reduction <add>, %12, %cst_10 [0] : vector<512x128xf32> to vector<128xf32>
    %16 = vector.shape_cast %15 : vector<128xf32> to vector<1x128xf32>
    %c0_11 = arith.constant 0 : index
    %c0_12 = arith.constant 0 : index
    %c0_13 = arith.constant 0 : index
    %17 = vector.load %arg6[%c0_11, %c0_12, %c0_13] : memref<1x1x128xf32, #tpu.memory_space<vmem>>, vector<1x1x128xf32>
    %18 = vector.shape_cast %17 : vector<1x1x128xf32> to vector<1x128xf32>
    %19 = vector.shape_cast %16 : vector<1x128xf32> to vector<1x1x128xf32>
    tpu.vector_store %arg6[%c0_11, %c0_12, %c0_13], %19 {strides = array<i32>} : memref<1x1x128xf32, #tpu.memory_space<vmem>>, vector<1x1x128xf32>,
    %20 = arith.mulf %12, %12 : vector<512x128xf32>
    %cst_14 = arith.constant dense<0.000000e+00> : vector<128xf32>
    %21 = vector.multi_reduction <add>, %20, %cst_14 [0] : vector<512x128xf32> to vector<128xf32>
    %22 = vector.shape_cast %21 : vector<128xf32> to vector<1x128xf32>
    %c0_15 = arith.constant 0 : index
    %c0_16 = arith.constant 0 : index
    %c0_17 = arith.constant 0 : index
    %23 = vector.load %arg7[%c0_15, %c0_16, %c0_17] : memref<1x1x128xf32, #tpu.memory_space<vmem>>, vector<1x1x128xf32>
    %24 = vector.shape_cast %23 : vector<1x1x128xf32> to vector<1x128xf32>
    %25 = vector.shape_cast %22 : vector<1x128xf32> to vector<1x1x128xf32>
    tpu.vector_store %arg7[%c0_15, %c0_16, %c0_17], %25 {strides = array<i32>} : memref<1x1x128xf32, #tpu.memory_space<vmem>>, vector<1x1x128xf32>,
    return
  }
  func.func @transform_0(%arg0: i32) -> (i32, i32) {
    %c0_i32 = arith.constant 0 : i32
    %c0_i32_0 = arith.constant 0 : i32
    return %arg0, %c0_i32 : i32, i32
  }
  func.func @transform_1(%arg0: i32) -> (i32, i32) {
    %c0_i32 = arith.constant 0 : i32
    %c0_i32_0 = arith.constant 0 : i32
    %c0_i32_1 = arith.constant 0 : i32
    return %c0_i32, %c0_i32_0 : i32, i32
  }
  func.func @transform_2(%arg0: i32) -> (i32, i32) {
    %c0_i32 = arith.constant 0 : i32
    %c0_i32_0 = arith.constant 0 : i32
    %c0_i32_1 = arith.constant 0 : i32
    return %c0_i32, %c0_i32_0 : i32, i32
  }
  func.func @transform_3(%arg0: i32) -> (i32, i32) {
    %c0_i32 = arith.constant 0 : i32
    %c0_i32_0 = arith.constant 0 : i32
    %c0_i32_1 = arith.constant 0 : i32
    return %c0_i32, %c0_i32_0 : i32, i32
  }
  func.func @transform_4(%arg0: i32) -> (i32, i32) {
    %c0_i32 = arith.constant 0 : i32
    %c0_i32_0 = arith.constant 0 : i32
    return %arg0, %c0_i32 : i32, i32
  }
  func.func @transform_5(%arg0: i32) -> (i32, i32, i32) {
    %c0_i32 = arith.constant 0 : i32
    %c0_i32_0 = arith.constant 0 : i32
    %c0_i32_1 = arith.constant 0 : i32
    return %arg0, %c0_i32, %c0_i32_0 : i32, i32, i32
  }
  func.func @transform_6(%arg0: i32) -> (i32, i32, i32) {
    %c0_i32 = arith.constant 0 : i32
    %c0_i32_0 = arith.constant 0 : i32
    %c0_i32_1 = arith.constant 0 : i32
    return %arg0, %c0_i32, %c0_i32_0 : i32, i32, i32
  }
}

module attributes {stable_mosaic.version = 11 : i64} {
  func.func @_conv1x1_stats_kernel(%arg0: i32, %arg1: memref<512x128xbf16, #tpu.memory_space<vmem>>, %arg2: memref<128x128xbf16, #tpu.memory_space<vmem>>, %arg3: memref<512x128xbf16, #tpu.memory_space<vmem>>, %arg4: memref<1x1x128xf32, #tpu.memory_space<vmem>>, %arg5: memref<1x1x128xf32, #tpu.memory_space<vmem>>) attributes {dimension_semantics = [#tpu.dimension_semantics<parallel>], iteration_bounds = array<i64: 1>, scalar_prefetch = 0 : i64, scratch_operands = 0 : i64, tpu.core_type = #tpu.core_type<tc>, window_params = [{transform_indices = @transform_0, window_bounds = array<i64: 512, 128>}, {pipeline_mode = #tpu.pipeline_mode<synchronous>, transform_indices = @transform_1, window_bounds = array<i64: 128, 128>}, {transform_indices = @transform_2, window_bounds = array<i64: 512, 128>}, {transform_indices = @transform_3, window_bounds = array<i64: 1, 1, 128>}, {transform_indices = @transform_4, window_bounds = array<i64: 1, 1, 128>}]} {
    %c0 = arith.constant 0 : index
    %c0_0 = arith.constant 0 : index
    %0 = vector.load %arg1[%c0, %c0_0] : memref<512x128xbf16, #tpu.memory_space<vmem>>, vector<512x128xbf16>
    %c0_1 = arith.constant 0 : index
    %c0_2 = arith.constant 0 : index
    %1 = vector.load %arg2[%c0_1, %c0_2] : memref<128x128xbf16, #tpu.memory_space<vmem>>, vector<128x128xbf16>
    %cst = arith.constant dense<0.000000e+00> : vector<512x128xf32>
    %2 = tpu.matmul %0, %1, %cst {dimension_numbers = #tpu.dot_dimension_numbers<[1], [0], [0], [1], [0, 0, 1, 1], [], []>} : vector<512x128xbf16>, vector<128x128xbf16>, vector<512x128xf32> -> vector<512x128xf32>
    %3 = arith.truncf %2 : vector<512x128xf32> to vector<512x128xbf16>
    %c0_3 = arith.constant 0 : index
    %c0_4 = arith.constant 0 : index
    %4 = vector.load %arg3[%c0_3, %c0_4] : memref<512x128xbf16, #tpu.memory_space<vmem>>, vector<512x128xbf16>
    tpu.vector_store %arg3[%c0_3, %c0_4], %3 {strides = array<i32>} : memref<512x128xbf16, #tpu.memory_space<vmem>>, vector<512x128xbf16>,
    %cst_5 = arith.constant dense<0.000000e+00> : vector<128xf32>
    %5 = vector.multi_reduction <add>, %2, %cst_5 [0] : vector<512x128xf32> to vector<128xf32>
    %6 = vector.shape_cast %5 : vector<128xf32> to vector<1x128xf32>
    %c0_6 = arith.constant 0 : index
    %c0_7 = arith.constant 0 : index
    %c0_8 = arith.constant 0 : index
    %7 = vector.load %arg4[%c0_6, %c0_7, %c0_8] : memref<1x1x128xf32, #tpu.memory_space<vmem>>, vector<1x1x128xf32>
    %8 = vector.shape_cast %7 : vector<1x1x128xf32> to vector<1x128xf32>
    %9 = vector.shape_cast %6 : vector<1x128xf32> to vector<1x1x128xf32>
    tpu.vector_store %arg4[%c0_6, %c0_7, %c0_8], %9 {strides = array<i32>} : memref<1x1x128xf32, #tpu.memory_space<vmem>>, vector<1x1x128xf32>,
    %10 = arith.mulf %2, %2 : vector<512x128xf32>
    %cst_9 = arith.constant dense<0.000000e+00> : vector<128xf32>
    %11 = vector.multi_reduction <add>, %10, %cst_9 [0] : vector<512x128xf32> to vector<128xf32>
    %12 = vector.shape_cast %11 : vector<128xf32> to vector<1x128xf32>
    %c0_10 = arith.constant 0 : index
    %c0_11 = arith.constant 0 : index
    %c0_12 = arith.constant 0 : index
    %13 = vector.load %arg5[%c0_10, %c0_11, %c0_12] : memref<1x1x128xf32, #tpu.memory_space<vmem>>, vector<1x1x128xf32>
    %14 = vector.shape_cast %13 : vector<1x1x128xf32> to vector<1x128xf32>
    %15 = vector.shape_cast %12 : vector<1x128xf32> to vector<1x1x128xf32>
    tpu.vector_store %arg5[%c0_10, %c0_11, %c0_12], %15 {strides = array<i32>} : memref<1x1x128xf32, #tpu.memory_space<vmem>>, vector<1x1x128xf32>,
    return
  }
  func.func @transform_0(%arg0: i32) -> (i32, i32) {
    %c0_i32 = arith.constant 0 : i32
    %c0_i32_0 = arith.constant 0 : i32
    return %arg0, %c0_i32 : i32, i32
  }
  func.func @transform_1(%arg0: i32) -> (i32, i32) {
    %c0_i32 = arith.constant 0 : i32
    %c0_i32_0 = arith.constant 0 : i32
    %c0_i32_1 = arith.constant 0 : i32
    return %c0_i32, %c0_i32_0 : i32, i32
  }
  func.func @transform_2(%arg0: i32) -> (i32, i32) {
    %c0_i32 = arith.constant 0 : i32
    %c0_i32_0 = arith.constant 0 : i32
    return %arg0, %c0_i32 : i32, i32
  }
  func.func @transform_3(%arg0: i32) -> (i32, i32, i32) {
    %c0_i32 = arith.constant 0 : i32
    %c0_i32_0 = arith.constant 0 : i32
    %c0_i32_1 = arith.constant 0 : i32
    return %arg0, %c0_i32, %c0_i32_0 : i32, i32, i32
  }
  func.func @transform_4(%arg0: i32) -> (i32, i32, i32) {
    %c0_i32 = arith.constant 0 : i32
    %c0_i32_0 = arith.constant 0 : i32
    %c0_i32_1 = arith.constant 0 : i32
    return %arg0, %c0_i32, %c0_i32_0 : i32, i32, i32
  }
}

module attributes {stable_mosaic.version = 11 : i64} {
  func.func @_conv3x3_stats_kernel(%arg0: i32, %arg1: memref<1x256x128xbf16, #tpu.memory_space<vmem>>, %arg2: memref<1x128xf32, #tpu.memory_space<vmem>>, %arg3: memref<1x128xf32, #tpu.memory_space<vmem>>, %arg4: memref<9x128x128xbf16, #tpu.memory_space<vmem>>, %arg5: memref<1x256x128xbf16, #tpu.memory_space<vmem>>, %arg6: memref<1x1x128xf32, #tpu.memory_space<vmem>>, %arg7: memref<1x1x128xf32, #tpu.memory_space<vmem>>) attributes {dimension_semantics = [#tpu.dimension_semantics<parallel>], iteration_bounds = array<i64: 2>, scalar_prefetch = 0 : i64, scratch_operands = 0 : i64, tpu.core_type = #tpu.core_type<tc>, window_params = [{transform_indices = @transform_0, window_bounds = array<i64: 1, 256, 128>}, {pipeline_mode = #tpu.pipeline_mode<synchronous>, transform_indices = @transform_1, window_bounds = array<i64: 1, 128>}, {pipeline_mode = #tpu.pipeline_mode<synchronous>, transform_indices = @transform_2, window_bounds = array<i64: 1, 128>}, {pipeline_mode = #tpu.pipeline_mode<synchronous>, transform_indices = @transform_3, window_bounds = array<i64: 9, 128, 128>}, {transform_indices = @transform_4, window_bounds = array<i64: 1, 256, 128>}, {transform_indices = @transform_5, window_bounds = array<i64: 1, 1, 128>}, {transform_indices = @transform_6, window_bounds = array<i64: 1, 1, 128>}]} {
    %c0 = arith.constant 0 : index
    %c0_0 = arith.constant 0 : index
    %c0_1 = arith.constant 0 : index
    %0 = vector.load %arg1[%c0, %c0_0, %c0_1] : memref<1x256x128xbf16, #tpu.memory_space<vmem>>, vector<1x256x128xbf16>
    %1 = vector.shape_cast %0 : vector<1x256x128xbf16> to vector<256x128xbf16>
    %2 = arith.extf %1 : vector<256x128xbf16> to vector<256x128xf32>
    %c0_2 = arith.constant 0 : index
    %c0_3 = arith.constant 0 : index
    %3 = vector.load %arg2[%c0_2, %c0_3] : memref<1x128xf32, #tpu.memory_space<vmem>>, vector<1x128xf32>
    %4 = vector.broadcast %3 : vector<1x128xf32> to vector<256x128xf32>
    %5 = arith.mulf %2, %4 : vector<256x128xf32>
    %c0_4 = arith.constant 0 : index
    %c0_5 = arith.constant 0 : index
    %6 = vector.load %arg3[%c0_4, %c0_5] : memref<1x128xf32, #tpu.memory_space<vmem>>, vector<1x128xf32>
    %7 = vector.broadcast %6 : vector<1x128xf32> to vector<256x128xf32>
    %8 = arith.addf %5, %7 : vector<256x128xf32>
    %cst = arith.constant 0.000000e+00 : f32
    %9 = vector.broadcast %cst : f32 to vector<256x128xf32>
    %10 = arith.maximumf %8, %9 : vector<256x128xf32>
    %11 = tpu.iota {dimensions = array<i32: 0>} : vector<256x1xi32>
    %c16_i32 = arith.constant 16 : i32
    %c0_i32 = arith.constant 0 : i32
    %12 = arith.cmpi eq, %c16_i32, %c0_i32 : i32
    %c1_i32 = arith.constant 1 : i32
    %13 = arith.select %12, %c1_i32, %c16_i32 : i32
    %14 = vector.broadcast %13 : i32 to vector<256x1xi32>
    %15 = arith.remsi %11, %14 : vector<256x1xi32>
    %c0_i32_6 = arith.constant 0 : i32
    %16 = vector.broadcast %c0_i32_6 : i32 to vector<256x1xi32>
    %17 = arith.cmpi ne, %15, %16 : vector<256x1xi32>
    %c0_i32_7 = arith.constant 0 : i32
    %18 = vector.broadcast %c0_i32_7 : i32 to vector<256x1xi32>
    %19 = arith.cmpi slt, %15, %18 : vector<256x1xi32>
    %c0_i32_8 = arith.constant 0 : i32
    %20 = arith.cmpi slt, %13, %c0_i32_8 : i32
    %21 = vector.broadcast %20 : i1 to vector<256x1xi1>
    %22 = vector.broadcast %21 : vector<256x1xi1> to vector<256x1xi1>
    %23 = arith.xori %19, %22 : vector<256x1xi1>
    %24 = arith.andi %23, %17 : vector<256x1xi1>
    %25 = vector.broadcast %13 : i32 to vector<256x1xi32>
    %26 = arith.addi %15, %25 : vector<256x1xi32>
    %27 = arith.select %24, %26, %15 : vector<256x1xi1>, vector<256x1xi32>
    %cst_9 = arith.constant 0.000000e+00 : f32
    %28 = vector.broadcast %cst_9 : f32 to vector<256x128xf32>
    %c17_i32 = arith.constant 17 : i32
    %29 = tpu.dynamic_rotate %10 by %c17_i32 dim 0 : vector<256x128xf32>, i32 -> vector<256x128xf32>
    %c16_i32_10 = arith.constant 16 : i32
    %30 = vector.broadcast %c16_i32_10 : i32 to vector<256x1xi32>
    %31 = arith.cmpi sge, %11, %30 : vector<256x1xi32>
    %c1_i32_11 = arith.constant 1 : i32
    %32 = vector.broadcast %c1_i32_11 : i32 to vector<256x1xi32>
    %33 = arith.cmpi sge, %27, %32 : vector<256x1xi32>
    %34 = arith.andi %31, %33 : vector<256x1xi1>
    %cst_12 = arith.constant 0.000000e+00 : f32
    %35 = vector.shape_cast %34 : vector<256x1xi1> to vector<256x1xi1>
    %36 = vector.broadcast %35 : vector<256x1xi1> to vector<256x128xi1>
    %37 = vector.broadcast %cst_12 : f32 to vector<256x128xf32>
    %38 = arith.select %36, %29, %37 : vector<256x128xi1>, vector<256x128xf32>
    %39 = arith.truncf %38 : vector<256x128xf32> to vector<256x128xbf16>
    %c0_13 = arith.constant 0 : index
    %c0_14 = arith.constant 0 : index
    %c0_15 = arith.constant 0 : index
    %40 = vector.load %arg4[%c0_13, %c0_14, %c0_15] : memref<9x128x128xbf16, #tpu.memory_space<vmem>>, vector<1x128x128xbf16>
    %41 = vector.shape_cast %40 : vector<1x128x128xbf16> to vector<128x128xbf16>
    %cst_16 = arith.constant dense<0.000000e+00> : vector<256x128xf32>
    %42 = tpu.matmul %39, %41, %cst_16 {dimension_numbers = #tpu.dot_dimension_numbers<[1], [0], [0], [1], [0, 0, 1, 1], [], []>} : vector<256x128xbf16>, vector<128x128xbf16>, vector<256x128xf32> -> vector<256x128xf32>
    %43 = arith.addf %28, %42 : vector<256x128xf32>
    %c16_i32_17 = arith.constant 16 : i32
    %44 = tpu.dynamic_rotate %10 by %c16_i32_17 dim 0 : vector<256x128xf32>, i32 -> vector<256x128xf32>
    %c16_i32_18 = arith.constant 16 : i32
    %45 = vector.broadcast %c16_i32_18 : i32 to vector<256x1xi32>
    %46 = arith.cmpi sge, %11, %45 : vector<256x1xi32>
    %cst_19 = arith.constant 0.000000e+00 : f32
    %47 = vector.shape_cast %46 : vector<256x1xi1> to vector<256x1xi1>
    %48 = vector.broadcast %47 : vector<256x1xi1> to vector<256x128xi1>
    %49 = vector.broadcast %cst_19 : f32 to vector<256x128xf32>
    %50 = arith.select %48, %44, %49 : vector<256x128xi1>, vector<256x128xf32>
    %51 = arith.truncf %50 : vector<256x128xf32> to vector<256x128xbf16>
    %c1 = arith.constant 1 : index
    %c0_20 = arith.constant 0 : index
    %c0_21 = arith.constant 0 : index
    %52 = vector.load %arg4[%c1, %c0_20, %c0_21] : memref<9x128x128xbf16, #tpu.memory_space<vmem>>, vector<1x128x128xbf16>
    %53 = vector.shape_cast %52 : vector<1x128x128xbf16> to vector<128x128xbf16>
    %cst_22 = arith.constant dense<0.000000e+00> : vector<256x128xf32>
    %54 = tpu.matmul %51, %53, %cst_22 {dimension_numbers = #tpu.dot_dimension_numbers<[1], [0], [0], [1], [0, 0, 1, 1], [], []>} : vector<256x128xbf16>, vector<128x128xbf16>, vector<256x128xf32> -> vector<256x128xf32>
    %55 = arith.addf %43, %54 : vector<256x128xf32>
    %c15_i32 = arith.constant 15 : i32
    %56 = tpu.dynamic_rotate %10 by %c15_i32 dim 0 : vector<256x128xf32>, i32 -> vector<256x128xf32>
    %c16_i32_23 = arith.constant 16 : i32
    %57 = vector.broadcast %c16_i32_23 : i32 to vector<256x1xi32>
    %58 = arith.cmpi sge, %11, %57 : vector<256x1xi32>
    %c14_i32 = arith.constant 14 : i32
    %59 = vector.broadcast %c14_i32 : i32 to vector<256x1xi32>
    %60 = arith.cmpi sle, %27, %59 : vector<256x1xi32>
    %61 = arith.andi %58, %60 : vector<256x1xi1>
    %cst_24 = arith.constant 0.000000e+00 : f32
    %62 = vector.shape_cast %61 : vector<256x1xi1> to vector<256x1xi1>
    %63 = vector.broadcast %62 : vector<256x1xi1> to vector<256x128xi1>
    %64 = vector.broadcast %cst_24 : f32 to vector<256x128xf32>
    %65 = arith.select %63, %56, %64 : vector<256x128xi1>, vector<256x128xf32>
    %66 = arith.truncf %65 : vector<256x128xf32> to vector<256x128xbf16>
    %c2 = arith.constant 2 : index
    %c0_25 = arith.constant 0 : index
    %c0_26 = arith.constant 0 : index
    %67 = vector.load %arg4[%c2, %c0_25, %c0_26] : memref<9x128x128xbf16, #tpu.memory_space<vmem>>, vector<1x128x128xbf16>
    %68 = vector.shape_cast %67 : vector<1x128x128xbf16> to vector<128x128xbf16>
    %cst_27 = arith.constant dense<0.000000e+00> : vector<256x128xf32>
    %69 = tpu.matmul %66, %68, %cst_27 {dimension_numbers = #tpu.dot_dimension_numbers<[1], [0], [0], [1], [0, 0, 1, 1], [], []>} : vector<256x128xbf16>, vector<128x128xbf16>, vector<256x128xf32> -> vector<256x128xf32>
    %70 = arith.addf %55, %69 : vector<256x128xf32>
    %c1_i32_28 = arith.constant 1 : i32
    %71 = tpu.dynamic_rotate %10 by %c1_i32_28 dim 0 : vector<256x128xf32>, i32 -> vector<256x128xf32>
    %c1_i32_29 = arith.constant 1 : i32
    %72 = vector.broadcast %c1_i32_29 : i32 to vector<256x1xi32>
    %73 = arith.cmpi sge, %27, %72 : vector<256x1xi32>
    %cst_30 = arith.constant 0.000000e+00 : f32
    %74 = vector.shape_cast %73 : vector<256x1xi1> to vector<256x1xi1>
    %75 = vector.broadcast %74 : vector<256x1xi1> to vector<256x128xi1>
    %76 = vector.broadcast %cst_30 : f32 to vector<256x128xf32>
    %77 = arith.select %75, %71, %76 : vector<256x128xi1>, vector<256x128xf32>
    %78 = arith.truncf %77 : vector<256x128xf32> to vector<256x128xbf16>
    %c3 = arith.constant 3 : index
    %c0_31 = arith.constant 0 : index
    %c0_32 = arith.constant 0 : index
    %79 = vector.load %arg4[%c3, %c0_31, %c0_32] : memref<9x128x128xbf16, #tpu.memory_space<vmem>>, vector<1x128x128xbf16>
    %80 = vector.shape_cast %79 : vector<1x128x128xbf16> to vector<128x128xbf16>
    %cst_33 = arith.constant dense<0.000000e+00> : vector<256x128xf32>
    %81 = tpu.matmul %78, %80, %cst_33 {dimension_numbers = #tpu.dot_dimension_numbers<[1], [0], [0], [1], [0, 0, 1, 1], [], []>} : vector<256x128xbf16>, vector<128x128xbf16>, vector<256x128xf32> -> vector<256x128xf32>
    %82 = arith.addf %70, %81 : vector<256x128xf32>
    %83 = arith.truncf %10 : vector<256x128xf32> to vector<256x128xbf16>
    %c4 = arith.constant 4 : index
    %c0_34 = arith.constant 0 : index
    %c0_35 = arith.constant 0 : index
    %84 = vector.load %arg4[%c4, %c0_34, %c0_35] : memref<9x128x128xbf16, #tpu.memory_space<vmem>>, vector<1x128x128xbf16>
    %85 = vector.shape_cast %84 : vector<1x128x128xbf16> to vector<128x128xbf16>
    %cst_36 = arith.constant dense<0.000000e+00> : vector<256x128xf32>
    %86 = tpu.matmul %83, %85, %cst_36 {dimension_numbers = #tpu.dot_dimension_numbers<[1], [0], [0], [1], [0, 0, 1, 1], [], []>} : vector<256x128xbf16>, vector<128x128xbf16>, vector<256x128xf32> -> vector<256x128xf32>
    %87 = arith.addf %82, %86 : vector<256x128xf32>
    %c255_i32 = arith.constant 255 : i32
    %88 = tpu.dynamic_rotate %10 by %c255_i32 dim 0 : vector<256x128xf32>, i32 -> vector<256x128xf32>
    %c14_i32_37 = arith.constant 14 : i32
    %89 = vector.broadcast %c14_i32_37 : i32 to vector<256x1xi32>
    %90 = arith.cmpi sle, %27, %89 : vector<256x1xi32>
    %cst_38 = arith.constant 0.000000e+00 : f32
    %91 = vector.shape_cast %90 : vector<256x1xi1> to vector<256x1xi1>
    %92 = vector.broadcast %91 : vector<256x1xi1> to vector<256x128xi1>
    %93 = vector.broadcast %cst_38 : f32 to vector<256x128xf32>
    %94 = arith.select %92, %88, %93 : vector<256x128xi1>, vector<256x128xf32>
    %95 = arith.truncf %94 : vector<256x128xf32> to vector<256x128xbf16>
    %c5 = arith.constant 5 : index
    %c0_39 = arith.constant 0 : index
    %c0_40 = arith.constant 0 : index
    %96 = vector.load %arg4[%c5, %c0_39, %c0_40] : memref<9x128x128xbf16, #tpu.memory_space<vmem>>, vector<1x128x128xbf16>
    %97 = vector.shape_cast %96 : vector<1x128x128xbf16> to vector<128x128xbf16>
    %cst_41 = arith.constant dense<0.000000e+00> : vector<256x128xf32>
    %98 = tpu.matmul %95, %97, %cst_41 {dimension_numbers = #tpu.dot_dimension_numbers<[1], [0], [0], [1], [0, 0, 1, 1], [], []>} : vector<256x128xbf16>, vector<128x128xbf16>, vector<256x128xf32> -> vector<256x128xf32>
    %99 = arith.addf %87, %98 : vector<256x128xf32>
    %c241_i32 = arith.constant 241 : i32
    %100 = tpu.dynamic_rotate %10 by %c241_i32 dim 0 : vector<256x128xf32>, i32 -> vector<256x128xf32>
    %c240_i32 = arith.constant 240 : i32
    %101 = vector.broadcast %c240_i32 : i32 to vector<256x1xi32>
    %102 = arith.cmpi slt, %11, %101 : vector<256x1xi32>
    %c1_i32_42 = arith.constant 1 : i32
    %103 = vector.broadcast %c1_i32_42 : i32 to vector<256x1xi32>
    %104 = arith.cmpi sge, %27, %103 : vector<256x1xi32>
    %105 = arith.andi %102, %104 : vector<256x1xi1>
    %cst_43 = arith.constant 0.000000e+00 : f32
    %106 = vector.shape_cast %105 : vector<256x1xi1> to vector<256x1xi1>
    %107 = vector.broadcast %106 : vector<256x1xi1> to vector<256x128xi1>
    %108 = vector.broadcast %cst_43 : f32 to vector<256x128xf32>
    %109 = arith.select %107, %100, %108 : vector<256x128xi1>, vector<256x128xf32>
    %110 = arith.truncf %109 : vector<256x128xf32> to vector<256x128xbf16>
    %c6 = arith.constant 6 : index
    %c0_44 = arith.constant 0 : index
    %c0_45 = arith.constant 0 : index
    %111 = vector.load %arg4[%c6, %c0_44, %c0_45] : memref<9x128x128xbf16, #tpu.memory_space<vmem>>, vector<1x128x128xbf16>
    %112 = vector.shape_cast %111 : vector<1x128x128xbf16> to vector<128x128xbf16>
    %cst_46 = arith.constant dense<0.000000e+00> : vector<256x128xf32>
    %113 = tpu.matmul %110, %112, %cst_46 {dimension_numbers = #tpu.dot_dimension_numbers<[1], [0], [0], [1], [0, 0, 1, 1], [], []>} : vector<256x128xbf16>, vector<128x128xbf16>, vector<256x128xf32> -> vector<256x128xf32>
    %114 = arith.addf %99, %113 : vector<256x128xf32>
    %c240_i32_47 = arith.constant 240 : i32
    %115 = tpu.dynamic_rotate %10 by %c240_i32_47 dim 0 : vector<256x128xf32>, i32 -> vector<256x128xf32>
    %c240_i32_48 = arith.constant 240 : i32
    %116 = vector.broadcast %c240_i32_48 : i32 to vector<256x1xi32>
    %117 = arith.cmpi slt, %11, %116 : vector<256x1xi32>
    %cst_49 = arith.constant 0.000000e+00 : f32
    %118 = vector.shape_cast %117 : vector<256x1xi1> to vector<256x1xi1>
    %119 = vector.broadcast %118 : vector<256x1xi1> to vector<256x128xi1>
    %120 = vector.broadcast %cst_49 : f32 to vector<256x128xf32>
    %121 = arith.select %119, %115, %120 : vector<256x128xi1>, vector<256x128xf32>
    %122 = arith.truncf %121 : vector<256x128xf32> to vector<256x128xbf16>
    %c7 = arith.constant 7 : index
    %c0_50 = arith.constant 0 : index
    %c0_51 = arith.constant 0 : index
    %123 = vector.load %arg4[%c7, %c0_50, %c0_51] : memref<9x128x128xbf16, #tpu.memory_space<vmem>>, vector<1x128x128xbf16>
    %124 = vector.shape_cast %123 : vector<1x128x128xbf16> to vector<128x128xbf16>
    %cst_52 = arith.constant dense<0.000000e+00> : vector<256x128xf32>
    %125 = tpu.matmul %122, %124, %cst_52 {dimension_numbers = #tpu.dot_dimension_numbers<[1], [0], [0], [1], [0, 0, 1, 1], [], []>} : vector<256x128xbf16>, vector<128x128xbf16>, vector<256x128xf32> -> vector<256x128xf32>
    %126 = arith.addf %114, %125 : vector<256x128xf32>
    %c239_i32 = arith.constant 239 : i32
    %127 = tpu.dynamic_rotate %10 by %c239_i32 dim 0 : vector<256x128xf32>, i32 -> vector<256x128xf32>
    %c240_i32_53 = arith.constant 240 : i32
    %128 = vector.broadcast %c240_i32_53 : i32 to vector<256x1xi32>
    %129 = arith.cmpi slt, %11, %128 : vector<256x1xi32>
    %c14_i32_54 = arith.constant 14 : i32
    %130 = vector.broadcast %c14_i32_54 : i32 to vector<256x1xi32>
    %131 = arith.cmpi sle, %27, %130 : vector<256x1xi32>
    %132 = arith.andi %129, %131 : vector<256x1xi1>
    %cst_55 = arith.constant 0.000000e+00 : f32
    %133 = vector.shape_cast %132 : vector<256x1xi1> to vector<256x1xi1>
    %134 = vector.broadcast %133 : vector<256x1xi1> to vector<256x128xi1>
    %135 = vector.broadcast %cst_55 : f32 to vector<256x128xf32>
    %136 = arith.select %134, %127, %135 : vector<256x128xi1>, vector<256x128xf32>
    %137 = arith.truncf %136 : vector<256x128xf32> to vector<256x128xbf16>
    %c8 = arith.constant 8 : index
    %c0_56 = arith.constant 0 : index
    %c0_57 = arith.constant 0 : index
    %138 = vector.load %arg4[%c8, %c0_56, %c0_57] : memref<9x128x128xbf16, #tpu.memory_space<vmem>>, vector<1x128x128xbf16>
    %139 = vector.shape_cast %138 : vector<1x128x128xbf16> to vector<128x128xbf16>
    %cst_58 = arith.constant dense<0.000000e+00> : vector<256x128xf32>
    %140 = tpu.matmul %137, %139, %cst_58 {dimension_numbers = #tpu.dot_dimension_numbers<[1], [0], [0], [1], [0, 0, 1, 1], [], []>} : vector<256x128xbf16>, vector<128x128xbf16>, vector<256x128xf32> -> vector<256x128xf32>
    %141 = arith.addf %126, %140 : vector<256x128xf32>
    %142 = arith.truncf %141 : vector<256x128xf32> to vector<256x128xbf16>
    %c0_59 = arith.constant 0 : index
    %c0_60 = arith.constant 0 : index
    %c0_61 = arith.constant 0 : index
    %143 = vector.load %arg5[%c0_59, %c0_60, %c0_61] : memref<1x256x128xbf16, #tpu.memory_space<vmem>>, vector<1x256x128xbf16>
    %144 = vector.shape_cast %143 : vector<1x256x128xbf16> to vector<256x128xbf16>
    %145 = vector.shape_cast %142 : vector<256x128xbf16> to vector<1x256x128xbf16>
    tpu.vector_store %arg5[%c0_59, %c0_60, %c0_61], %145 {strides = array<i32>} : memref<1x256x128xbf16, #tpu.memory_space<vmem>>, vector<1x256x128xbf16>,
    %cst_62 = arith.constant dense<0.000000e+00> : vector<128xf32>
    %146 = vector.multi_reduction <add>, %141, %cst_62 [0] : vector<256x128xf32> to vector<128xf32>
    %147 = vector.shape_cast %146 : vector<128xf32> to vector<1x128xf32>
    %c0_63 = arith.constant 0 : index
    %c0_64 = arith.constant 0 : index
    %c0_65 = arith.constant 0 : index
    %148 = vector.load %arg6[%c0_63, %c0_64, %c0_65] : memref<1x1x128xf32, #tpu.memory_space<vmem>>, vector<1x1x128xf32>
    %149 = vector.shape_cast %148 : vector<1x1x128xf32> to vector<1x128xf32>
    %150 = vector.shape_cast %147 : vector<1x128xf32> to vector<1x1x128xf32>
    tpu.vector_store %arg6[%c0_63, %c0_64, %c0_65], %150 {strides = array<i32>} : memref<1x1x128xf32, #tpu.memory_space<vmem>>, vector<1x1x128xf32>,
    %151 = arith.mulf %141, %141 : vector<256x128xf32>
    %cst_66 = arith.constant dense<0.000000e+00> : vector<128xf32>
    %152 = vector.multi_reduction <add>, %151, %cst_66 [0] : vector<256x128xf32> to vector<128xf32>
    %153 = vector.shape_cast %152 : vector<128xf32> to vector<1x128xf32>
    %c0_67 = arith.constant 0 : index
    %c0_68 = arith.constant 0 : index
    %c0_69 = arith.constant 0 : index
    %154 = vector.load %arg7[%c0_67, %c0_68, %c0_69] : memref<1x1x128xf32, #tpu.memory_space<vmem>>, vector<1x1x128xf32>
    %155 = vector.shape_cast %154 : vector<1x1x128xf32> to vector<1x128xf32>
    %156 = vector.shape_cast %153 : vector<1x128xf32> to vector<1x1x128xf32>
    tpu.vector_store %arg7[%c0_67, %c0_68, %c0_69], %156 {strides = array<i32>} : memref<1x1x128xf32, #tpu.memory_space<vmem>>, vector<1x1x128xf32>,
    return
  }
  func.func @transform_0(%arg0: i32) -> (i32, i32, i32) {
    %c0_i32 = arith.constant 0 : i32
    %c0_i32_0 = arith.constant 0 : i32
    %c0_i32_1 = arith.constant 0 : i32
    return %arg0, %c0_i32, %c0_i32_0 : i32, i32, i32
  }
  func.func @transform_1(%arg0: i32) -> (i32, i32) {
    %c0_i32 = arith.constant 0 : i32
    %c0_i32_0 = arith.constant 0 : i32
    %c0_i32_1 = arith.constant 0 : i32
    return %c0_i32, %c0_i32_0 : i32, i32
  }
  func.func @transform_2(%arg0: i32) -> (i32, i32) {
    %c0_i32 = arith.constant 0 : i32
    %c0_i32_0 = arith.constant 0 : i32
    %c0_i32_1 = arith.constant 0 : i32
    return %c0_i32, %c0_i32_0 : i32, i32
  }
  func.func @transform_3(%arg0: i32) -> (i32, i32, i32) {
    %c0_i32 = arith.constant 0 : i32
    %c0_i32_0 = arith.constant 0 : i32
    %c0_i32_1 = arith.constant 0 : i32
    %c0_i32_2 = arith.constant 0 : i32
    return %c0_i32, %c0_i32_0, %c0_i32_1 : i32, i32, i32
  }
  func.func @transform_4(%arg0: i32) -> (i32, i32, i32) {
    %c0_i32 = arith.constant 0 : i32
    %c0_i32_0 = arith.constant 0 : i32
    %c0_i32_1 = arith.constant 0 : i32
    return %arg0, %c0_i32, %c0_i32_0 : i32, i32, i32
  }
  func.func @transform_5(%arg0: i32) -> (i32, i32, i32) {
    %c0_i32 = arith.constant 0 : i32
    %c0_i32_0 = arith.constant 0 : i32
    %c0_i32_1 = arith.constant 0 : i32
    return %arg0, %c0_i32, %c0_i32_0 : i32, i32, i32
  }
  func.func @transform_6(%arg0: i32) -> (i32, i32, i32) {
    %c0_i32 = arith.constant 0 : i32
    %c0_i32_0 = arith.constant 0 : i32
    %c0_i32_1 = arith.constant 0 : i32
    return %arg0, %c0_i32, %c0_i32_0 : i32, i32, i32
  }
}

module attributes {stable_mosaic.version = 11 : i64} {
  func.func @_bn_residual_relu_kernel(%arg0: i32, %arg1: memref<512x128xbf16, #tpu.memory_space<vmem>>, %arg2: memref<1x128xf32, #tpu.memory_space<vmem>>, %arg3: memref<1x128xf32, #tpu.memory_space<vmem>>, %arg4: memref<512x128xbf16, #tpu.memory_space<vmem>>, %arg5: memref<128x128xbf16, #tpu.memory_space<vmem>>, %arg6: memref<512x128xf32, #tpu.memory_space<vmem>>) attributes {dimension_semantics = [#tpu.dimension_semantics<parallel>], iteration_bounds = array<i64: 1>, scalar_prefetch = 0 : i64, scratch_operands = 0 : i64, tpu.core_type = #tpu.core_type<tc>, window_params = [{transform_indices = @transform_0, window_bounds = array<i64: 512, 128>}, {pipeline_mode = #tpu.pipeline_mode<synchronous>, transform_indices = @transform_1, window_bounds = array<i64: 1, 128>}, {pipeline_mode = #tpu.pipeline_mode<synchronous>, transform_indices = @transform_2, window_bounds = array<i64: 1, 128>}, {transform_indices = @transform_3, window_bounds = array<i64: 512, 128>}, {pipeline_mode = #tpu.pipeline_mode<synchronous>, transform_indices = @transform_4, window_bounds = array<i64: 128, 128>}, {transform_indices = @transform_5, window_bounds = array<i64: 512, 128>}]} {
    %c0 = arith.constant 0 : index
    %c0_0 = arith.constant 0 : index
    %0 = vector.load %arg1[%c0, %c0_0] : memref<512x128xbf16, #tpu.memory_space<vmem>>, vector<512x128xbf16>
    %1 = arith.extf %0 : vector<512x128xbf16> to vector<512x128xf32>
    %c0_1 = arith.constant 0 : index
    %c0_2 = arith.constant 0 : index
    %2 = vector.load %arg2[%c0_1, %c0_2] : memref<1x128xf32, #tpu.memory_space<vmem>>, vector<1x128xf32>
    %3 = vector.broadcast %2 : vector<1x128xf32> to vector<512x128xf32>
    %4 = arith.mulf %1, %3 : vector<512x128xf32>
    %c0_3 = arith.constant 0 : index
    %c0_4 = arith.constant 0 : index
    %5 = vector.load %arg3[%c0_3, %c0_4] : memref<1x128xf32, #tpu.memory_space<vmem>>, vector<1x128xf32>
    %6 = vector.broadcast %5 : vector<1x128xf32> to vector<512x128xf32>
    %7 = arith.addf %4, %6 : vector<512x128xf32>
    %c0_5 = arith.constant 0 : index
    %c0_6 = arith.constant 0 : index
    %8 = vector.load %arg4[%c0_5, %c0_6] : memref<512x128xbf16, #tpu.memory_space<vmem>>, vector<512x128xbf16>
    %c0_7 = arith.constant 0 : index
    %c0_8 = arith.constant 0 : index
    %9 = vector.load %arg5[%c0_7, %c0_8] : memref<128x128xbf16, #tpu.memory_space<vmem>>, vector<128x128xbf16>
    %cst = arith.constant dense<0.000000e+00> : vector<512x128xf32>
    %10 = tpu.matmul %8, %9, %cst {dimension_numbers = #tpu.dot_dimension_numbers<[1], [0], [0], [1], [0, 0, 1, 1], [], []>} : vector<512x128xbf16>, vector<128x128xbf16>, vector<512x128xf32> -> vector<512x128xf32>
    %11 = arith.addf %7, %10 : vector<512x128xf32>
    %cst_9 = arith.constant 0.000000e+00 : f32
    %12 = vector.broadcast %cst_9 : f32 to vector<512x128xf32>
    %13 = arith.maximumf %11, %12 : vector<512x128xf32>
    %c0_10 = arith.constant 0 : index
    %c0_11 = arith.constant 0 : index
    %14 = vector.load %arg6[%c0_10, %c0_11] : memref<512x128xf32, #tpu.memory_space<vmem>>, vector<512x128xf32>
    tpu.vector_store %arg6[%c0_10, %c0_11], %13 {strides = array<i32>} : memref<512x128xf32, #tpu.memory_space<vmem>>, vector<512x128xf32>,
    return
  }
  func.func @transform_0(%arg0: i32) -> (i32, i32) {
    %c0_i32 = arith.constant 0 : i32
    %c0_i32_0 = arith.constant 0 : i32
    return %arg0, %c0_i32 : i32, i32
  }
  func.func @transform_1(%arg0: i32) -> (i32, i32) {
    %c0_i32 = arith.constant 0 : i32
    %c0_i32_0 = arith.constant 0 : i32
    %c0_i32_1 = arith.constant 0 : i32
    return %c0_i32, %c0_i32_0 : i32, i32
  }
  func.func @transform_2(%arg0: i32) -> (i32, i32) {
    %c0_i32 = arith.constant 0 : i32
    %c0_i32_0 = arith.constant 0 : i32
    %c0_i32_1 = arith.constant 0 : i32
    return %c0_i32, %c0_i32_0 : i32, i32
  }
  func.func @transform_3(%arg0: i32) -> (i32, i32) {
    %c0_i32 = arith.constant 0 : i32
    %c0_i32_0 = arith.constant 0 : i32
    return %arg0, %c0_i32 : i32, i32
  }
  func.func @transform_4(%arg0: i32) -> (i32, i32) {
    %c0_i32 = arith.constant 0 : i32
    %c0_i32_0 = arith.constant 0 : i32
    %c0_i32_1 = arith.constant 0 : i32
    return %c0_i32, %c0_i32_0 : i32, i32
  }
  func.func @transform_5(%arg0: i32) -> (i32, i32) {
    %c0_i32 = arith.constant 0 : i32
    %c0_i32_0 = arith.constant 0 : i32
    return %arg0, %c0_i32 : i32, i32
  }
}

</mosaic_0001>

<bundles_post_ra>
// kernel: bottleneck_forward.4
= control target key start
LH: loop header
LB: loop body
LE: loop exit
PB: predicated region body
PF: predicated region fallthrough
CT: control target
= control target key end

     0   :  { %s2134_s1 = inlined_call_operand.vmem [shape: bf16[128,128], index: 1, kind: input, shape index: {}]   ;;  %s2135_s0 = inlined_call_operand.vmem [shape: bf16[512,128], index: 0, kind: input, shape index: {}]   ;;  %s2136_s2 = inlined_call_operand.vmem [shape: bf16[512,128], index: 2, kind: output, shape index: {0}]   ;;  %s2137_s3 = inlined_call_operand.vmem [shape: f32[1,1,128], index: 3, kind: output, shape index: {1}]   ;;  %s2138_s4 = inlined_call_operand.vmem [shape: f32[1,1,128], index: 4, kind: output, shape index: {2}]  }
   0x1   :  { %v1655_v0 = vld [vmem:[%s2134_s1] sm:$0xff]   ;;  %v1656_v1 = vld [vmem:[%s2134_s1 + $0x8] sm:$0xff]   ;;  %v1657_v2 = vld [vmem:[%s2134_s1 + $0x10] sm:$0xff]  }
   0x2   :  { %1559 = vmatprep.subr.bf16.mxu0 %v1655_v0  ;;  %1639 = vmatprep.subr.bf16.mxu1 %v1655_v0  ;;  %v1658_v3 = vld [vmem:[%s2134_s1 + $0x18] sm:$0xff]   ;;  %v1663_v4 = vld [vmem:[%s2135_s0] sm:$0xff]   ;;  %v1660_v6 = vld [vmem:[%s2134_s1 + $0x28] sm:$0xff]  }
   0x3   :  { %1560 = vmatpush3.bf16.msra.mxu0 %v1655_v0  ;;  %1647 = vmatpush3.bf16.msra.mxu1 %v1655_v0  ;;  %v1659_v5 = vld [vmem:[%s2134_s1 + $0x20] sm:$0xff]   ;;  %v1661_v7 = vld [vmem:[%s2134_s1 + $0x30] sm:$0xff]   ;;  %v1662_v8 = vld [vmem:[%s2134_s1 + $0x38] sm:$0xff]  }
   0x4   :  { %1561 = vmatprep.subr.bf16.mxu0 %v1656_v1  ;;  %1640 = vmatprep.subr.bf16.mxu1 %v1656_v1  ;;  %v1679_v9 = vld [vmem:[%s2135_s0 + $0x80] sm:$0xff]   ;;  %v1664_v10 = vld [vmem:[%s2135_s0 + $0x8] sm:$0xff]   ;;  %v1665_v11 = vld [vmem:[%s2135_s0 + $0x10] sm:$0xff]  }
   0x5   :  { %1575 = vmatprep.mubr.bf16.mxu0 %v1663_v4  ;;  %1607 = vmatprep.mubr.bf16.mxu1 %v1679_v9  ;;  %v1680_v12 = vld [vmem:[%s2135_s0 + $0x88] sm:$0xff]   ;;  %v1681_v13 = vld [vmem:[%s2135_s0 + $0x90] sm:$0xff]   ;;  %v1666_v14 = vld [vmem:[%s2135_s0 + $0x18] sm:$0xff]  }
   0x6   :  { %v1667_v15 = vld [vmem:[%s2135_s0 + $0x20] sm:$0xff]   ;;  %v1682_v16 = vld [vmem:[%s2135_s0 + $0x98] sm:$0xff]   ;;  %v1668_v18 = vld [vmem:[%s2135_s0 + $0x28] sm:$0xff]  }
   0x7   :  { %1562 = vmatpush3.bf16.msra.mxu0 %v1656_v1  ;;  %1648 = vmatpush3.bf16.msra.mxu1 %v1656_v1  ;;  %v1683_v17 = vld [vmem:[%s2135_s0 + $0xa0] sm:$0xff]   ;;  %v1684_v19 = vld [vmem:[%s2135_s0 + $0xa8] sm:$0xff]   ;;  %v1669_v20 = vld [vmem:[%s2135_s0 + $0x30] sm:$0xff]  }
   0x8   :  { %1563 = vmatprep.subr.bf16.mxu0 %v1657_v2  ;;  %1641 = vmatprep.subr.bf16.mxu1 %v1657_v2  ;;  %v1685_v21 = vld [vmem:[%s2135_s0 + $0xb0] sm:$0xff]   ;;  %v1670_v22 = vld [vmem:[%s2135_s0 + $0x38] sm:$0xff]   ;;  %v1671_v24 = vld [vmem:[%s2135_s0 + $0x40] sm:$0xff]  }
   0x9   :  { %v1686_v23 = vld [vmem:[%s2135_s0 + $0xb8] sm:$0xff]   ;;  %v1687_v25 = vld [vmem:[%s2135_s0 + $0xc0] sm:$0xff]   ;;  %v1672_v26 = vld [vmem:[%s2135_s0 + $0x48] sm:$0xff]  }
   0xa   :  { %v1688_v27 = vld [vmem:[%s2135_s0 + $0xc8] sm:$0xff]   ;;  %v1673_v28 = vld [vmem:[%s2135_s0 + $0x50] sm:$0xff]   ;;  %v1674_v30 = vld [vmem:[%s2135_s0 + $0x58] sm:$0xff]  }
   0xb   :  { %1564 = vmatpush3.bf16.msra.mxu0 %v1657_v2  ;;  %1649 = vmatpush3.bf16.msra.mxu1 %v1657_v2  ;;  %v1689_v29 = vld [vmem:[%s2135_s0 + $0xd0] sm:$0xff]   ;;  %v1690_v31 = vld [vmem:[%s2135_s0 + $0xd8] sm:$0xff]   ;;  %v1675_v32 = vld [vmem:[%s2135_s0 + $0x60] sm:$0xff]  }
   0xc   :  { %1565 = vmatprep.subr.bf16.mxu0 %v1658_v3  ;;  %1642 = vmatprep.subr.bf16.mxu1 %v1658_v3  ;;  %v1691_v33 = vld [vmem:[%s2135_s0 + $0xe0] sm:$0xff]   ;;  %v1676_v34 = vld [vmem:[%s2135_s0 + $0x68] sm:$0xff]   ;;  %v1677_v36 = vld [vmem:[%s2135_s0 + $0x70] sm:$0xff]  }
   0xd   :  { %v1692_v35 = vld [vmem:[%s2135_s0 + $0xe8] sm:$0xff]   ;;  %v1693_v37 = vld [vmem:[%s2135_s0 + $0xf0] sm:$0xff]   ;;  %v1678_v38 = vld [vmem:[%s2135_s0 + $0x78] sm:$0xff]  }
   0xe   :  { %v1694_v39 = vld [vmem:[%s2135_s0 + $0xf8] sm:$0xff]  }
   0xf   :  { %1566 = vmatpush3.bf16.msra.mxu0 %v1658_v3  ;;  %1650 = vmatpush3.bf16.msra.mxu1 %v1658_v3 }
  0x10   :  { %1567 = vmatprep.subr.bf16.mxu0 %v1659_v5  ;;  %1643 = vmatprep.subr.bf16.mxu1 %v1659_v5 }
  0x13   :  { %1568 = vmatpush3.bf16.msra.mxu0 %v1659_v5  ;;  %1651 = vmatpush3.bf16.msra.mxu1 %v1659_v5 }
  0x14   :  { %1569 = vmatprep.subr.bf16.mxu0 %v1660_v6  ;;  %1644 = vmatprep.subr.bf16.mxu1 %v1660_v6 }
  0x17   :  { %1570 = vmatpush3.bf16.msra.mxu0 %v1660_v6  ;;  %1652 = vmatpush3.bf16.msra.mxu1 %v1660_v6 }
  0x18   :  { %1571 = vmatprep.subr.bf16.mxu0 %v1661_v7  ;;  %1645 = vmatprep.subr.bf16.mxu1 %v1661_v7 }
  0x1b   :  { %1572 = vmatpush3.bf16.msra.mxu0 %v1661_v7  ;;  %1653 = vmatpush3.bf16.msra.mxu1 %v1661_v7 }
  0x1c   :  { %1573 = vmatprep.subr.bf16.mxu0 %v1662_v8  ;;  %1646 = vmatprep.subr.bf16.mxu1 %v1662_v8 }
  0x1f   :  { %1574 = vmatpush3.bf16.msra.mxu0 %v1662_v8  ;;  %1654 = vmatpush3.bf16.msra.mxu1 %v1662_v8 }
  0x22   :  { %1576 = vmatmul.mubr.bf16.vlgmr.msra.gmra.mrb[0].mxu0 %v1664_v10  ;;  %1608 = vmatmul.mubr.bf16.vlgmr.msra.gmra.mrb[0].mxu1 %v1680_v12 }
  0x23   :  { %1579 = vmatprep.mubr.bf16.mxu0 %v1665_v11  ;;  %1611 = vmatprep.mubr.bf16.mxu1 %v1681_v13 }
  0x2a   :  { %1580 = vmatmul.mubr.bf16.gmra.mrb[4].mxu0 %v1666_v14  ;;  %1612 = vmatmul.mubr.bf16.gmra.mrb[4].mxu1 %v1682_v16 }
  0x2b   :  { %1583 = vmatprep.mubr.bf16.mxu0 %v1667_v15  ;;  %1615 = vmatprep.mubr.bf16.mxu1 %v1683_v17 }
  0x32   :  { %1584 = vmatmul.mubr.bf16.gmra.mrb[8].mxu0 %v1668_v18  ;;  %1616 = vmatmul.mubr.bf16.gmra.mrb[8].mxu1 %v1684_v19 }
  0x33   :  { %1587 = vmatprep.mubr.bf16.mxu0 %v1669_v20  ;;  %1619 = vmatprep.mubr.bf16.mxu1 %v1685_v21 }
  0x3a   :  { %1588 = vmatmul.mubr.bf16.gmra.mrb[12].mxu0 %v1670_v22  ;;  %1620 = vmatmul.mubr.bf16.gmra.mrb[12].mxu1 %v1686_v23 }
  0x3b   :  { %1591 = vmatprep.mubr.bf16.mxu0 %v1671_v24  ;;  %1623 = vmatprep.mubr.bf16.mxu1 %v1687_v25 }
  0x42   :  { %1592 = vmatmul.mubr.bf16.gmra.mrb[16].mxu0 %v1672_v26  ;;  %1624 = vmatmul.mubr.bf16.gmra.mrb[16].mxu1 %v1688_v27 }
  0x43   :  { %1595 = vmatprep.mubr.bf16.mxu0 %v1673_v28  ;;  %1627 = vmatprep.mubr.bf16.mxu1 %v1689_v29 }
  0x4a   :  { %1596 = vmatmul.mubr.bf16.gmra.mrb[20].mxu0 %v1674_v30  ;;  %1628 = vmatmul.mubr.bf16.gmra.mrb[20].mxu1 %v1690_v31 }
  0x4b   :  { %1599 = vmatprep.mubr.bf16.mxu0 %v1675_v32  ;;  %1631 = vmatprep.mubr.bf16.mxu1 %v1691_v33 }
  0x52   :  { %1600 = vmatmul.mubr.bf16.gmra.mrb[24].mxu0 %v1676_v34  ;;  %1632 = vmatmul.mubr.bf16.gmra.mrb[24].mxu1 %v1692_v35 }
  0x53   :  { %1603 = vmatprep.mubr.bf16.mxu0 %v1677_v36  ;;  %1635 = vmatprep.mubr.bf16.mxu1 %v1693_v37 }
  0x5a   :  { %1604 = vmatmul.mubr.bf16.gmra.mrb[28].mxu0 %v1678_v38  ;;  %1636 = vmatmul.mubr.bf16.gmra.mrb[28].mxu1 %v1694_v39 }
  0xf5   :  { %v1577_v40 = vpop.f32.mrb[0].mxu0  ;;  %v1840_v41 = vpop.f32.mrb[0].mxu1 }
  0xf6   :  { %v369_v42 = vpop.f32.mrb[1].mxu0  ;;  %v1842_v43 = vpop.f32.mrb[1].mxu1  ;;  %v1016_v55 = vmul.f32 %v1577_v40, %v1577_v40 }
  0xf7   :  { %v1578_v44 = vpop.f32.mrb[2].mxu0  ;;  %v1844_v45 = vpop.f32.mrb[2].mxu1  ;;  %v1014_v46 = vmul.f32 %v369_v42, %v369_v42 }
  0xf8   :  { %v1336_v47 = vpack.c.bf16 %v1578_v44, %v1577_v40  ;;  %v372_v48 = vpop.f32.mrb[3].mxu0  ;;  %v1416_v49 = vpack.c.bf16 %v1844_v45, %v1840_v41  ;;  %v1848_v50 = vpop.f32.mrb[3].mxu1  ;;  %v1017_v58 = vmul.f32 %v1578_v44, %v1578_v44 }
  0xf9   :  { %v1331_v51 = vpack.c.bf16 %v372_v48, %v369_v42  ;;  %v944_v52 = vadd.f32 %v372_v48, %v369_v42  ;;  %v1015_v53 = vmul.f32 %v372_v48, %v372_v48  ;;  %v1411_v54 = vpack.c.bf16 %v1848_v50, %v1842_v43 }
  0xfa   :  { %1488 = vst [vmem:[%s2136_s2 + $0x8] sm:$0xff] %v1336_v47   ;;  %1504 = vst [vmem:[%s2136_s2 + $0x88] sm:$0xff] %v1416_v49  }
  0xfb   :  { %1332 = vst [vmem:[%s2136_s2] sm:$0xff] %v1331_v51   ;;  %v945_v56 = vadd.f32 %v1577_v40, %v944_v52  ;;  %v1078_v57 = vadd.f32 %v1015_v53, %v1014_v46  ;;  %1503 = vst [vmem:[%s2136_s2 + $0x80] sm:$0xff] %v1411_v54  }
  0xfd   :  { %v1079_v59 = vadd.f32 %v1078_v57, %v1016_v55  ;;  %v1581_v60 = vpop.f32.mrb[4].mxu0  ;;  %v946_v61 = vadd.f32 %v1578_v44, %v945_v56  ;;  %v1864_v62 = vpop.f32.mrb[4].mxu1 }
  0xfe   :  { %v385_v63 = vpop.f32.mrb[5].mxu0  ;;  %v1866_v0 = vpop.f32.mrb[5].mxu1  ;;  %v1020_v15 = vmul.f32 %v1581_v60, %v1581_v60 }
  0xff   :  { %v947_v1 = vadd.f32 %v946_v61, %v385_v63  ;;  %v1018_v2 = vmul.f32 %v385_v63, %v385_v63  ;;  %v1080_v3 = vadd.f32 %v1079_v59, %v1017_v58  ;;  %v1582_v4 = vpop.f32.mrb[6].mxu0  ;;  %v1868_v5 = vpop.f32.mrb[6].mxu1 }
 0x100   :  { %v1346_v6 = vpack.c.bf16 %v1582_v4, %v1581_v60  ;;  %v388_v7 = vpop.f32.mrb[7].mxu0  ;;  %v1426_v8 = vpack.c.bf16 %v1868_v5, %v1864_v62  ;;  %v1872_v9 = vpop.f32.mrb[7].mxu1  ;;  %v1021_v18 = vmul.f32 %v1582_v4, %v1582_v4 }
 0x101   :  { %v1081_v10 = vadd.f32 %v1080_v3, %v1018_v2  ;;  %v1341_v11 = vpack.c.bf16 %v388_v7, %v385_v63  ;;  %v948_v12 = vadd.f32 %v947_v1, %v388_v7  ;;  %v1019_v13 = vmul.f32 %v388_v7, %v388_v7 }
 0x102   :  { %1490 = vst [vmem:[%s2136_s2 + $0x18] sm:$0xff] %v1346_v6   ;;  %1506 = vst [vmem:[%s2136_s2 + $0x98] sm:$0xff] %v1426_v8   ;;  %v1421_v14 = vpack.c.bf16 %v1872_v9, %v1866_v0 }
 0x103   :  { %1489 = vst [vmem:[%s2136_s2 + $0x10] sm:$0xff] %v1341_v11   ;;  %v949_v16 = vadd.f32 %v1581_v60, %v948_v12  ;;  %v1082_v17 = vadd.f32 %v1081_v10, %v1019_v13 }
 0x104   :  { %1505 = vst [vmem:[%s2136_s2 + $0x90] sm:$0xff] %v1421_v14  }
 0x105   :  { %v1083_v19 = vadd.f32 %v1082_v17, %v1020_v15  ;;  %v1585_v20 = vpop.f32.mrb[8].mxu0  ;;  %v950_v21 = vadd.f32 %v1582_v4, %v949_v16  ;;  %v1888_v22 = vpop.f32.mrb[8].mxu1 }
 0x106   :  { %v401_v23 = vpop.f32.mrb[9].mxu0  ;;  %v1890_v24 = vpop.f32.mrb[9].mxu1  ;;  %v1024_v39 = vmul.f32 %v1585_v20, %v1585_v20 }
 0x107   :  { %v951_v25 = vadd.f32 %v950_v21, %v401_v23  ;;  %v1022_v26 = vmul.f32 %v401_v23, %v401_v23  ;;  %v1084_v27 = vadd.f32 %v1083_v19, %v1021_v18  ;;  %v1586_v28 = vpop.f32.mrb[10].mxu0  ;;  %v1892_v29 = vpop.f32.mrb[10].mxu1 }
 0x108   :  { %v1356_v30 = vpack.c.bf16 %v1586_v28, %v1585_v20  ;;  %v404_v31 = vpop.f32.mrb[11].mxu0  ;;  %v1436_v32 = vpack.c.bf16 %v1892_v29, %v1888_v22  ;;  %v1896_v33 = vpop.f32.mrb[11].mxu1  ;;  %v1025_v44 = vmul.f32 %v1586_v28, %v1586_v28 }
 0x109   :  { %v1085_v34 = vadd.f32 %v1084_v27, %v1022_v26  ;;  %v1351_v35 = vpack.c.bf16 %v404_v31, %v401_v23  ;;  %v952_v36 = vadd.f32 %v951_v25, %v404_v31  ;;  %v1023_v37 = vmul.f32 %v404_v31, %v404_v31 }
 0x10a   :  { %1492 = vst [vmem:[%s2136_s2 + $0x28] sm:$0xff] %v1356_v30   ;;  %1508 = vst [vmem:[%s2136_s2 + $0xa8] sm:$0xff] %v1436_v32   ;;  %v1431_v38 = vpack.c.bf16 %v1896_v33, %v1890_v24 }
 0x10b   :  { %1491 = vst [vmem:[%s2136_s2 + $0x20] sm:$0xff] %v1351_v35   ;;  %v953_v40 = vadd.f32 %v1585_v20, %v952_v36  ;;  %v1086_v42 = vadd.f32 %v1085_v34, %v1023_v37 }
 0x10c   :  { %1507 = vst [vmem:[%s2136_s2 + $0xa0] sm:$0xff] %v1431_v38  }
 0x10d   :  { %v1087_v46 = vadd.f32 %v1086_v42, %v1024_v39  ;;  %v1589_v47 = vpop.f32.mrb[12].mxu0  ;;  %v954_v48 = vadd.f32 %v1586_v28, %v953_v40  ;;  %v1912_v49 = vpop.f32.mrb[12].mxu1 }
 0x10e   :  { %v417_v51 = vpop.f32.mrb[13].mxu0  ;;  %v1914_v52 = vpop.f32.mrb[13].mxu1  ;;  %v1028_v6 = vmul.f32 %v1589_v47, %v1589_v47 }
 0x10f   :  { %v955_v53 = vadd.f32 %v954_v48, %v417_v51  ;;  %v1026_v54 = vmul.f32 %v417_v51, %v417_v51  ;;  %v1088_v55 = vadd.f32 %v1087_v46, %v1025_v44  ;;  %v1590_v56 = vpop.f32.mrb[14].mxu0  ;;  %v1916_v57 = vpop.f32.mrb[14].mxu1 }
 0x110   :  { %v1366_v58 = vpack.c.bf16 %v1590_v56, %v1589_v47  ;;  %v420_v59 = vpop.f32.mrb[15].mxu0  ;;  %v1446_v60 = vpack.c.bf16 %v1916_v57, %v1912_v49  ;;  %v1920_v61 = vpop.f32.mrb[15].mxu1  ;;  %v1029_v10 = vmul.f32 %v1590_v56, %v1590_v56 }
 0x111   :  { %v1089_v63 = vadd.f32 %v1088_v55, %v1026_v54  ;;  %v1361_v1 = vpack.c.bf16 %v420_v59, %v417_v51  ;;  %v956_v2 = vadd.f32 %v955_v53, %v420_v59  ;;  %v1027_v3 = vmul.f32 %v420_v59, %v420_v59 }
 0x112   :  { %1494 = vst [vmem:[%s2136_s2 + $0x38] sm:$0xff] %v1366_v58   ;;  %1510 = vst [vmem:[%s2136_s2 + $0xb8] sm:$0xff] %v1446_v60   ;;  %v1441_v4 = vpack.c.bf16 %v1920_v61, %v1914_v52 }
 0x113   :  { %1493 = vst [vmem:[%s2136_s2 + $0x30] sm:$0xff] %v1361_v1   ;;  %v957_v7 = vadd.f32 %v1589_v47, %v956_v2  ;;  %v1090_v8 = vadd.f32 %v1089_v63, %v1027_v3 }
 0x114   :  { %1509 = vst [vmem:[%s2136_s2 + $0xb0] sm:$0xff] %v1441_v4  }
 0x115   :  { %v1091_v11 = vadd.f32 %v1090_v8, %v1028_v6  ;;  %v1593_v12 = vpop.f32.mrb[16].mxu0  ;;  %v958_v13 = vadd.f32 %v1590_v56, %v957_v7  ;;  %v1936_v14 = vpop.f32.mrb[16].mxu1 }
 0x116   :  { %v433_v15 = vpop.f32.mrb[17].mxu0  ;;  %v1938_v16 = vpop.f32.mrb[17].mxu1  ;;  %v1032_v35 = vmul.f32 %v1593_v12, %v1593_v12 }
 0x117   :  { %v959_v17 = vadd.f32 %v958_v13, %v433_v15  ;;  %v1030_v18 = vmul.f32 %v433_v15, %v433_v15  ;;  %v1092_v19 = vadd.f32 %v1091_v11, %v1029_v10  ;;  %v1594_v20 = vpop.f32.mrb[18].mxu0  ;;  %v1940_v21 = vpop.f32.mrb[18].mxu1 }
 0x118   :  { %v1376_v23 = vpack.c.bf16 %v1594_v20, %v1593_v12  ;;  %v436_v25 = vpop.f32.mrb[19].mxu0  ;;  %v1456_v26 = vpack.c.bf16 %v1940_v21, %v1936_v14  ;;  %v1944_v27 = vpop.f32.mrb[19].mxu1  ;;  %v1033_v38 = vmul.f32 %v1594_v20, %v1594_v20 }
 0x119   :  { %v1093_v28 = vadd.f32 %v1092_v19, %v1030_v18  ;;  %v1371_v30 = vpack.c.bf16 %v436_v25, %v433_v15  ;;  %v960_v31 = vadd.f32 %v959_v17, %v436_v25  ;;  %v1031_v32 = vmul.f32 %v436_v25, %v436_v25 }
 0x11a   :  { %1496 = vst [vmem:[%s2136_s2 + $0x48] sm:$0xff] %v1376_v23   ;;  %1512 = vst [vmem:[%s2136_s2 + $0xc8] sm:$0xff] %v1456_v26   ;;  %v1451_v34 = vpack.c.bf16 %v1944_v27, %v1938_v16 }
 0x11b   :  { %1495 = vst [vmem:[%s2136_s2 + $0x40] sm:$0xff] %v1371_v30   ;;  %v961_v36 = vadd.f32 %v1593_v12, %v960_v31  ;;  %v1094_v37 = vadd.f32 %v1093_v28, %v1031_v32 }
 0x11c   :  { %1511 = vst [vmem:[%s2136_s2 + $0xc0] sm:$0xff] %v1451_v34  }
 0x11d   :  { %v1095_v39 = vadd.f32 %v1094_v37, %v1032_v35  ;;  %v1597_v40 = vpop.f32.mrb[20].mxu0  ;;  %v962_v42 = vadd.f32 %v1594_v20, %v961_v36  ;;  %v1960_v44 = vpop.f32.mrb[20].mxu1 }
 0x11e   :  { %v449_v46 = vpop.f32.mrb[21].mxu0  ;;  %v1962_v47 = vpop.f32.mrb[21].mxu1  ;;  %v1036_v6 = vmul.f32 %v1597_v40, %v1597_v40 }
 0x11f   :  { %v963_v48 = vadd.f32 %v962_v42, %v449_v46  ;;  %v1034_v51 = vmul.f32 %v449_v46, %v449_v46  ;;  %v1096_v53 = vadd.f32 %v1095_v39, %v1033_v38  ;;  %v1598_v54 = vpop.f32.mrb[22].mxu0  ;;  %v1964_v55 = vpop.f32.mrb[22].mxu1 }
 0x120   :  { %v1386_v56 = vpack.c.bf16 %v1598_v54, %v1597_v40  ;;  %v452_v58 = vpop.f32.mrb[23].mxu0  ;;  %v1466_v59 = vpack.c.bf16 %v1964_v55, %v1960_v44  ;;  %v1968_v60 = vpop.f32.mrb[23].mxu1  ;;  %v1037_v10 = vmul.f32 %v1598_v54, %v1598_v54 }
 0x121   :  { %v1097_v63 = vadd.f32 %v1096_v53, %v1034_v51  ;;  %v1381_v1 = vpack.c.bf16 %v452_v58, %v449_v46  ;;  %v964_v2 = vadd.f32 %v963_v48, %v452_v58  ;;  %v1035_v3 = vmul.f32 %v452_v58, %v452_v58 }
 0x122   :  { %1498 = vst [vmem:[%s2136_s2 + $0x58] sm:$0xff] %v1386_v56   ;;  %1514 = vst [vmem:[%s2136_s2 + $0xd8] sm:$0xff] %v1466_v59   ;;  %v1461_v4 = vpack.c.bf16 %v1968_v60, %v1962_v47 }
 0x123   :  { %1497 = vst [vmem:[%s2136_s2 + $0x50] sm:$0xff] %v1381_v1   ;;  %v965_v7 = vadd.f32 %v1597_v40, %v964_v2  ;;  %v1098_v8 = vadd.f32 %v1097_v63, %v1035_v3 }
 0x124   :  { %1513 = vst [vmem:[%s2136_s2 + $0xd0] sm:$0xff] %v1461_v4  }
 0x125   :  { %v1099_v11 = vadd.f32 %v1098_v8, %v1036_v6  ;;  %v1601_v12 = vpop.f32.mrb[24].mxu0  ;;  %v966_v13 = vadd.f32 %v1598_v54, %v965_v7  ;;  %v1984_v15 = vpop.f32.mrb[24].mxu1 }
 0x126   :  { %v465_v17 = vpop.f32.mrb[25].mxu0  ;;  %v1986_v18 = vpop.f32.mrb[25].mxu1  ;;  %v1040_v39 = vmul.f32 %v1601_v12, %v1601_v12 }
 0x127   :  { %v967_v19 = vadd.f32 %v966_v13, %v465_v17  ;;  %v1038_v20 = vmul.f32 %v465_v17, %v465_v17  ;;  %v1100_v23 = vadd.f32 %v1099_v11, %v1037_v10  ;;  %v1602_v25 = vpop.f32.mrb[26].mxu0  ;;  %v1988_v26 = vpop.f32.mrb[26].mxu1 }
 0x128   :  { %v1396_v28 = vpack.c.bf16 %v1602_v25, %v1601_v12  ;;  %v468_v30 = vpop.f32.mrb[27].mxu0  ;;  %v1476_v31 = vpack.c.bf16 %v1988_v26, %v1984_v15  ;;  %v1992_v32 = vpop.f32.mrb[27].mxu1  ;;  %v1041_v46 = vmul.f32 %v1602_v25, %v1602_v25 }
 0x129   :  { %v1101_v34 = vadd.f32 %v1100_v23, %v1038_v20  ;;  %v1391_v35 = vpack.c.bf16 %v468_v30, %v465_v17  ;;  %v968_v36 = vadd.f32 %v967_v19, %v468_v30  ;;  %v1039_v37 = vmul.f32 %v468_v30, %v468_v30 }
 0x12a   :  { %1500 = vst [vmem:[%s2136_s2 + $0x68] sm:$0xff] %v1396_v28   ;;  %1516 = vst [vmem:[%s2136_s2 + $0xe8] sm:$0xff] %v1476_v31   ;;  %v1471_v38 = vpack.c.bf16 %v1992_v32, %v1986_v18  ;;  %v1046_v31 = vmul.f32 %v1842_v43, %v1842_v43 }
 0x12b   :  { %1499 = vst [vmem:[%s2136_s2 + $0x60] sm:$0xff] %v1391_v35   ;;  %v969_v40 = vadd.f32 %v1601_v12, %v968_v36  ;;  %v1102_v42 = vadd.f32 %v1101_v34, %v1039_v37 }
 0x12c   :  { %1515 = vst [vmem:[%s2136_s2 + $0xe0] sm:$0xff] %v1471_v38   ;;  %v1047_v38 = vmul.f32 %v1848_v50, %v1848_v50 }
 0x12d   :  { %v1103_v48 = vadd.f32 %v1102_v42, %v1040_v39  ;;  %v1605_v51 = vpop.f32.mrb[28].mxu0  ;;  %v970_v53 = vadd.f32 %v1602_v25, %v969_v40  ;;  %v2008_v54 = vpop.f32.mrb[28].mxu1  ;;  %v1048_v39 = vmul.f32 %v1840_v41, %v1840_v41 }
 0x12e   :  { %v481_v56 = vpop.f32.mrb[29].mxu0  ;;  %v2010_v58 = vpop.f32.mrb[29].mxu1  ;;  %v1044_v19 = vmul.f32 %v1605_v51, %v1605_v51 }
 0x12f   :  { %v971_v59 = vadd.f32 %v970_v53, %v481_v56  ;;  %v1042_v63 = vmul.f32 %v481_v56, %v481_v56  ;;  %v1104_v1 = vadd.f32 %v1103_v48, %v1041_v46  ;;  %v1606_v2 = vpop.f32.mrb[30].mxu0  ;;  %v2012_v3 = vpop.f32.mrb[30].mxu1  ;;  %v1049_v46 = vmul.f32 %v1844_v45, %v1844_v45 }
 0x130   :  { %v1406_v4 = vpack.c.bf16 %v1606_v2, %v1605_v51  ;;  %v484_v6 = vpop.f32.mrb[31].mxu0  ;;  %v1486_v7 = vpack.c.bf16 %v2012_v3, %v2008_v54  ;;  %v2016_v8 = vpop.f32.mrb[31].mxu1  ;;  %v1045_v25 = vmul.f32 %v1606_v2, %v1606_v2 }
 0x131   :  { %v1105_v10 = vadd.f32 %v1104_v1, %v1042_v63  ;;  %v1401_v11 = vpack.c.bf16 %v484_v6, %v481_v56  ;;  %v972_v12 = vadd.f32 %v971_v59, %v484_v6  ;;  %v1043_v13 = vmul.f32 %v484_v6, %v484_v6 }
 0x132   :  { %1502 = vst [vmem:[%s2136_s2 + $0x78] sm:$0xff] %v1406_v4   ;;  %1518 = vst [vmem:[%s2136_s2 + $0xf8] sm:$0xff] %v1486_v7   ;;  %v1481_v17 = vpack.c.bf16 %v2016_v8, %v2010_v58  ;;  %v1051_v63 = vmul.f32 %v1872_v9, %v1872_v9 }
 0x133   :  { %1501 = vst [vmem:[%s2136_s2 + $0x70] sm:$0xff] %v1401_v11   ;;  %v973_v20 = vadd.f32 %v1605_v51, %v972_v12  ;;  %v1106_v23 = vadd.f32 %v1105_v10, %v1043_v13  ;;  %v1055_v12 = vmul.f32 %v1896_v33, %v1896_v33 }
 0x134   :  { %1517 = vst [vmem:[%s2136_s2 + $0xf0] sm:$0xff] %v1481_v17  }
 0x135   :  { %v1107_v28 = vadd.f32 %v1106_v23, %v1044_v19  ;;  %v974_v30 = vadd.f32 %v1606_v2, %v973_v20 }
 0x137   :  { %v975_v34 = vadd.f32 %v974_v30, %v1842_v43  ;;  %v1108_v35 = vadd.f32 %v1107_v28, %v1045_v25  ;;  %v1050_v43 = vmul.f32 %v1866_v0, %v1866_v0  ;;  %v1059_v30 = vmul.f32 %v1920_v61, %v1920_v61 }
 0x139   :  { %v1109_v36 = vadd.f32 %v1108_v35, %v1046_v31  ;;  %v976_v37 = vadd.f32 %v975_v34, %v1848_v50 }
 0x13b   :  { %v977_v40 = vadd.f32 %v1840_v41, %v976_v37  ;;  %v1110_v42 = vadd.f32 %v1109_v36, %v1047_v38  ;;  %v1052_v41 = vmul.f32 %v1864_v62, %v1864_v62 }
 0x13d   :  { %v1111_v48 = vadd.f32 %v1110_v42, %v1048_v39  ;;  %v978_v51 = vadd.f32 %v1844_v45, %v977_v40  ;;  %v1053_v45 = vmul.f32 %v1868_v5, %v1868_v5  ;;  %v1063_v40 = vmul.f32 %v1944_v27, %v1944_v27 }
 0x13f   :  { %v979_v53 = vadd.f32 %v978_v51, %v1866_v0  ;;  %v1112_v56 = vadd.f32 %v1111_v48, %v1049_v46  ;;  %v1054_v0 = vmul.f32 %v1890_v24, %v1890_v24 }
 0x141   :  { %v1113_v59 = vadd.f32 %v1112_v56, %v1050_v43  ;;  %v980_v50 = vadd.f32 %v979_v53, %v1872_v9 }
 0x143   :  { %v981_v1 = vadd.f32 %v1864_v62, %v980_v50  ;;  %v1114_v2 = vadd.f32 %v1113_v59, %v1051_v63  ;;  %v1056_v62 = vmul.f32 %v1888_v22, %v1888_v22  ;;  %v1067_v59 = vmul.f32 %v1968_v60, %v1968_v60 }
 0x145   :  { %v1115_v4 = vadd.f32 %v1114_v2, %v1052_v41  ;;  %v982_v6 = vadd.f32 %v1868_v5, %v981_v1  ;;  %v1057_v5 = vmul.f32 %v1892_v29, %v1892_v29 }
 0x147   :  { %v983_v7 = vadd.f32 %v982_v6, %v1890_v24  ;;  %v1116_v10 = vadd.f32 %v1115_v4, %v1053_v45  ;;  %v1058_v24 = vmul.f32 %v1914_v52, %v1914_v52  ;;  %v1071_v6 = vmul.f32 %v1992_v32, %v1992_v32 }
 0x149   :  { %v1117_v11 = vadd.f32 %v1116_v10, %v1054_v0  ;;  %v984_v9 = vadd.f32 %v983_v7, %v1896_v33 }
 0x14b   :  { %v985_v13 = vadd.f32 %v1888_v22, %v984_v9  ;;  %v1118_v17 = vadd.f32 %v1117_v11, %v1055_v12  ;;  %v1060_v22 = vmul.f32 %v1912_v49, %v1912_v49 }
 0x14d   :  { %v1119_v19 = vadd.f32 %v1118_v17, %v1056_v62  ;;  %v986_v20 = vadd.f32 %v1892_v29, %v985_v13  ;;  %v1061_v29 = vmul.f32 %v1916_v57, %v1916_v57  ;;  %v1075_v13 = vmul.f32 %v2016_v8, %v2016_v8 }
 0x14f   :  { %v987_v23 = vadd.f32 %v986_v20, %v1914_v52  ;;  %v1120_v25 = vadd.f32 %v1119_v19, %v1057_v5  ;;  %v1062_v52 = vmul.f32 %v1938_v16, %v1938_v16 }
 0x151   :  { %v1121_v28 = vadd.f32 %v1120_v25, %v1058_v24  ;;  %v988_v33 = vadd.f32 %v987_v23, %v1920_v61 }
 0x153   :  { %v989_v31 = vadd.f32 %v1912_v49, %v988_v33  ;;  %v1122_v34 = vadd.f32 %v1121_v28, %v1059_v30  ;;  %v1064_v49 = vmul.f32 %v1936_v14, %v1936_v14 }
 0x155   :  { %v1123_v35 = vadd.f32 %v1122_v34, %v1060_v22  ;;  %v990_v36 = vadd.f32 %v1916_v57, %v989_v31  ;;  %v1065_v57 = vmul.f32 %v1940_v21, %v1940_v21 }
 0x157   :  { %v991_v37 = vadd.f32 %v990_v36, %v1938_v16  ;;  %v1124_v38 = vadd.f32 %v1123_v35, %v1061_v29  ;;  %v1066_v16 = vmul.f32 %v1962_v47, %v1962_v47 }
 0x159   :  { %v1125_v39 = vadd.f32 %v1124_v38, %v1062_v52  ;;  %v992_v61 = vadd.f32 %v991_v37, %v1944_v27 }
 0x15b   :  { %v993_v42 = vadd.f32 %v1936_v14, %v992_v61  ;;  %v1126_v46 = vadd.f32 %v1125_v39, %v1063_v40  ;;  %v1068_v14 = vmul.f32 %v1960_v44, %v1960_v44 }
 0x15d   :  { %v1127_v48 = vadd.f32 %v1126_v46, %v1064_v49  ;;  %v994_v51 = vadd.f32 %v1940_v21, %v993_v42  ;;  %v1069_v21 = vmul.f32 %v1964_v55, %v1964_v55 }
 0x15f   :  { %v995_v43 = vadd.f32 %v994_v51, %v1962_v47  ;;  %v1128_v53 = vadd.f32 %v1127_v48, %v1065_v57  ;;  %v1070_v47 = vmul.f32 %v1986_v18, %v1986_v18 }
 0x161   :  { %v1129_v56 = vadd.f32 %v1128_v53, %v1066_v16  ;;  %v996_v27 = vadd.f32 %v995_v43, %v1968_v60 }
 0x163   :  { %v997_v50 = vadd.f32 %v1960_v44, %v996_v27  ;;  %v1130_v63 = vadd.f32 %v1129_v56, %v1067_v59  ;;  %v1072_v44 = vmul.f32 %v1984_v15, %v1984_v15 }
 0x165   :  { %v1131_v41 = vadd.f32 %v1130_v63, %v1068_v14  ;;  %v998_v1 = vadd.f32 %v1964_v55, %v997_v50  ;;  %v1073_v55 = vmul.f32 %v1988_v26, %v1988_v26 }
 0x167   :  { %v999_v2 = vadd.f32 %v998_v1, %v1986_v18  ;;  %v1132_v45 = vadd.f32 %v1131_v41, %v1069_v21  ;;  %v1074_v18 = vmul.f32 %v2010_v58, %v2010_v58 }
 0x169   :  { %v1133_v4 = vadd.f32 %v1132_v45, %v1070_v47  ;;  %v1000_v60 = vadd.f32 %v999_v2, %v1992_v32 }
 0x16b   :  { %v1001_v0 = vadd.f32 %v1984_v15, %v1000_v60  ;;  %v1134_v7 = vadd.f32 %v1133_v4, %v1071_v6  ;;  %v1076_v15 = vmul.f32 %v2008_v54, %v2008_v54 }
 0x16d   :  { %v1135_v10 = vadd.f32 %v1134_v7, %v1072_v44  ;;  %v1002_v11 = vadd.f32 %v1988_v26, %v1001_v0  ;;  %v1077_v26 = vmul.f32 %v2012_v3, %v2012_v3 }
 0x16f   :  { %v1003_v9 = vadd.f32 %v1002_v11, %v2010_v58  ;;  %v1136_v12 = vadd.f32 %v1135_v10, %v1073_v55 }
 0x171   :  { %v1137_v62 = vadd.f32 %v1136_v12, %v1074_v18  ;;  %v1004_v32 = vadd.f32 %v1003_v9, %v2016_v8 }
 0x173   :  { %v1005_v17 = vadd.f32 %v2008_v54, %v1004_v32  ;;  %v1138_v5 = vadd.f32 %v1137_v62, %v1075_v13 }
 0x175   :  { %v1006_v19 = vadd.f32 %v2012_v3, %v1005_v17  ;;  %v1139_v20 = vadd.f32 %v1138_v5, %v1076_v15 }
 0x177   :  { %v1007_v58 = vrot.slane %v1006_v19, 4  ;;  %v1140_v24 = vadd.f32 %v1139_v20, %v1077_v26 }
 0x179   :  { %v1008_v23 = vadd.f32 %v1007_v58, %v1006_v19  ;;  %v1141_v25 = vrot.slane %v1140_v24, 4 }
 0x17b   :  { %v1009_v28 = vrot.slane %v1008_v23, 2  ;;  %v1142_v33 = vadd.f32 %v1141_v25, %v1140_v24 }
 0x17d   :  { %v1010_v30 = vadd.f32 %v1009_v28, %v1008_v23  ;;  %v1143_v8 = vrot.slane %v1142_v33, 2 }
 0x17f   :  { %v1011_v22 = vrot.slane %v1010_v30, 1  ;;  %v1144_v31 = vadd.f32 %v1143_v8, %v1142_v33 }
 0x181   :  { %v1012_v34 = vadd.f32 %v1011_v22, %v1010_v30  ;;  %v1145_v29 = vrot.slane %v1144_v31, 1 }
 0x183   :  { %1013 = vst [vmem:[%s2137_s3] sm:$0x1] %v1012_v34  ;;  %v1146_v54 = vadd.f32 %v1145_v29, %v1144_v31 }
 0x185   :  { %1147 = vst [vmem:[%s2138_s4] sm:$0x1] %v1146_v54 }

// kernel: bottleneck_forward.6
= control target key start
LH: loop header
LB: loop body
LE: loop exit
PB: predicated region body
PF: predicated region fallthrough
CT: control target
= control target key end

     0   :  { %s2529_s3 = inlined_call_operand.vmem [shape: bf16[128,128], index: 3, kind: input, shape index: {}]   ;;  %s2530_s0 = inlined_call_operand.vmem [shape: bf16[512,128], index: 0, kind: input, shape index: {}]   ;;  %s2531_s1 = inlined_call_operand.vmem [shape: f32[1,128], index: 1, kind: input, shape index: {}]   ;;  %s2532_s2 = inlined_call_operand.vmem [shape: f32[1,128], index: 2, kind: input, shape index: {}]   ;;  %s2533_s4 = inlined_call_operand.vmem [shape: bf16[512,128], index: 4, kind: output, shape index: {0}]   ;;  %s2534_s5 = inlined_call_operand.vmem [shape: f32[1,1,128], index: 5, kind: output, shape index: {1}]   ;;  %s2535_s6 = inlined_call_operand.vmem [shape: f32[1,1,128], index: 6, kind: output, shape index: {2}]  }
   0x1   :  { %v1900_v0 = vld [vmem:[%s2529_s3] sm:$0xff]   ;;  %v1901_v1 = vld [vmem:[%s2529_s3 + $0x8] sm:$0xff]   ;;  %v1902_v2 = vld [vmem:[%s2529_s3 + $0x10] sm:$0xff]  }
   0x2   :  { %1804 = vmatprep.subr.bf16.mxu0 %v1900_v0  ;;  %1884 = vmatprep.subr.bf16.mxu1 %v1900_v0  ;;  %v1903_v3 = vld [vmem:[%s2529_s3 + $0x18] sm:$0xff]   ;;  %v1415_v4 = vld [vmem:[%s2530_s0] sm:$0xff]   ;;  %v1702_v8 = vld [vmem:[%s2530_s0 + $0x8] sm:$0xff]  }
   0x3   :  { %1805 = vmatpush3.bf16.msra.mxu0 %v1900_v0  ;;  %1892 = vmatpush3.bf16.msra.mxu1 %v1900_v0  ;;  %v1961_v5 = vld [vmem:[%s2531_s1] ss:$0 sm:$0xff]  ;;  %v1416_v6 = vunpack.c.l.bf16 %v1415_v4  ;;  %v1417_v7 = vunpack.c.h.bf16 %v1415_v4  ;;  %v1703_v9 = vld [vmem:[%s2530_s0 + $0x10] sm:$0xff]   ;;  %v1420_v14 = vunpack.c.l.bf16 %v1702_v8  ;;  %v1421_v15 = vunpack.c.h.bf16 %v1702_v8  ;;  %v1905_v22 = vld [vmem:[%s2529_s3 + $0x28] sm:$0xff]  }
   0x4   :  { %1806 = vmatprep.subr.bf16.mxu0 %v1901_v1  ;;  %1885 = vmatprep.subr.bf16.mxu1 %v1901_v1  ;;  %v1972_v10 = vld [vmem:[%s2532_s2] ss:$0 sm:$0xff]  ;;  %v1424_v16 = vunpack.c.l.bf16 %v1703_v9  ;;  %v1425_v19 = vunpack.c.h.bf16 %v1703_v9  ;;  %v1704_v26 = vld [vmem:[%s2530_s0 + $0x18] sm:$0xff]   ;;  %v1906_v31 = vld [vmem:[%s2529_s3 + $0x30] sm:$0xff]  }
   0x5   :  { %v156_v11 = vmul.f32 %v1416_v6, %v1961_v5  ;;  %v157_v12 = vmul.f32 %v1417_v7, %v1961_v5  ;;  %v1904_v13 = vld [vmem:[%s2529_s3 + $0x20] sm:$0xff]   ;;  %v158_v23 = vmul.f32 %v1420_v14, %v1961_v5  ;;  %v159_v24 = vmul.f32 %v1421_v15, %v1961_v5  ;;  %v1706_v38 = vld [vmem:[%s2530_s0 + $0x28] sm:$0xff]   ;;  %v1707_v41 = vld [vmem:[%s2530_s0 + $0x30] sm:$0xff]  }
   0x6   :  { %v160_v25 = vmul.f32 %v1424_v16, %v1961_v5  ;;  %v161_v28 = vmul.f32 %v1425_v19, %v1961_v5  ;;  %v1705_v29 = vld [vmem:[%s2530_s0 + $0x20] sm:$0xff]   ;;  %v1428_v30 = vunpack.c.l.bf16 %v1704_v26  ;;  %v1429_v35 = vunpack.c.h.bf16 %v1704_v26  ;;  %v1708_v42 = vld [vmem:[%s2530_s0 + $0x38] sm:$0xff]   ;;  %v1710_v63 = vld [vmem:[%s2530_s0 + $0x48] sm:$0xff]  }
   0x7   :  { %1807 = vmatpush3.bf16.msra.mxu0 %v1901_v1  ;;  %1893 = vmatpush3.bf16.msra.mxu1 %v1901_v1  ;;  %v227_v17 = vadd.f32 %v1972_v10, %v156_v11  ;;  %v228_v18 = vadd.f32 %v1972_v10, %v157_v12  ;;  %v229_v32 = vadd.f32 %v1972_v10, %v158_v23  ;;  %v1432_v37 = vunpack.c.l.bf16 %v1705_v29  ;;  %v1907_v43 = vld [vmem:[%s2529_s3 + $0x38] sm:$0xff]   ;;  %v1709_v48 = vld [vmem:[%s2530_s0 + $0x40] sm:$0xff]   ;;  %v1711_v4 = vld [vmem:[%s2530_s0 + $0x50] sm:$0xff]  }
   0x8   :  { %1808 = vmatprep.subr.bf16.mxu0 %v1902_v2  ;;  %1886 = vmatprep.subr.bf16.mxu1 %v1902_v2  ;;  %v230_v33 = vadd.f32 %v1972_v10, %v159_v24  ;;  %v231_v34 = vadd.f32 %v1972_v10, %v160_v25  ;;  %v232_v36 = vadd.f32 %v1972_v10, %v161_v28  ;;  %v1433_v40 = vunpack.c.h.bf16 %v1705_v29  ;;  %v1712_v23 = vld [vmem:[%s2530_s0 + $0x58] sm:$0xff]  }
   0x9   :  { %v291_v20 = vmax.f32 %v227_v17, 0.0  ;;  %v292_v21 = vmax.f32 %v228_v18, 0.0  ;;  %v162_v39 = vmul.f32 %v1428_v30, %v1961_v5  ;;  %v293_v44 = vmax.f32 %v229_v32, 0.0 }
   0xa   :  { %v294_v45 = vmax.f32 %v230_v33, 0.0  ;;  %v295_v46 = vmax.f32 %v231_v34, 0.0  ;;  %v163_v47 = vmul.f32 %v1429_v35, %v1961_v5  ;;  %v296_v49 = vmax.f32 %v232_v36, 0.0 }
   0xb   :  { %1809 = vmatpush3.bf16.msra.mxu0 %v1902_v2  ;;  %1894 = vmatpush3.bf16.msra.mxu1 %v1902_v2  ;;  %v355_v27 = vpack.c.bf16 %v292_v21, %v291_v20  ;;  %v164_v50 = vmul.f32 %v1432_v37, %v1961_v5  ;;  %v1436_v51 = vunpack.c.l.bf16 %v1706_v38  ;;  %v1437_v52 = vunpack.c.h.bf16 %v1706_v38 }
   0xc   :  { %1810 = vmatprep.subr.bf16.mxu0 %v1903_v3  ;;  %1887 = vmatprep.subr.bf16.mxu1 %v1903_v3  ;;  %v1440_v53 = vunpack.c.l.bf16 %v1707_v41  ;;  %v1441_v54 = vunpack.c.h.bf16 %v1707_v41  ;;  %v1444_v55 = vunpack.c.l.bf16 %v1708_v42  ;;  %v1445_v56 = vunpack.c.h.bf16 %v1708_v42 }
   0xd   :  { %1820 = vmatprep.mubr.bf16.mxu0 %v355_v27  ;;  %v165_v57 = vmul.f32 %v1433_v40, %v1961_v5  ;;  %v1448_v58 = vunpack.c.l.bf16 %v1709_v48  ;;  %v1449_v59 = vunpack.c.h.bf16 %v1709_v48  ;;  %v356_v60 = vpack.c.bf16 %v294_v45, %v293_v44  ;;  %v1717_v44 = vld [vmem:[%s2530_s0 + $0x80] sm:$0xff]  }
   0xe   :  { %v233_v61 = vadd.f32 %v1972_v10, %v162_v39  ;;  %v234_v62 = vadd.f32 %v1972_v10, %v163_v47  ;;  %v357_v0 = vpack.c.bf16 %v296_v49, %v295_v46  ;;  %v235_v1 = vadd.f32 %v1972_v10, %v164_v50 }
   0xf   :  { %1811 = vmatpush3.bf16.msra.mxu0 %v1903_v3  ;;  %1895 = vmatpush3.bf16.msra.mxu1 %v1903_v3  ;;  %v166_v2 = vmul.f32 %v1436_v51, %v1961_v5  ;;  %v167_v3 = vmul.f32 %v1437_v52, %v1961_v5  ;;  %v168_v6 = vmul.f32 %v1440_v53, %v1961_v5  ;;  %v1452_v14 = vunpack.c.l.bf16 %v1710_v63  ;;  %v2065_v52 = vld [vmem:[%s2530_s0 + $0x60] sm:$0xff]  }
  0x10   :  { %1812 = vmatprep.subr.bf16.mxu0 %v1904_v13  ;;  %1888 = vmatprep.subr.bf16.mxu1 %v1904_v13  ;;  %v169_v7 = vmul.f32 %v1441_v54, %v1961_v5  ;;  %v170_v8 = vmul.f32 %v1444_v55, %v1961_v5  ;;  %v171_v9 = vmul.f32 %v1445_v56, %v1961_v5  ;;  %v297_v15 = vmax.f32 %v233_v61, 0.0 }
  0x11   :  { %v236_v11 = vadd.f32 %v1972_v10, %v165_v57  ;;  %v172_v12 = vmul.f32 %v1448_v58, %v1961_v5  ;;  %v298_v16 = vmax.f32 %v234_v62, 0.0  ;;  %v1453_v17 = vunpack.c.h.bf16 %v1710_v63 }
  0x12   :  { %v1456_v18 = vunpack.c.l.bf16 %v1711_v4  ;;  %v299_v19 = vmax.f32 %v235_v1, 0.0  ;;  %v237_v20 = vadd.f32 %v1972_v10, %v166_v2  ;;  %v238_v21 = vadd.f32 %v1972_v10, %v167_v3 }
  0x13   :  { %1813 = vmatpush3.bf16.msra.mxu0 %v1904_v13  ;;  %1896 = vmatpush3.bf16.msra.mxu1 %v1904_v13  ;;  %v173_v13 = vmul.f32 %v1449_v59, %v1961_v5  ;;  %v239_v24 = vadd.f32 %v1972_v10, %v168_v6  ;;  %v240_v25 = vadd.f32 %v1972_v10, %v169_v7  ;;  %v300_v28 = vmax.f32 %v236_v11, 0.0  ;;  %v1718_v59 = vld [vmem:[%s2530_s0 + $0x88] sm:$0xff]   ;;  %v1720_v11 = vld [vmem:[%s2530_s0 + $0x98] sm:$0xff]  }
  0x14   :  { %1814 = vmatprep.subr.bf16.mxu0 %v1905_v22  ;;  %1889 = vmatprep.subr.bf16.mxu1 %v1905_v22  ;;  %v241_v26 = vadd.f32 %v1972_v10, %v170_v8  ;;  %v242_v27 = vadd.f32 %v1972_v10, %v171_v9  ;;  %v243_v29 = vadd.f32 %v1972_v10, %v172_v12  ;;  %v1460_v35 = vunpack.c.l.bf16 %v1712_v23 }
  0x15   :  { %v244_v30 = vadd.f32 %v1972_v10, %v173_v13  ;;  %v358_v32 = vpack.c.bf16 %v298_v16, %v297_v15  ;;  %v175_v33 = vmul.f32 %v1453_v17, %v1961_v5  ;;  %v176_v34 = vmul.f32 %v1456_v18, %v1961_v5 }
  0x16   :  { %v301_v36 = vmax.f32 %v237_v20, 0.0  ;;  %v302_v37 = vmax.f32 %v238_v21, 0.0  ;;  %v1461_v39 = vunpack.c.h.bf16 %v1712_v23  ;;  %v303_v40 = vmax.f32 %v239_v24, 0.0  ;;  %v1721_v24 = vld [vmem:[%s2530_s0 + $0xa0] sm:$0xff]  }
  0x17   :  { %1815 = vmatpush3.bf16.msra.mxu0 %v1905_v22  ;;  %1897 = vmatpush3.bf16.msra.mxu1 %v1905_v22  ;;  %v1457_v22 = vunpack.c.h.bf16 %v1711_v4  ;;  %v304_v41 = vmax.f32 %v240_v25, 0.0  ;;  %v305_v42 = vmax.f32 %v241_v26, 0.0  ;;  %v359_v45 = vpack.c.bf16 %v300_v28, %v299_v19 }
  0x18   :  { %1816 = vmatprep.subr.bf16.mxu0 %v1906_v31  ;;  %1890 = vmatprep.subr.bf16.mxu1 %v1906_v31  ;;  %v307_v46 = vmax.f32 %v243_v29, 0.0  ;;  %v308_v47 = vmax.f32 %v244_v30, 0.0  ;;  %v246_v49 = vadd.f32 %v1972_v10, %v175_v33  ;;  %v2059_v50 = vadd.f32 %v1972_v10, %v176_v34  ;;  %v1722_v33 = vld [vmem:[%s2530_s0 + $0xa8] sm:$0xff]  }
  0x19   :  { %v177_v38 = vmul.f32 %v1457_v22, %v1961_v5  ;;  %v178_v51 = vmul.f32 %v1460_v35, %v1961_v5  ;;  %v179_v54 = vmul.f32 %v1461_v39, %v1961_v5  ;;  %v1480_v55 = vunpack.c.l.bf16 %v1717_v44 }
  0x1a   :  { %v360_v56 = vpack.c.bf16 %v302_v37, %v301_v36  ;;  %v361_v57 = vpack.c.bf16 %v304_v41, %v303_v40  ;;  %v1464_v62 = vunpack.c.l.bf16 %v2065_v52  ;;  %v1481_v63 = vunpack.c.h.bf16 %v1717_v44 }
  0x1b   :  { %1817 = vmatpush3.bf16.msra.mxu0 %v1906_v31  ;;  %1898 = vmatpush3.bf16.msra.mxu1 %v1906_v31  ;;  %v174_v31 = vmul.f32 %v1452_v14, %v1961_v5  ;;  %v2068_v53 = vadd.f32 %v1972_v10, %v177_v38  ;;  %v310_v1 = vmax.f32 %v246_v49, 0.0  ;;  %v311_v2 = vmax.f32 %v2059_v50, 0.0 }
  0x1c   :  { %1818 = vmatprep.subr.bf16.mxu0 %v1907_v43  ;;  %1891 = vmatprep.subr.bf16.mxu1 %v1907_v43  ;;  %v2084_v3 = vadd.f32 %v1972_v10, %v178_v51  ;;  %v188_v4 = vmul.f32 %v1480_v55, %v1961_v5  ;;  %v2089_v7 = vadd.f32 %v1972_v10, %v179_v54  ;;  %v1484_v9 = vunpack.c.l.bf16 %v1718_v59 }
  0x1d   :  { %v245_v48 = vadd.f32 %v1972_v10, %v174_v31  ;;  %v312_v6 = vmax.f32 %v2068_v53, 0.0  ;;  %v189_v8 = vmul.f32 %v1481_v63, %v1961_v5  ;;  %v1465_v12 = vunpack.c.h.bf16 %v2065_v52 }
  0x1e   :  { %v259_v13 = vadd.f32 %v1972_v10, %v188_v4  ;;  %v1485_v14 = vunpack.c.h.bf16 %v1718_v59  ;;  %v2098_v16 = vmul.f32 %v1464_v62, %v1961_v5  ;;  %v190_v18 = vmul.f32 %v1484_v9, %v1961_v5 }
  0x1f   :  { %1819 = vmatpush3.bf16.msra.mxu0 %v1907_v43  ;;  %1899 = vmatpush3.bf16.msra.mxu1 %v1907_v43  ;;  %v306_v43 = vmax.f32 %v242_v27, 0.0  ;;  %v309_v61 = vmax.f32 %v245_v48, 0.0  ;;  %v260_v17 = vadd.f32 %v1972_v10, %v189_v8  ;;  %v1492_v23 = vunpack.c.l.bf16 %v1720_v11 }
  0x20   :  { %v323_v20 = vmax.f32 %v259_v13, 0.0  ;;  %v191_v21 = vmul.f32 %v1485_v14, %v1961_v5  ;;  %v261_v27 = vadd.f32 %v1972_v10, %v190_v18  ;;  %v1493_v31 = vunpack.c.h.bf16 %v1720_v11  ;;  %v1725_v18 = vld [vmem:[%s2530_s0 + $0xc0] sm:$0xff]  }
  0x21   :  { %v2071_v58 = vpack.c.bf16 %v306_v43, %v305_v42  ;;  %v2107_v25 = vpack.c.bf16 %v310_v1, %v309_v61  ;;  %v324_v26 = vmax.f32 %v260_v17, 0.0  ;;  %v1496_v37 = vunpack.c.l.bf16 %v1721_v24  ;;  %v1724_v1 = vld [vmem:[%s2530_s0 + $0xb8] sm:$0xff]  }
  0x22   :  { %1821 = vmatmul.mubr.bf16.vlgmr.msra.gmra.mrb[0].mxu0 %v356_v60  ;;  %v2076_v60 = vpack.c.bf16 %v308_v47, %v307_v46  ;;  %v262_v29 = vadd.f32 %v1972_v10, %v191_v21  ;;  %v325_v35 = vmax.f32 %v261_v27, 0.0  ;;  %v195_v40 = vmul.f32 %v1493_v31, %v1961_v5  ;;  %v1723_v46 = vld [vmem:[%s2530_s0 + $0xb0] sm:$0xff]   ;;  %v1714_v47 = vld [vmem:[%s2530_s0 + $0x68] sm:$0xff]  }
  0x23   :  { %1824 = vmatprep.mubr.bf16.mxu0 %v357_v0  ;;  %v1719_v0 = vld [vmem:[%s2530_s0 + $0x90] sm:$0xff]   ;;  %v371_v34 = vpack.c.bf16 %v324_v26, %v323_v20  ;;  %v1497_v43 = vunpack.c.h.bf16 %v1721_v24  ;;  %v196_v44 = vmul.f32 %v1496_v37, %v1961_v5  ;;  %v1501_v54 = vunpack.c.h.bf16 %v1722_v33 }
  0x24   :  { %v1488_v15 = vunpack.c.l.bf16 %v1719_v0  ;;  %v1489_v19 = vunpack.c.h.bf16 %v1719_v0  ;;  %v326_v38 = vmax.f32 %v262_v29, 0.0  ;;  %v266_v49 = vadd.f32 %v1972_v10, %v195_v40  ;;  %v1727_v40 = vld [vmem:[%s2530_s0 + $0xd0] sm:$0xff]  }
  0x25   :  { %1852 = vmatprep.mubr.bf16.mxu1 %v371_v34  ;;  %v199_v62 = vmul.f32 %v1501_v54, %v1961_v5  ;;  %v1504_v63 = vunpack.c.l.bf16 %v1723_v46  ;;  %v1505_v0 = vunpack.c.h.bf16 %v1723_v46  ;;  %v313_v4 = vmax.f32 %v2084_v3, 0.0 }
  0x26   :  { %v192_v22 = vmul.f32 %v1488_v15, %v1961_v5  ;;  %v193_v28 = vmul.f32 %v1489_v19, %v1961_v5  ;;  %v372_v48 = vpack.c.bf16 %v326_v38, %v325_v35  ;;  %v330_v61 = vmax.f32 %v266_v49, 0.0 }
  0x27   :  { %v1468_v8 = vunpack.c.l.bf16 %v1714_v47  ;;  %v314_v13 = vmax.f32 %v2089_v7, 0.0  ;;  %v1469_v14 = vunpack.c.h.bf16 %v1714_v47  ;;  %v200_v15 = vmul.f32 %v1504_v63, %v1961_v5 }
  0x28   :  { %v263_v30 = vadd.f32 %v1972_v10, %v192_v22  ;;  %v264_v36 = vadd.f32 %v1972_v10, %v193_v28  ;;  %1853 = vmatmul.mubr.bf16.vlgmr.msra.gmra.mrb[0].mxu1 %v372_v48  ;;  %v201_v17 = vmul.f32 %v1505_v0, %v1961_v5  ;;  %v181_v3 = vmul.f32 %v1465_v12, %v1961_v5 }
  0x29   :  { %v1508_v19 = vunpack.c.l.bf16 %v1724_v1  ;;  %v1509_v20 = vunpack.c.h.bf16 %v1724_v1  ;;  %v271_v24 = vadd.f32 %v1972_v10, %v200_v15  ;;  %v1512_v27 = vunpack.c.l.bf16 %v1725_v18  ;;  %v1728_v15 = vld [vmem:[%s2530_s0 + $0xd8] sm:$0xff]  }
  0x2a   :  { %1825 = vmatmul.mubr.bf16.gmra.mrb[4].mxu0 %v358_v32  ;;  %v194_v32 = vmul.f32 %v1492_v23, %v1961_v5  ;;  %v327_v39 = vmax.f32 %v263_v30, 0.0  ;;  %v328_v42 = vmax.f32 %v264_v36, 0.0  ;;  %v270_v23 = vadd.f32 %v1972_v10, %v199_v62 }
  0x2b   :  { %1828 = vmatprep.mubr.bf16.mxu0 %v359_v45  ;;  %v1500_v45 = vunpack.c.l.bf16 %v1722_v33  ;;  %v1513_v52 = vunpack.c.h.bf16 %v1725_v18  ;;  %v365_v12 = vpack.c.bf16 %v312_v6, %v311_v2  ;;  %v251_v28 = vadd.f32 %v1972_v10, %v2098_v16  ;;  %v1716_v33 = vld [vmem:[%s2530_s0 + $0x78] sm:$0xff]   ;;  %v1726_v16 = vld [vmem:[%s2530_s0 + $0xc8] sm:$0xff]  }
  0x2c   :  { %v265_v41 = vadd.f32 %v1972_v10, %v194_v32  ;;  %v373_v55 = vpack.c.bf16 %v328_v42, %v327_v39  ;;  %v252_v31 = vadd.f32 %v1972_v10, %v181_v3  ;;  %v182_v32 = vmul.f32 %v1468_v8, %v1961_v5 }
  0x2d   :  { %v198_v59 = vmul.f32 %v1500_v45, %v1961_v5  ;;  %v202_v34 = vmul.f32 %v1508_v19, %v1961_v5  ;;  %v203_v50 = vmul.f32 %v1509_v20, %v1961_v5  ;;  %v366_v35 = vpack.c.bf16 %v314_v13, %v313_v4 }
  0x2e   :  { %v329_v51 = vmax.f32 %v265_v41, 0.0  ;;  %1856 = vmatprep.mubr.bf16.mxu1 %v373_v55  ;;  %v183_v53 = vmul.f32 %v1469_v14, %v1961_v5  ;;  %v334_v6 = vmax.f32 %v270_v23, 0.0  ;;  %v335_v36 = vmax.f32 %v271_v24, 0.0 }
  0x2f   :  { %v269_v22 = vadd.f32 %v1972_v10, %v198_v59  ;;  %v204_v38 = vmul.f32 %v1512_v27, %v1961_v5  ;;  %v205_v39 = vmul.f32 %v1513_v52, %v1961_v5  ;;  %v315_v41 = vmax.f32 %v251_v28, 0.0 }
  0x30   :  { %v374_v21 = vpack.c.bf16 %v330_v61, %v329_v51  ;;  %v316_v45 = vmax.f32 %v252_v31, 0.0  ;;  %v273_v46 = vadd.f32 %v1972_v10, %v202_v34  ;;  %v274_v47 = vadd.f32 %v1972_v10, %v203_v50 }
  0x31   :  { %v333_v2 = vmax.f32 %v269_v22, 0.0  ;;  %v1516_v48 = vunpack.c.l.bf16 %v1726_v16  ;;  %v1517_v51 = vunpack.c.h.bf16 %v1726_v16  ;;  %v1520_v54 = vunpack.c.l.bf16 %v1727_v40 }
  0x32   :  { %1829 = vmatmul.mubr.bf16.gmra.mrb[8].mxu0 %v360_v56  ;;  %v197_v56 = vmul.f32 %v1497_v43, %v1961_v5  ;;  %1857 = vmatmul.mubr.bf16.gmra.mrb[4].mxu1 %v374_v21  ;;  %v1521_v55 = vunpack.c.h.bf16 %v1727_v40  ;;  %v276_v59 = vadd.f32 %v1972_v10, %v205_v39  ;;  %v254_v61 = vadd.f32 %v1972_v10, %v183_v53  ;;  %v1729_v21 = vld [vmem:[%s2530_s0 + $0xe0] sm:$0xff]  }
  0x33   :  { %1832 = vmatprep.mubr.bf16.mxu0 %v361_v57  ;;  %v267_v57 = vadd.f32 %v1972_v10, %v196_v44  ;;  %v1476_v44 = vunpack.c.l.bf16 %v1716_v33  ;;  %v376_v49 = vpack.c.bf16 %v334_v6, %v333_v2  ;;  %v1477_v0 = vunpack.c.h.bf16 %v1716_v33 }
  0x34   :  { %v268_v9 = vadd.f32 %v1972_v10, %v197_v56  ;;  %v253_v56 = vadd.f32 %v1972_v10, %v182_v32  ;;  %v367_v1 = vpack.c.bf16 %v316_v45, %v315_v41  ;;  %v337_v4 = vmax.f32 %v273_v46, 0.0  ;;  %v1731_v41 = vld [vmem:[%s2530_s0 + $0xf0] sm:$0xff]  }
  0x35   :  { %v331_v11 = vmax.f32 %v267_v57, 0.0  ;;  %v275_v57 = vadd.f32 %v1972_v10, %v204_v38  ;;  %v338_v8 = vmax.f32 %v274_v47, 0.0  ;;  %v208_v13 = vmul.f32 %v1520_v54, %v1961_v5 }
  0x36   :  { %v332_v7 = vmax.f32 %v268_v9, 0.0  ;;  %v206_v9 = vmul.f32 %v1516_v48, %v1961_v5  ;;  %v209_v14 = vmul.f32 %v1521_v55, %v1961_v5  ;;  %v340_v3 = vmax.f32 %v276_v59, 0.0 }
  0x37   :  { %v339_v18 = vmax.f32 %v275_v57, 0.0  ;;  %v187_v20 = vmul.f32 %v1477_v0, %v1961_v5  ;;  %v378_v23 = vpack.c.bf16 %v338_v8, %v337_v4  ;;  %v279_v27 = vadd.f32 %v1972_v10, %v208_v13 }
  0x38   :  { %v375_v26 = vpack.c.bf16 %v332_v7, %v331_v11  ;;  %v207_v11 = vmul.f32 %v1517_v51, %v1961_v5  ;;  %v318_v7 = vmax.f32 %v254_v61, 0.0  ;;  %v277_v24 = vadd.f32 %v1972_v10, %v206_v9 }
  0x39   :  { %v280_v52 = vadd.f32 %v1972_v10, %v209_v14  ;;  %v379_v28 = vpack.c.bf16 %v340_v3, %v339_v18  ;;  %v258_v33 = vadd.f32 %v1972_v10, %v187_v20  ;;  %v343_v2 = vmax.f32 %v279_v27, 0.0 }
  0x3a   :  { %1833 = vmatmul.mubr.bf16.gmra.mrb[12].mxu0 %v2071_v58  ;;  %v1715_v58 = vld [vmem:[%s2530_s0 + $0x70] sm:$0xff]   ;;  %1860 = vmatprep.mubr.bf16.mxu1 %v375_v26  ;;  %v1524_v26 = vunpack.c.l.bf16 %v1728_v15  ;;  %v341_v50 = vmax.f32 %v277_v24, 0.0  ;;  %v1536_v51 = vunpack.c.l.bf16 %v1731_v41  ;;  %v1537_v54 = vunpack.c.h.bf16 %v1731_v41 }
  0x3b   :  { %1836 = vmatprep.mubr.bf16.mxu0 %v2076_v60  ;;  %v272_v60 = vadd.f32 %v1972_v10, %v201_v17  ;;  %v1472_v29 = vunpack.c.l.bf16 %v1715_v58  ;;  %v1473_v30 = vunpack.c.h.bf16 %v1715_v58  ;;  %1861 = vmatmul.mubr.bf16.gmra.mrb[8].mxu1 %v376_v49  ;;  %v186_v17 = vmul.f32 %v1476_v44, %v1961_v5 }
  0x3c   :  { %v317_v58 = vmax.f32 %v253_v56, 0.0  ;;  %v344_v6 = vmax.f32 %v280_v52, 0.0  ;;  %v322_v40 = vmax.f32 %v258_v33, 0.0  ;;  %v217_v0 = vmul.f32 %v1537_v54, %v1961_v5 }
  0x3d   :  { %v336_v37 = vmax.f32 %v272_v60, 0.0  ;;  %v184_v42 = vmul.f32 %v1472_v29, %v1961_v5  ;;  %v185_v43 = vmul.f32 %v1473_v30, %v1961_v5  ;;  %v278_v60 = vadd.f32 %v1972_v10, %v207_v11 }
  0x3e   :  { %v1528_v29 = vunpack.c.l.bf16 %v1729_v21  ;;  %v1529_v30 = vunpack.c.h.bf16 %v1729_v21  ;;  %v368_v31 = vpack.c.bf16 %v318_v7, %v317_v58  ;;  %v257_v32 = vadd.f32 %v1972_v10, %v186_v17 }
  0x3f   :  { %v255_v62 = vadd.f32 %v1972_v10, %v184_v42  ;;  %v256_v63 = vadd.f32 %v1972_v10, %v185_v43  ;;  %v342_v53 = vmax.f32 %v278_v60, 0.0  ;;  %v381_v45 = vpack.c.bf16 %v344_v6, %v343_v2 }
  0x40   :  { %v213_v38 = vmul.f32 %v1529_v30, %v1961_v5  ;;  %v321_v39 = vmax.f32 %v257_v32, 0.0  ;;  %v288_v17 = vadd.f32 %v1972_v10, %v217_v0 }
  0x41   :  { %v319_v19 = vmax.f32 %v255_v62, 0.0  ;;  %v320_v22 = vmax.f32 %v256_v63, 0.0  ;;  %v380_v44 = vpack.c.bf16 %v342_v53, %v341_v50  ;;  %v216_v63 = vmul.f32 %v1536_v51, %v1961_v5 }
  0x42   :  { %1837 = vmatmul.mubr.bf16.gmra.mrb[16].mxu0 %v2107_v25  ;;  %v377_v25 = vpack.c.bf16 %v336_v37, %v335_v36  ;;  %v1730_v36 = vld [vmem:[%s2530_s0 + $0xe8] sm:$0xff]   ;;  %v212_v37 = vmul.f32 %v1528_v29, %v1961_v5  ;;  %v284_v49 = vadd.f32 %v1972_v10, %v213_v38  ;;  %v370_v55 = vpack.c.bf16 %v322_v40, %v321_v39 }
  0x43   :  { %1840 = vmatprep.mubr.bf16.mxu0 %v365_v12  ;;  %v1525_v12 = vunpack.c.h.bf16 %v1728_v15  ;;  %v369_v34 = vpack.c.bf16 %v320_v22, %v319_v19  ;;  %v1532_v43 = vunpack.c.l.bf16 %v1730_v36  ;;  %v1533_v47 = vunpack.c.h.bf16 %v1730_v36 }
  0x44   :  { %1864 = vmatprep.mubr.bf16.mxu1 %v377_v25  ;;  %v283_v48 = vadd.f32 %v1972_v10, %v212_v37  ;;  %v348_v62 = vmax.f32 %v284_v49, 0.0  ;;  %v287_v15 = vadd.f32 %v1972_v10, %v216_v63  ;;  %v352_v20 = vmax.f32 %v288_v17, 0.0 }
  0x45   :  { %1865 = vmatmul.mubr.bf16.gmra.mrb[12].mxu1 %v378_v23  ;;  %v211_v16 = vmul.f32 %v1525_v12, %v1961_v5  ;;  %v214_v56 = vmul.f32 %v1532_v43, %v1961_v5  ;;  %v215_v59 = vmul.f32 %v1533_v47, %v1961_v5 }
  0x46   :  { %1868 = vmatprep.mubr.bf16.mxu1 %v379_v28  ;;  %v347_v61 = vmax.f32 %v283_v48, 0.0  ;;  %v351_v19 = vmax.f32 %v287_v15, 0.0 }
  0x47   :  { %v282_v46 = vadd.f32 %v1972_v10, %v211_v16  ;;  %v285_v4 = vadd.f32 %v1972_v10, %v214_v56  ;;  %v286_v9 = vadd.f32 %v1972_v10, %v215_v59 }
  0x48   :  { %v383_v14 = vpack.c.bf16 %v348_v62, %v347_v61  ;;  %v385_v24 = vpack.c.bf16 %v352_v20, %v351_v19 }
  0x49   :  { %v346_v57 = vmax.f32 %v282_v46, 0.0  ;;  %v349_v18 = vmax.f32 %v285_v4, 0.0  ;;  %v350_v3 = vmax.f32 %v286_v9, 0.0 }
  0x4a   :  { %1841 = vmatmul.mubr.bf16.gmra.mrb[20].mxu0 %v366_v35  ;;  %v210_v35 = vmul.f32 %v1524_v26, %v1961_v5 }
  0x4b   :  { %1844 = vmatprep.mubr.bf16.mxu0 %v367_v1  ;;  %v1732_v1 = vld [vmem:[%s2530_s0 + $0xf8] sm:$0xff]   ;;  %v384_v21 = vpack.c.bf16 %v350_v3, %v349_v18 }
  0x4c   :  { %v281_v42 = vadd.f32 %v1972_v10, %v210_v35  ;;  %v1540_v11 = vunpack.c.l.bf16 %v1732_v1  ;;  %v1541_v13 = vunpack.c.h.bf16 %v1732_v1 }
  0x4d   :  { %1869 = vmatmul.mubr.bf16.gmra.mrb[16].mxu1 %v380_v44 }
  0x4e   :  { %v345_v25 = vmax.f32 %v281_v42, 0.0  ;;  %1872 = vmatprep.mubr.bf16.mxu1 %v381_v45  ;;  %v218_v58 = vmul.f32 %v1540_v11, %v1961_v5  ;;  %v219_v7 = vmul.f32 %v1541_v13, %v1961_v5 }
  0x50   :  { %v382_v8 = vpack.c.bf16 %v346_v57, %v345_v25  ;;  %v289_v22 = vadd.f32 %v1972_v10, %v218_v58  ;;  %v290_v23 = vadd.f32 %v1972_v10, %v219_v7 }
  0x52   :  { %1845 = vmatmul.mubr.bf16.gmra.mrb[24].mxu0 %v368_v31  ;;  %v353_v26 = vmax.f32 %v289_v22, 0.0  ;;  %v354_v60 = vmax.f32 %v290_v23, 0.0 }
  0x53   :  { %1848 = vmatprep.mubr.bf16.mxu0 %v369_v34 }
  0x54   :  { %v386_v27 = vpack.c.bf16 %v354_v60, %v353_v26 }
  0x55   :  { %1873 = vmatmul.mubr.bf16.gmra.mrb[20].mxu1 %v382_v8 }
  0x56   :  { %1876 = vmatprep.mubr.bf16.mxu1 %v383_v14 }
  0x5a   :  { %1849 = vmatmul.mubr.bf16.gmra.mrb[28].mxu0 %v370_v55 }
  0x5d   :  { %1877 = vmatmul.mubr.bf16.gmra.mrb[24].mxu1 %v384_v21 }
  0x5e   :  { %1880 = vmatprep.mubr.bf16.mxu1 %v385_v24 }
  0x65   :  { %1881 = vmatmul.mubr.bf16.gmra.mrb[28].mxu1 %v386_v27 }
  0xf5   :  { %v1822_v52 = vpop.f32.mrb[0].mxu0 }
  0xf6   :  { %v485_v12 = vpop.f32.mrb[1].mxu0  ;;  %v1132_v10 = vmul.f32 %v1822_v52, %v1822_v52 }
  0xf7   :  { %v1823_v28 = vpop.f32.mrb[2].mxu0  ;;  %v1130_v30 = vmul.f32 %v485_v12, %v485_v12 }
  0xf8   :  { %v1550_v29 = vpack.c.bf16 %v1823_v28, %v1822_v52  ;;  %v488_v5 = vpop.f32.mrb[3].mxu0  ;;  %v1133_v35 = vmul.f32 %v1823_v28, %v1823_v28 }
  0xf9   :  { %v1545_v31 = vpack.c.bf16 %v488_v5, %v485_v12  ;;  %v1060_v32 = vadd.f32 %v488_v5, %v485_v12  ;;  %v1131_v33 = vmul.f32 %v488_v5, %v488_v5 }
  0xfa   :  { %1733 = vst [vmem:[%s2533_s4 + $0x8] sm:$0xff] %v1550_v29  }
  0xfb   :  { %1546 = vst [vmem:[%s2533_s4] sm:$0xff] %v1545_v31   ;;  %v1061_v34 = vadd.f32 %v1822_v52, %v1060_v32  ;;  %v1194_v50 = vadd.f32 %v1131_v33, %v1130_v30  ;;  %v2253_v14 = vpop.f32.mrb[0].mxu1 }
  0xfc   :  { %v2255_v15 = vpop.f32.mrb[1].mxu1 }
  0xfd   :  { %v1195_v53 = vadd.f32 %v1194_v50, %v1132_v10  ;;  %v1826_v2 = vpop.f32.mrb[4].mxu0  ;;  %v1062_v6 = vadd.f32 %v1823_v28, %v1061_v34  ;;  %v2257_v7 = vpop.f32.mrb[2].mxu1 }
  0xfe   :  { %v501_v16 = vpop.f32.mrb[5].mxu0  ;;  %v1136_v46 = vmul.f32 %v1826_v2, %v1826_v2  ;;  %v1630_v20 = vpack.c.bf16 %v2257_v7, %v2253_v14  ;;  %v2261_v21 = vpop.f32.mrb[3].mxu1 }
  0xff   :  { %v1063_v36 = vadd.f32 %v1062_v6, %v501_v16  ;;  %v1134_v37 = vmul.f32 %v501_v16, %v501_v16  ;;  %v1196_v38 = vadd.f32 %v1195_v53, %v1133_v35  ;;  %v1827_v39 = vpop.f32.mrb[6].mxu0  ;;  %v1625_v60 = vpack.c.bf16 %v2261_v21, %v2255_v15 }
 0x100   :  { %v1560_v40 = vpack.c.bf16 %v1827_v39, %v1826_v2  ;;  %v504_v41 = vpop.f32.mrb[7].mxu0  ;;  %v1137_v49 = vmul.f32 %v1827_v39, %v1827_v39  ;;  %1749 = vst [vmem:[%s2533_s4 + $0x88] sm:$0xff] %v1630_v20  }
 0x101   :  { %v1197_v42 = vadd.f32 %v1196_v38, %v1134_v37  ;;  %v1555_v43 = vpack.c.bf16 %v504_v41, %v501_v16  ;;  %v1064_v44 = vadd.f32 %v1063_v36, %v504_v41  ;;  %v1135_v45 = vmul.f32 %v504_v41, %v504_v41  ;;  %1748 = vst [vmem:[%s2533_s4 + $0x80] sm:$0xff] %v1625_v60  }
 0x102   :  { %1735 = vst [vmem:[%s2533_s4 + $0x18] sm:$0xff] %v1560_v40  }
 0x103   :  { %1734 = vst [vmem:[%s2533_s4 + $0x10] sm:$0xff] %v1555_v43   ;;  %v1065_v47 = vadd.f32 %v1826_v2, %v1064_v44  ;;  %v1198_v48 = vadd.f32 %v1197_v42, %v1135_v45 }
 0x105   :  { %v1199_v51 = vadd.f32 %v1198_v48, %v1136_v46  ;;  %v1830_v54 = vpop.f32.mrb[8].mxu0  ;;  %v1066_v55 = vadd.f32 %v1827_v39, %v1065_v47  ;;  %v2277_v33 = vpop.f32.mrb[4].mxu1 }
 0x106   :  { %v517_v56 = vpop.f32.mrb[9].mxu0  ;;  %v1140_v9 = vmul.f32 %v1830_v54, %v1830_v54  ;;  %v2279_v10 = vpop.f32.mrb[5].mxu1 }
 0x107   :  { %v1067_v25 = vadd.f32 %v1066_v55, %v517_v56  ;;  %v1138_v57 = vmul.f32 %v517_v56, %v517_v56  ;;  %v1200_v59 = vadd.f32 %v1199_v51, %v1137_v49  ;;  %v1831_v61 = vpop.f32.mrb[10].mxu0  ;;  %v2281_v2 = vpop.f32.mrb[6].mxu1 }
 0x108   :  { %v1570_v62 = vpack.c.bf16 %v1831_v61, %v1830_v54  ;;  %v520_v63 = vpop.f32.mrb[11].mxu0  ;;  %v1141_v17 = vmul.f32 %v1831_v61, %v1831_v61  ;;  %v1640_v16 = vpack.c.bf16 %v2281_v2, %v2277_v33  ;;  %v2285_v36 = vpop.f32.mrb[7].mxu1 }
 0x109   :  { %v1201_v0 = vadd.f32 %v1200_v59, %v1138_v57  ;;  %v1565_v1 = vpack.c.bf16 %v520_v63, %v517_v56  ;;  %v1068_v4 = vadd.f32 %v1067_v25, %v520_v63  ;;  %v1139_v8 = vmul.f32 %v520_v63, %v520_v63 }
 0x10a   :  { %1737 = vst [vmem:[%s2533_s4 + $0x28] sm:$0xff] %v1570_v62   ;;  %v1635_v41 = vpack.c.bf16 %v2285_v36, %v2279_v10  ;;  %1751 = vst [vmem:[%s2533_s4 + $0x98] sm:$0xff] %v1640_v16  }
 0x10b   :  { %1736 = vst [vmem:[%s2533_s4 + $0x20] sm:$0xff] %v1565_v1   ;;  %v1069_v11 = vadd.f32 %v1830_v54, %v1068_v4  ;;  %v1202_v13 = vadd.f32 %v1201_v0, %v1139_v8 }
 0x10c   :  { %1750 = vst [vmem:[%s2533_s4 + $0x90] sm:$0xff] %v1635_v41  }
 0x10d   :  { %v1203_v18 = vadd.f32 %v1202_v13, %v1140_v9  ;;  %v1834_v3 = vpop.f32.mrb[12].mxu0  ;;  %v1070_v58 = vadd.f32 %v1831_v61, %v1069_v11 }
 0x10e   :  { %v533_v19 = vpop.f32.mrb[13].mxu0  ;;  %v1144_v30 = vmul.f32 %v1834_v3, %v1834_v3  ;;  %v2301_v54 = vpop.f32.mrb[8].mxu1 }
 0x10f   :  { %v1071_v22 = vadd.f32 %v1070_v58, %v533_v19  ;;  %v1142_v23 = vmul.f32 %v533_v19, %v533_v19  ;;  %v1204_v24 = vadd.f32 %v1203_v18, %v1141_v17  ;;  %v1835_v26 = vpop.f32.mrb[14].mxu0  ;;  %v2303_v55 = vpop.f32.mrb[9].mxu1 }
 0x110   :  { %v1580_v27 = vpack.c.bf16 %v1835_v26, %v1834_v3  ;;  %v536_v52 = vpop.f32.mrb[15].mxu0  ;;  %v1145_v34 = vmul.f32 %v1835_v26, %v1835_v26  ;;  %v2305_v61 = vpop.f32.mrb[10].mxu1 }
 0x111   :  { %v1205_v12 = vadd.f32 %v1204_v24, %v1142_v23  ;;  %v1575_v28 = vpack.c.bf16 %v536_v52, %v533_v19  ;;  %v1072_v29 = vadd.f32 %v1071_v22, %v536_v52  ;;  %v1143_v5 = vmul.f32 %v536_v52, %v536_v52  ;;  %v2309_v0 = vpop.f32.mrb[11].mxu1 }
 0x112   :  { %1739 = vst [vmem:[%s2533_s4 + $0x38] sm:$0xff] %v1580_v27   ;;  %v1650_v63 = vpack.c.bf16 %v2305_v61, %v2301_v54  ;;  %v1645_v11 = vpack.c.bf16 %v2309_v0, %v2303_v55 }
 0x113   :  { %1738 = vst [vmem:[%s2533_s4 + $0x30] sm:$0xff] %v1575_v28   ;;  %v1073_v31 = vadd.f32 %v1834_v3, %v1072_v29  ;;  %v1206_v32 = vadd.f32 %v1205_v12, %v1143_v5 }
 0x114   :  { %1753 = vst [vmem:[%s2533_s4 + $0xa8] sm:$0xff] %v1650_v63   ;;  %1752 = vst [vmem:[%s2533_s4 + $0xa0] sm:$0xff] %v1645_v11  }
 0x115   :  { %v1207_v50 = vadd.f32 %v1206_v32, %v1144_v30  ;;  %v1838_v35 = vpop.f32.mrb[16].mxu0  ;;  %v1074_v53 = vadd.f32 %v1835_v26, %v1073_v31 }
 0x116   :  { %v549_v6 = vpop.f32.mrb[17].mxu0  ;;  %v1148_v48 = vmul.f32 %v1838_v35, %v1838_v35 }
 0x117   :  { %v1075_v37 = vadd.f32 %v1074_v53, %v549_v6  ;;  %v1146_v38 = vmul.f32 %v549_v6, %v549_v6  ;;  %v1208_v39 = vadd.f32 %v1207_v50, %v1145_v34  ;;  %v1839_v40 = vpop.f32.mrb[18].mxu0 }
 0x118   :  { %v1590_v42 = vpack.c.bf16 %v1839_v40, %v1838_v35  ;;  %v552_v43 = vpop.f32.mrb[19].mxu0  ;;  %v1149_v56 = vmul.f32 %v1839_v40, %v1839_v40  ;;  %v2325_v24 = vpop.f32.mrb[12].mxu1 }
 0x119   :  { %v1209_v44 = vadd.f32 %v1208_v39, %v1146_v38  ;;  %v1585_v45 = vpack.c.bf16 %v552_v43, %v549_v6  ;;  %v1076_v46 = vadd.f32 %v1075_v37, %v552_v43  ;;  %v1147_v47 = vmul.f32 %v552_v43, %v552_v43  ;;  %v2327_v26 = vpop.f32.mrb[13].mxu1 }
 0x11a   :  { %1741 = vst [vmem:[%s2533_s4 + $0x48] sm:$0xff] %v1590_v42   ;;  %v2329_v28 = vpop.f32.mrb[14].mxu1 }
 0x11b   :  { %1740 = vst [vmem:[%s2533_s4 + $0x40] sm:$0xff] %v1585_v45   ;;  %v1077_v49 = vadd.f32 %v1838_v35, %v1076_v46  ;;  %v1210_v51 = vadd.f32 %v1209_v44, %v1147_v47  ;;  %v1660_v5 = vpack.c.bf16 %v2329_v28, %v2325_v24  ;;  %v2333_v30 = vpop.f32.mrb[15].mxu1 }
 0x11c   :  { %v1655_v35 = vpack.c.bf16 %v2333_v30, %v2327_v26 }
 0x11d   :  { %v1211_v25 = vadd.f32 %v1210_v51, %v1148_v48  ;;  %v1842_v57 = vpop.f32.mrb[20].mxu0  ;;  %v1078_v59 = vadd.f32 %v1839_v40, %v1077_v49  ;;  %1755 = vst [vmem:[%s2533_s4 + $0xb8] sm:$0xff] %v1660_v5  }
 0x11e   :  { %v565_v62 = vpop.f32.mrb[21].mxu0  ;;  %v1152_v20 = vmul.f32 %v1842_v57, %v1842_v57  ;;  %1754 = vst [vmem:[%s2533_s4 + $0xb0] sm:$0xff] %v1655_v35   ;;  %v1163_v35 = vmul.f32 %v2261_v21, %v2261_v21 }
 0x11f   :  { %v1079_v1 = vadd.f32 %v1078_v59, %v565_v62  ;;  %v1150_v4 = vmul.f32 %v565_v62, %v565_v62  ;;  %v1212_v8 = vadd.f32 %v1211_v25, %v1149_v56  ;;  %v1843_v9 = vpop.f32.mrb[22].mxu0 }
 0x120   :  { %v1600_v13 = vpack.c.bf16 %v1843_v9, %v1842_v57  ;;  %v568_v17 = vpop.f32.mrb[23].mxu0  ;;  %v1153_v60 = vmul.f32 %v1843_v9, %v1843_v9  ;;  %v2349_v43 = vpop.f32.mrb[16].mxu1 }
 0x121   :  { %v1213_v18 = vadd.f32 %v1212_v8, %v1150_v4  ;;  %v1595_v3 = vpack.c.bf16 %v568_v17, %v565_v62  ;;  %v1080_v58 = vadd.f32 %v1079_v1, %v568_v17  ;;  %v1151_v19 = vmul.f32 %v568_v17, %v568_v17  ;;  %v2351_v44 = vpop.f32.mrb[17].mxu1 }
 0x122   :  { %1743 = vst [vmem:[%s2533_s4 + $0x58] sm:$0xff] %v1600_v13   ;;  %v2353_v49 = vpop.f32.mrb[18].mxu1 }
 0x123   :  { %1742 = vst [vmem:[%s2533_s4 + $0x50] sm:$0xff] %v1595_v3   ;;  %v1081_v22 = vadd.f32 %v1842_v57, %v1080_v58  ;;  %v1214_v23 = vadd.f32 %v1213_v18, %v1151_v19  ;;  %v1670_v56 = vpack.c.bf16 %v2353_v49, %v2349_v43  ;;  %v2357_v25 = vpop.f32.mrb[19].mxu1 }
 0x124   :  { %v1665_v1 = vpack.c.bf16 %v2357_v25, %v2351_v44 }
 0x125   :  { %v1215_v27 = vadd.f32 %v1214_v23, %v1152_v20  ;;  %v1846_v52 = vpop.f32.mrb[24].mxu0  ;;  %v1082_v12 = vadd.f32 %v1843_v9, %v1081_v22  ;;  %1757 = vst [vmem:[%s2533_s4 + $0xc8] sm:$0xff] %v1670_v56  }
 0x126   :  { %v581_v29 = vpop.f32.mrb[25].mxu0  ;;  %v1156_v40 = vmul.f32 %v1846_v52, %v1846_v52  ;;  %1756 = vst [vmem:[%s2533_s4 + $0xc0] sm:$0xff] %v1665_v1  }
 0x127   :  { %v1083_v31 = vadd.f32 %v1082_v12, %v581_v29  ;;  %v1154_v32 = vmul.f32 %v581_v29, %v581_v29  ;;  %v1216_v34 = vadd.f32 %v1215_v27, %v1153_v60  ;;  %v1847_v50 = vpop.f32.mrb[26].mxu0  ;;  %v1162_v27 = vmul.f32 %v2255_v15, %v2255_v15 }
 0x128   :  { %v1610_v53 = vpack.c.bf16 %v1847_v50, %v1846_v52  ;;  %v584_v6 = vpop.f32.mrb[27].mxu0  ;;  %v1157_v45 = vmul.f32 %v1847_v50, %v1847_v50  ;;  %v2373_v19 = vpop.f32.mrb[20].mxu1 }
 0x129   :  { %v1217_v16 = vadd.f32 %v1216_v34, %v1154_v32  ;;  %v1605_v37 = vpack.c.bf16 %v584_v6, %v581_v29  ;;  %v1084_v38 = vadd.f32 %v1083_v31, %v584_v6  ;;  %v1155_v39 = vmul.f32 %v584_v6, %v584_v6  ;;  %v2375_v20 = vpop.f32.mrb[21].mxu1 }
 0x12a   :  { %1745 = vst [vmem:[%s2533_s4 + $0x68] sm:$0xff] %v1610_v53  }
 0x12b   :  { %1744 = vst [vmem:[%s2533_s4 + $0x60] sm:$0xff] %v1605_v37   ;;  %v1085_v41 = vadd.f32 %v1846_v52, %v1084_v38  ;;  %v1218_v42 = vadd.f32 %v1217_v16, %v1155_v39  ;;  %v2379_v52 = vpop.f32.mrb[22].mxu1  ;;  %v1165_v38 = vmul.f32 %v2257_v7, %v2257_v7 }
 0x12c   :  { %v1680_v12 = vpack.c.bf16 %v2379_v52, %v2373_v19  ;;  %v2383_v29 = vpop.f32.mrb[23].mxu1 }
 0x12d   :  { %v1219_v46 = vadd.f32 %v1218_v42, %v1156_v40  ;;  %v1850_v47 = vpop.f32.mrb[28].mxu0  ;;  %v1086_v48 = vadd.f32 %v1847_v50, %v1085_v41  ;;  %v1675_v32 = vpack.c.bf16 %v2383_v29, %v2375_v20  ;;  %v1166_v40 = vmul.f32 %v2279_v10, %v2279_v10 }
 0x12e   :  { %v597_v51 = vpop.f32.mrb[29].mxu0  ;;  %v1160_v18 = vmul.f32 %v1850_v47, %v1850_v47  ;;  %1759 = vst [vmem:[%s2533_s4 + $0xd8] sm:$0xff] %v1680_v12   ;;  %v1174_v12 = vmul.f32 %v2327_v26, %v2327_v26 }
 0x12f   :  { %v1087_v57 = vadd.f32 %v1086_v48, %v597_v51  ;;  %v1158_v59 = vmul.f32 %v597_v51, %v597_v51  ;;  %v1220_v62 = vadd.f32 %v1219_v46, %v1157_v45  ;;  %v1851_v63 = vpop.f32.mrb[30].mxu0  ;;  %1758 = vst [vmem:[%s2533_s4 + $0xd0] sm:$0xff] %v1675_v32  }
 0x130   :  { %v1620_v4 = vpack.c.bf16 %v1851_v63, %v1850_v47  ;;  %v600_v8 = vpop.f32.mrb[31].mxu0  ;;  %v1161_v22 = vmul.f32 %v1851_v63, %v1851_v63  ;;  %v2400_v16 = vpop.f32.mrb[24].mxu1 }
 0x131   :  { %v1221_v9 = vadd.f32 %v1220_v62, %v1158_v59  ;;  %v1615_v11 = vpack.c.bf16 %v600_v8, %v597_v51  ;;  %v1088_v13 = vadd.f32 %v1087_v57, %v600_v8  ;;  %v1159_v17 = vmul.f32 %v600_v8, %v600_v8  ;;  %v2402_v37 = vpop.f32.mrb[25].mxu1 }
 0x132   :  { %1747 = vst [vmem:[%s2533_s4 + $0x78] sm:$0xff] %v1620_v4   ;;  %v2409_v41 = vpop.f32.mrb[26].mxu1  ;;  %v1167_v51 = vmul.f32 %v2285_v36, %v2285_v36  ;;  %v1170_v4 = vmul.f32 %v2303_v55, %v2303_v55 }
 0x133   :  { %1746 = vst [vmem:[%s2533_s4 + $0x70] sm:$0xff] %v1615_v11   ;;  %v1089_v3 = vadd.f32 %v1850_v47, %v1088_v13  ;;  %v1222_v58 = vadd.f32 %v1221_v9, %v1159_v17  ;;  %v1690_v42 = vpack.c.bf16 %v2409_v41, %v2400_v16 }
 0x135   :  { %v1223_v23 = vadd.f32 %v1222_v58, %v1160_v18  ;;  %v1090_v60 = vadd.f32 %v1851_v63, %v1089_v3  ;;  %1761 = vst [vmem:[%s2533_s4 + $0xe8] sm:$0xff] %v1690_v42   ;;  %v1169_v63 = vmul.f32 %v2281_v2, %v2281_v2  ;;  %v1171_v3 = vmul.f32 %v2309_v0, %v2309_v0 }
 0x137   :  { %v1091_v5 = vadd.f32 %v1090_v60, %v2255_v15  ;;  %v1224_v31 = vadd.f32 %v1223_v23, %v1161_v22  ;;  %v1164_v15 = vmul.f32 %v2253_v14, %v2253_v14  ;;  %v1173_v23 = vmul.f32 %v2305_v61, %v2305_v61 }
 0x139   :  { %v1225_v34 = vadd.f32 %v1224_v31, %v1162_v27  ;;  %v1092_v50 = vadd.f32 %v1091_v5, %v2261_v21 }
 0x13b   :  { %v1093_v53 = vadd.f32 %v2253_v14, %v1092_v50  ;;  %v1226_v6 = vadd.f32 %v1225_v34, %v1163_v35  ;;  %v2413_v14 = vpop.f32.mrb[27].mxu1  ;;  %v1175_v34 = vmul.f32 %v2333_v30, %v2333_v30 }
 0x13c   :  { %v1685_v47 = vpack.c.bf16 %v2413_v14, %v2402_v37  ;;  %v2430_v59 = vpop.f32.mrb[28].mxu1 }
 0x13d   :  { %v1227_v39 = vadd.f32 %v1226_v6, %v1164_v15  ;;  %v1094_v21 = vadd.f32 %v2257_v7, %v1093_v53  ;;  %v2432_v62 = vpop.f32.mrb[29].mxu1 }
 0x13e   :  { %1760 = vst [vmem:[%s2533_s4 + $0xe0] sm:$0xff] %v1685_v47   ;;  %v2439_v8 = vpop.f32.mrb[30].mxu1 }
 0x13f   :  { %v1095_v45 = vadd.f32 %v1094_v21, %v2279_v10  ;;  %v1228_v46 = vadd.f32 %v1227_v39, %v1165_v38  ;;  %v1168_v10 = vmul.f32 %v2277_v33, %v2277_v33  ;;  %v1700_v9 = vpack.c.bf16 %v2439_v8, %v2430_v59 }
 0x140   :  { %v1179_v21 = vmul.f32 %v2357_v25, %v2357_v25 }
 0x141   :  { %v1229_v7 = vadd.f32 %v1228_v46, %v1166_v40  ;;  %v1096_v48 = vadd.f32 %v1095_v45, %v2285_v36  ;;  %1763 = vst [vmem:[%s2533_s4 + $0xf8] sm:$0xff] %v1700_v9   ;;  %v1187_v9 = vmul.f32 %v2413_v14, %v2413_v14 }
 0x143   :  { %v1097_v56 = vadd.f32 %v2277_v33, %v1096_v48  ;;  %v1230_v57 = vadd.f32 %v1229_v7, %v1167_v51  ;;  %v2443_v33 = vpop.f32.mrb[31].mxu1  ;;  %v1183_v51 = vmul.f32 %v2383_v29, %v2383_v29 }
 0x144   :  { %v1695_v17 = vpack.c.bf16 %v2443_v33, %v2432_v62 }
 0x145   :  { %v1231_v1 = vadd.f32 %v1230_v57, %v1168_v10  ;;  %v1098_v36 = vadd.f32 %v2281_v2, %v1097_v56 }
 0x146   :  { %1762 = vst [vmem:[%s2533_s4 + $0xf0] sm:$0xff] %v1695_v17  }
 0x147   :  { %v1099_v11 = vadd.f32 %v1098_v36, %v2303_v55  ;;  %v1232_v13 = vadd.f32 %v1231_v1, %v1169_v63  ;;  %v1172_v55 = vmul.f32 %v2301_v54, %v2301_v54 }
 0x149   :  { %v1233_v2 = vadd.f32 %v1232_v13, %v1170_v4  ;;  %v1100_v18 = vadd.f32 %v1099_v11, %v2309_v0 }
 0x14b   :  { %v1101_v58 = vadd.f32 %v2301_v54, %v1100_v18  ;;  %v1234_v22 = vadd.f32 %v1233_v2, %v1171_v3  ;;  %v1176_v54 = vmul.f32 %v2325_v24, %v2325_v24 }
 0x14d   :  { %v1235_v60 = vadd.f32 %v1234_v22, %v1172_v55  ;;  %v1102_v27 = vadd.f32 %v2305_v61, %v1101_v58  ;;  %v1177_v61 = vmul.f32 %v2329_v28, %v2329_v28  ;;  %v1191_v58 = vmul.f32 %v2443_v33, %v2443_v33 }
 0x14f   :  { %v1103_v0 = vadd.f32 %v1102_v27, %v2327_v26  ;;  %v1236_v5 = vadd.f32 %v1235_v60, %v1173_v23  ;;  %v1178_v26 = vmul.f32 %v2351_v44, %v2351_v44 }
 0x151   :  { %v1237_v31 = vadd.f32 %v1236_v5, %v1174_v12  ;;  %v1104_v32 = vadd.f32 %v1103_v0, %v2333_v30 }
 0x153   :  { %v1105_v50 = vadd.f32 %v2325_v24, %v1104_v32  ;;  %v1238_v35 = vadd.f32 %v1237_v31, %v1175_v34  ;;  %v1180_v24 = vmul.f32 %v2349_v43, %v2349_v43 }
 0x155   :  { %v1239_v15 = vadd.f32 %v1238_v35, %v1176_v54  ;;  %v1106_v53 = vadd.f32 %v2329_v28, %v1105_v50  ;;  %v1181_v28 = vmul.f32 %v2353_v49, %v2353_v49 }
 0x157   :  { %v1107_v6 = vadd.f32 %v1106_v53, %v2351_v44  ;;  %v1240_v38 = vadd.f32 %v1239_v15, %v1177_v61  ;;  %v1182_v44 = vmul.f32 %v2375_v20, %v2375_v20 }
 0x159   :  { %v1241_v39 = vadd.f32 %v1240_v38, %v1178_v26  ;;  %v1108_v30 = vadd.f32 %v1107_v6, %v2357_v25 }
 0x15b   :  { %v1109_v40 = vadd.f32 %v2349_v43, %v1108_v30  ;;  %v1242_v42 = vadd.f32 %v1241_v39, %v1179_v21  ;;  %v1184_v43 = vmul.f32 %v2373_v19, %v2373_v19 }
 0x15d   :  { %v1243_v45 = vadd.f32 %v1242_v42, %v1180_v24  ;;  %v1110_v46 = vadd.f32 %v2353_v49, %v1109_v40  ;;  %v1185_v49 = vmul.f32 %v2379_v52, %v2379_v52 }
 0x15f   :  { %v1111_v47 = vadd.f32 %v1110_v46, %v2375_v20  ;;  %v1244_v7 = vadd.f32 %v1243_v45, %v1181_v28  ;;  %v1186_v20 = vmul.f32 %v2402_v37, %v2402_v37 }
 0x161   :  { %v1245_v48 = vadd.f32 %v1244_v7, %v1182_v44  ;;  %v1112_v25 = vadd.f32 %v1111_v47, %v2383_v29 }
 0x163   :  { %v1113_v10 = vadd.f32 %v2373_v19, %v1112_v25  ;;  %v1246_v56 = vadd.f32 %v1245_v48, %v1183_v51  ;;  %v1188_v19 = vmul.f32 %v2400_v16, %v2400_v16 }
 0x165   :  { %v1247_v57 = vadd.f32 %v1246_v56, %v1184_v43  ;;  %v1114_v63 = vadd.f32 %v2379_v52, %v1113_v10  ;;  %v1189_v52 = vmul.f32 %v2409_v41, %v2409_v41 }
 0x167   :  { %v1115_v1 = vadd.f32 %v1114_v63, %v2402_v37  ;;  %v1248_v36 = vadd.f32 %v1247_v57, %v1185_v49  ;;  %v1190_v37 = vmul.f32 %v2432_v62, %v2432_v62 }
 0x169   :  { %v1249_v4 = vadd.f32 %v1248_v36, %v1186_v20  ;;  %v1116_v29 = vadd.f32 %v1115_v1, %v2413_v14 }
 0x16b   :  { %v1117_v11 = vadd.f32 %v2400_v16, %v1116_v29  ;;  %v1250_v13 = vadd.f32 %v1249_v4, %v1187_v9  ;;  %v1192_v16 = vmul.f32 %v2430_v59, %v2430_v59 }
 0x16d   :  { %v1251_v17 = vadd.f32 %v1250_v13, %v1188_v19  ;;  %v1118_v2 = vadd.f32 %v2409_v41, %v1117_v11  ;;  %v1193_v41 = vmul.f32 %v2439_v8, %v2439_v8 }
 0x16f   :  { %v1119_v18 = vadd.f32 %v1118_v2, %v2432_v62  ;;  %v1252_v3 = vadd.f32 %v1251_v17, %v1189_v52 }
 0x171   :  { %v1253_v55 = vadd.f32 %v1252_v3, %v1190_v37  ;;  %v1120_v14 = vadd.f32 %v1119_v18, %v2443_v33 }
 0x173   :  { %v1121_v22 = vadd.f32 %v2430_v59, %v1120_v14  ;;  %v1254_v23 = vadd.f32 %v1253_v55, %v1191_v58 }
 0x175   :  { %v1122_v60 = vadd.f32 %v2439_v8, %v1121_v22  ;;  %v1255_v27 = vadd.f32 %v1254_v23, %v1192_v16 }
 0x177   :  { %v1123_v62 = vrot.slane %v1122_v60, 4  ;;  %v1256_v12 = vadd.f32 %v1255_v27, %v1193_v41 }
 0x179   :  { %v1124_v0 = vadd.f32 %v1123_v62, %v1122_v60  ;;  %v1257_v5 = vrot.slane %v1256_v12, 4 }
 0x17b   :  { %v1125_v31 = vrot.slane %v1124_v0, 2  ;;  %v1258_v32 = vadd.f32 %v1257_v5, %v1256_v12 }
 0x17d   :  { %v1126_v34 = vadd.f32 %v1125_v31, %v1124_v0  ;;  %v1259_v33 = vrot.slane %v1258_v32, 2 }
 0x17f   :  { %v1127_v54 = vrot.slane %v1126_v34, 1  ;;  %v1260_v50 = vadd.f32 %v1259_v33, %v1258_v32 }
 0x181   :  { %v1128_v35 = vadd.f32 %v1127_v54, %v1126_v34  ;;  %v1261_v61 = vrot.slane %v1260_v50, 1 }
 0x183   :  { %1129 = vst [vmem:[%s2534_s5] sm:$0x1] %v1128_v35  ;;  %v1262_v59 = vadd.f32 %v1261_v61, %v1260_v50 }
 0x185   :  { %1263 = vst [vmem:[%s2535_s6] sm:$0x1] %v1262_v59 }

// kernel: bottleneck_forward.7
= control target key start
LH: loop header
LB: loop body
LE: loop exit
PB: predicated region body
PF: predicated region fallthrough
CT: control target
= control target key end

     0   :  { %s2261_s4 = inlined_call_operand.vmem [shape: bf16[128,128], index: 4, kind: input, shape index: {}]   ;;  %s2262_s3 = inlined_call_operand.vmem [shape: bf16[512,128], index: 3, kind: input, shape index: {}]   ;;  %s2263_s0 = inlined_call_operand.vmem [shape: bf16[512,128], index: 0, kind: input, shape index: {}]   ;;  %s2264_s1 = inlined_call_operand.vmem [shape: f32[1,128], index: 1, kind: input, shape index: {}]   ;;  %s2265_s2 = inlined_call_operand.vmem [shape: f32[1,128], index: 2, kind: input, shape index: {}]   ;;  %s2266_s5 = inlined_call_operand.vmem [shape: f32[512,128], index: 5, kind: output, shape index: {}]  }
   0x1   :  { %v1433_v0 = vld [vmem:[%s2261_s4] sm:$0xff]   ;;  %v1434_v1 = vld [vmem:[%s2261_s4 + $0x8] sm:$0xff]   ;;  %v1435_v2 = vld [vmem:[%s2261_s4 + $0x10] sm:$0xff]  }
   0x2   :  { %1337 = vmatprep.subr.bf16.mxu0 %v1433_v0  ;;  %1417 = vmatprep.subr.bf16.mxu1 %v1433_v0  ;;  %v1436_v3 = vld [vmem:[%s2261_s4 + $0x18] sm:$0xff]   ;;  %v1441_v4 = vld [vmem:[%s2262_s3] sm:$0xff]   ;;  %v1438_v7 = vld [vmem:[%s2261_s4 + $0x28] sm:$0xff]  }
   0x3   :  { %1338 = vmatpush3.bf16.msra.mxu0 %v1433_v0  ;;  %1425 = vmatpush3.bf16.msra.mxu1 %v1433_v0  ;;  %v1442_v5 = vld [vmem:[%s2262_s3 + $0x80] sm:$0xff]   ;;  %v1439_v8 = vld [vmem:[%s2261_s4 + $0x30] sm:$0xff]   ;;  %v1440_v9 = vld [vmem:[%s2261_s4 + $0x38] sm:$0xff]  }
   0x4   :  { %1339 = vmatprep.subr.bf16.mxu0 %v1434_v1  ;;  %1418 = vmatprep.subr.bf16.mxu1 %v1434_v1  ;;  %v1437_v6 = vld [vmem:[%s2261_s4 + $0x20] sm:$0xff]   ;;  %v1443_v10 = vld [vmem:[%s2262_s3 + $0x8] sm:$0xff]   ;;  %v1445_v12 = vld [vmem:[%s2262_s3 + $0x10] sm:$0xff]  }
   0x5   :  { %1353 = vmatprep.mubr.bf16.mxu0 %v1441_v4  ;;  %1385 = vmatprep.mubr.bf16.mxu1 %v1442_v5  ;;  %v1444_v11 = vld [vmem:[%s2262_s3 + $0x88] sm:$0xff]   ;;  %v1446_v13 = vld [vmem:[%s2262_s3 + $0x90] sm:$0xff]   ;;  %v1447_v14 = vld [vmem:[%s2262_s3 + $0x18] sm:$0xff]  }
   0x6   :  { %v1448_v15 = vld [vmem:[%s2262_s3 + $0x98] sm:$0xff]   ;;  %v1449_v16 = vld [vmem:[%s2262_s3 + $0x20] sm:$0xff]   ;;  %v1451_v18 = vld [vmem:[%s2262_s3 + $0x28] sm:$0xff]  }
   0x7   :  { %1340 = vmatpush3.bf16.msra.mxu0 %v1434_v1  ;;  %1426 = vmatpush3.bf16.msra.mxu1 %v1434_v1  ;;  %v1450_v17 = vld [vmem:[%s2262_s3 + $0xa0] sm:$0xff]   ;;  %v1452_v19 = vld [vmem:[%s2262_s3 + $0xa8] sm:$0xff]   ;;  %v1453_v20 = vld [vmem:[%s2262_s3 + $0x30] sm:$0xff]  }
   0x8   :  { %1341 = vmatprep.subr.bf16.mxu0 %v1435_v2  ;;  %1419 = vmatprep.subr.bf16.mxu1 %v1435_v2  ;;  %v1454_v21 = vld [vmem:[%s2262_s3 + $0xb0] sm:$0xff]   ;;  %v1455_v22 = vld [vmem:[%s2262_s3 + $0x38] sm:$0xff]   ;;  %v1457_v24 = vld [vmem:[%s2262_s3 + $0x40] sm:$0xff]  }
   0x9   :  { %v1456_v23 = vld [vmem:[%s2262_s3 + $0xb8] sm:$0xff]   ;;  %v1458_v25 = vld [vmem:[%s2262_s3 + $0xc0] sm:$0xff]   ;;  %v1459_v26 = vld [vmem:[%s2262_s3 + $0x48] sm:$0xff]  }
   0xa   :  { %v1460_v27 = vld [vmem:[%s2262_s3 + $0xc8] sm:$0xff]   ;;  %v1461_v28 = vld [vmem:[%s2262_s3 + $0x50] sm:$0xff]   ;;  %v1463_v30 = vld [vmem:[%s2262_s3 + $0x58] sm:$0xff]  }
   0xb   :  { %1342 = vmatpush3.bf16.msra.mxu0 %v1435_v2  ;;  %1427 = vmatpush3.bf16.msra.mxu1 %v1435_v2  ;;  %v1462_v29 = vld [vmem:[%s2262_s3 + $0xd0] sm:$0xff]   ;;  %v1464_v31 = vld [vmem:[%s2262_s3 + $0xd8] sm:$0xff]   ;;  %v1465_v32 = vld [vmem:[%s2262_s3 + $0x60] sm:$0xff]  }
   0xc   :  { %1343 = vmatprep.subr.bf16.mxu0 %v1436_v3  ;;  %1420 = vmatprep.subr.bf16.mxu1 %v1436_v3  ;;  %v1466_v33 = vld [vmem:[%s2262_s3 + $0xe0] sm:$0xff]   ;;  %v1467_v34 = vld [vmem:[%s2262_s3 + $0x68] sm:$0xff]   ;;  %v1469_v36 = vld [vmem:[%s2262_s3 + $0x70] sm:$0xff]  }
   0xd   :  { %v1468_v35 = vld [vmem:[%s2262_s3 + $0xe8] sm:$0xff]   ;;  %v1470_v37 = vld [vmem:[%s2262_s3 + $0xf0] sm:$0xff]   ;;  %v1471_v38 = vld [vmem:[%s2262_s3 + $0x78] sm:$0xff]  }
   0xe   :  { %v1472_v39 = vld [vmem:[%s2262_s3 + $0xf8] sm:$0xff]   ;;  %v1266_v40 = vld [vmem:[%s2263_s0 + $0x8] sm:$0xff]   ;;  %v1139_v42 = vld [vmem:[%s2263_s0] sm:$0xff]  }
   0xf   :  { %1344 = vmatpush3.bf16.msra.mxu0 %v1436_v3  ;;  %1428 = vmatpush3.bf16.msra.mxu1 %v1436_v3  ;;  %v1282_v41 = vld [vmem:[%s2263_s0 + $0x88] sm:$0xff]   ;;  %v1281_v43 = vld [vmem:[%s2263_s0 + $0x80] sm:$0xff]   ;;  %v1144_v44 = vunpack.c.l.bf16 %v1266_v40  ;;  %v1140_v47 = vunpack.c.l.bf16 %v1139_v42  ;;  %v1145_v49 = vunpack.c.h.bf16 %v1266_v40  ;;  %v1268_v51 = vld [vmem:[%s2263_s0 + $0x18] sm:$0xff]   ;;  %v1141_v53 = vunpack.c.h.bf16 %v1139_v42 }
  0x10   :  { %1345 = vmatprep.subr.bf16.mxu0 %v1437_v6  ;;  %1421 = vmatprep.subr.bf16.mxu1 %v1437_v6  ;;  %v1208_v45 = vunpack.c.l.bf16 %v1282_v41  ;;  %v1638_v46 = vld [vmem:[%s2264_s1] ss:$0 sm:$0xff]  ;;  %v1204_v48 = vunpack.c.l.bf16 %v1281_v43  ;;  %v1209_v50 = vunpack.c.h.bf16 %v1282_v41  ;;  %v1284_v52 = vld [vmem:[%s2263_s0 + $0x98] sm:$0xff]   ;;  %v1205_v54 = vunpack.c.h.bf16 %v1281_v43  ;;  %v1267_v59 = vld [vmem:[%s2263_s0 + $0x10] sm:$0xff]  }
  0x11   :  { %v158_v55 = vmul.f32 %v1144_v44, %v1638_v46  ;;  %v1152_v57 = vunpack.c.l.bf16 %v1268_v51  ;;  %v1216_v58 = vunpack.c.l.bf16 %v1284_v52  ;;  %v1283_v60 = vld [vmem:[%s2263_s0 + $0x90] sm:$0xff]   ;;  %v1657_v61 = vld [vmem:[%s2265_s2] ss:$0 sm:$0xff]  ;;  %v156_v62 = vmul.f32 %v1140_v47, %v1638_v46 }
  0x12   :  { %v190_v56 = vmul.f32 %v1208_v45, %v1638_v46  ;;  %v188_v63 = vmul.f32 %v1204_v48, %v1638_v46  ;;  %v159_v0 = vmul.f32 %v1145_v49, %v1638_v46  ;;  %v191_v1 = vmul.f32 %v1209_v50, %v1638_v46  ;;  %v1738_v49 = vld [vmem:[%s2263_s0 + $0x30] sm:$0xff]  }
  0x13   :  { %1346 = vmatpush3.bf16.msra.mxu0 %v1437_v6  ;;  %1429 = vmatpush3.bf16.msra.mxu1 %v1437_v6  ;;  %v157_v2 = vmul.f32 %v1141_v53, %v1638_v46  ;;  %v189_v3 = vmul.f32 %v1205_v54, %v1638_v46  ;;  %v1148_v4 = vunpack.c.l.bf16 %v1267_v59  ;;  %v1212_v5 = vunpack.c.l.bf16 %v1283_v60  ;;  %v1743_v50 = vld [vmem:[%s2263_s0 + $0xb0] sm:$0xff]  }
  0x14   :  { %1347 = vmatprep.subr.bf16.mxu0 %v1438_v7  ;;  %1422 = vmatprep.subr.bf16.mxu1 %v1438_v7  ;;  %v1666_v6 = vadd.f32 %v1657_v61, %v158_v55 }
  0x17   :  { %1348 = vmatpush3.bf16.msra.mxu0 %v1438_v7  ;;  %1430 = vmatpush3.bf16.msra.mxu1 %v1438_v7  ;;  %v1669_v7 = vadd.f32 %v1657_v61, %v190_v56 }
  0x18   :  { %1349 = vmatprep.subr.bf16.mxu0 %v1439_v8  ;;  %1423 = vmatprep.subr.bf16.mxu1 %v1439_v8 }
  0x1b   :  { %1350 = vmatpush3.bf16.msra.mxu0 %v1439_v8  ;;  %1431 = vmatpush3.bf16.msra.mxu1 %v1439_v8  ;;  %v162_v8 = vmul.f32 %v1152_v57, %v1638_v46 }
  0x1c   :  { %1351 = vmatprep.subr.bf16.mxu0 %v1440_v9  ;;  %1424 = vmatprep.subr.bf16.mxu1 %v1440_v9 }
  0x1f   :  { %1352 = vmatpush3.bf16.msra.mxu0 %v1440_v9  ;;  %1432 = vmatpush3.bf16.msra.mxu1 %v1440_v9  ;;  %v194_v9 = vmul.f32 %v1216_v58, %v1638_v46 }
  0x22   :  { %1354 = vmatmul.mubr.bf16.vlgmr.msra.gmra.mrb[0].mxu0 %v1443_v10  ;;  %1386 = vmatmul.mubr.bf16.vlgmr.msra.gmra.mrb[0].mxu1 %v1444_v11  ;;  %v1674_v10 = vadd.f32 %v1657_v61, %v156_v62  ;;  %v1677_v11 = vadd.f32 %v1657_v61, %v188_v63  ;;  %v1164_v62 = vunpack.c.l.bf16 %v1738_v49  ;;  %v1228_v63 = vunpack.c.l.bf16 %v1743_v50 }
  0x23   :  { %1357 = vmatprep.mubr.bf16.mxu0 %v1445_v12  ;;  %1389 = vmatprep.mubr.bf16.mxu1 %v1446_v13  ;;  %v1680_v12 = vadd.f32 %v1657_v61, %v159_v0  ;;  %v1683_v13 = vadd.f32 %v1657_v61, %v191_v1 }
  0x2a   :  { %1358 = vmatmul.mubr.bf16.gmra.mrb[4].mxu0 %v1447_v14  ;;  %1390 = vmatmul.mubr.bf16.gmra.mrb[4].mxu1 %v1448_v15  ;;  %v1270_v14 = vld [vmem:[%s2263_s0 + $0x28] sm:$0xff]  }
  0x2b   :  { %1361 = vmatprep.mubr.bf16.mxu0 %v1449_v16  ;;  %1393 = vmatprep.mubr.bf16.mxu1 %v1450_v17  ;;  %v1286_v15 = vld [vmem:[%s2263_s0 + $0xa8] sm:$0xff]   ;;  %v1692_v16 = vadd.f32 %v1657_v61, %v157_v2  ;;  %v1695_v17 = vadd.f32 %v1657_v61, %v189_v3 }
  0x32   :  { %1362 = vmatmul.mubr.bf16.gmra.mrb[8].mxu0 %v1451_v18  ;;  %1394 = vmatmul.mubr.bf16.gmra.mrb[8].mxu1 %v1452_v19  ;;  %v1153_v18 = vunpack.c.h.bf16 %v1268_v51  ;;  %v1217_v19 = vunpack.c.h.bf16 %v1284_v52 }
  0x33   :  { %1365 = vmatprep.mubr.bf16.mxu0 %v1453_v20  ;;  %1397 = vmatprep.mubr.bf16.mxu1 %v1454_v21  ;;  %v1269_v20 = vld [vmem:[%s2263_s0 + $0x20] sm:$0xff]  }
  0x34   :  { %v1285_v21 = vld [vmem:[%s2263_s0 + $0xa0] sm:$0xff]  }
  0x3a   :  { %1366 = vmatmul.mubr.bf16.gmra.mrb[12].mxu0 %v1455_v22  ;;  %1398 = vmatmul.mubr.bf16.gmra.mrb[12].mxu1 %v1456_v23  ;;  %v160_v22 = vmul.f32 %v1148_v4, %v1638_v46  ;;  %v192_v23 = vmul.f32 %v1212_v5, %v1638_v46 }
  0x3b   :  { %1369 = vmatprep.mubr.bf16.mxu0 %v1457_v24  ;;  %1401 = vmatprep.mubr.bf16.mxu1 %v1458_v25  ;;  %v1149_v24 = vunpack.c.h.bf16 %v1267_v59  ;;  %v1213_v25 = vunpack.c.h.bf16 %v1283_v60 }
  0x3c   :  { %v1724_v40 = vadd.f32 %v1657_v61, %v160_v22  ;;  %v1727_v41 = vadd.f32 %v1657_v61, %v192_v23 }
  0x3d   :  { %v161_v42 = vmul.f32 %v1149_v24, %v1638_v46  ;;  %v193_v43 = vmul.f32 %v1213_v25, %v1638_v46  ;;  %v168_v24 = vmul.f32 %v1164_v62, %v1638_v46  ;;  %v200_v25 = vmul.f32 %v1228_v63, %v1638_v46 }
  0x3f   :  { %v1758_v59 = vadd.f32 %v1657_v61, %v161_v42  ;;  %v1761_v60 = vadd.f32 %v1657_v61, %v193_v43  ;;  %v1827_v43 = vld [vmem:[%s2263_s0 + $0xc0] sm:$0xff]   ;;  %v1856_v62 = vadd.f32 %v1657_v61, %v168_v24  ;;  %v1859_v63 = vadd.f32 %v1657_v61, %v200_v25 }
  0x42   :  { %1370 = vmatmul.mubr.bf16.gmra.mrb[16].mxu0 %v1459_v26  ;;  %1402 = vmatmul.mubr.bf16.gmra.mrb[16].mxu1 %v1460_v27  ;;  %v1706_v26 = vadd.f32 %v1657_v61, %v162_v8  ;;  %v1709_v27 = vadd.f32 %v1657_v61, %v194_v9 }
  0x43   :  { %1373 = vmatprep.mubr.bf16.mxu0 %v1461_v28  ;;  %1405 = vmatprep.mubr.bf16.mxu1 %v1462_v29  ;;  %v1160_v28 = vunpack.c.l.bf16 %v1270_v14  ;;  %v1224_v29 = vunpack.c.l.bf16 %v1286_v15 }
  0x45   :  { %v166_v44 = vmul.f32 %v1160_v28, %v1638_v46  ;;  %v198_v45 = vmul.f32 %v1224_v29, %v1638_v46  ;;  %v1165_v28 = vunpack.c.h.bf16 %v1738_v49  ;;  %v1229_v29 = vunpack.c.h.bf16 %v1743_v50 }
  0x47   :  { %v1766_v0 = vadd.f32 %v1657_v61, %v166_v44  ;;  %v1769_v1 = vadd.f32 %v1657_v61, %v198_v45 }
  0x4a   :  { %1374 = vmatmul.mubr.bf16.gmra.mrb[20].mxu0 %v1463_v30  ;;  %1406 = vmatmul.mubr.bf16.gmra.mrb[20].mxu1 %v1464_v31  ;;  %v1156_v30 = vunpack.c.l.bf16 %v1269_v20  ;;  %v1220_v31 = vunpack.c.l.bf16 %v1285_v21 }
  0x4b   :  { %1377 = vmatprep.mubr.bf16.mxu0 %v1465_v32  ;;  %1409 = vmatprep.mubr.bf16.mxu1 %v1466_v33  ;;  %v1161_v32 = vunpack.c.h.bf16 %v1270_v14  ;;  %v1225_v33 = vunpack.c.h.bf16 %v1286_v15 }
  0x4c   :  { %v164_v51 = vmul.f32 %v1156_v30, %v1638_v46  ;;  %v196_v52 = vmul.f32 %v1220_v31, %v1638_v46 }
  0x4d   :  { %v167_v53 = vmul.f32 %v1161_v32, %v1638_v46  ;;  %v199_v54 = vmul.f32 %v1225_v33, %v1638_v46 }
  0x4e   :  { %v1774_v4 = vadd.f32 %v1657_v61, %v164_v51  ;;  %v1777_v5 = vadd.f32 %v1657_v61, %v196_v52 }
  0x4f   :  { %v1780_v8 = vadd.f32 %v1657_v61, %v167_v53  ;;  %v1783_v9 = vadd.f32 %v1657_v61, %v199_v54  ;;  %v1236_v54 = vunpack.c.l.bf16 %v1827_v43 }
  0x52   :  { %1378 = vmatmul.mubr.bf16.gmra.mrb[24].mxu0 %v1467_v34  ;;  %1410 = vmatmul.mubr.bf16.gmra.mrb[24].mxu1 %v1468_v35  ;;  %v1714_v34 = vld [vmem:[%s2263_s0 + $0x38] sm:$0xff]  }
  0x53   :  { %1381 = vmatprep.mubr.bf16.mxu0 %v1469_v36  ;;  %1413 = vmatprep.mubr.bf16.mxu1 %v1470_v37  ;;  %v1719_v35 = vld [vmem:[%s2263_s0 + $0xb8] sm:$0xff]   ;;  %v163_v36 = vmul.f32 %v1153_v18, %v1638_v46  ;;  %v195_v37 = vmul.f32 %v1217_v19, %v1638_v46  ;;  %v1168_v47 = vunpack.c.l.bf16 %v1714_v34  ;;  %v1169_v18 = vunpack.c.h.bf16 %v1714_v34 }
  0x54   :  { %v1232_v48 = vunpack.c.l.bf16 %v1719_v35  ;;  %v1233_v19 = vunpack.c.h.bf16 %v1719_v35 }
  0x55   :  { %v1750_v55 = vadd.f32 %v1657_v61, %v163_v36  ;;  %v1753_v56 = vadd.f32 %v1657_v61, %v195_v37  ;;  %v170_v2 = vmul.f32 %v1168_v47, %v1638_v46 }
  0x56   :  { %v202_v3 = vmul.f32 %v1232_v48, %v1638_v46 }
  0x57   :  { %v1810_v34 = vadd.f32 %v1657_v61, %v170_v2  ;;  %v169_v2 = vmul.f32 %v1165_v28, %v1638_v46 }
  0x58   :  { %v1813_v35 = vadd.f32 %v1657_v61, %v202_v3  ;;  %v201_v3 = vmul.f32 %v1229_v29, %v1638_v46 }
  0x5a   :  { %1382 = vmatmul.mubr.bf16.gmra.mrb[28].mxu0 %v1471_v38  ;;  %1414 = vmatmul.mubr.bf16.gmra.mrb[28].mxu1 %v1472_v39  ;;  %v1157_v38 = vunpack.c.h.bf16 %v1269_v20  ;;  %v1221_v39 = vunpack.c.h.bf16 %v1285_v21  ;;  %v1796_v20 = vld [vmem:[%s2263_s0 + $0x48] sm:$0xff]  }
  0x5b   :  { %v1801_v21 = vld [vmem:[%s2263_s0 + $0xc8] sm:$0xff]   ;;  %v1176_v42 = vunpack.c.l.bf16 %v1796_v20  ;;  %v1177_v24 = vunpack.c.h.bf16 %v1796_v20 }
  0x5c   :  { %v165_v57 = vmul.f32 %v1157_v38, %v1638_v46  ;;  %v197_v58 = vmul.f32 %v1221_v39, %v1638_v46  ;;  %v1241_v25 = vunpack.c.h.bf16 %v1801_v21 }
  0x5e   :  { %v1786_v14 = vadd.f32 %v1657_v61, %v165_v57  ;;  %v1789_v15 = vadd.f32 %v1657_v61, %v197_v58  ;;  %v171_v57 = vmul.f32 %v1169_v18, %v1638_v46  ;;  %v203_v58 = vmul.f32 %v1233_v19, %v1638_v46 }
  0xf5   :  { %v1355_v22 = vpop.f32.mrb[0].mxu0  ;;  %v1387_v23 = vpop.f32.mrb[0].mxu1 }
  0xf6   :  { %v902_v30 = vadd.f32 %v1355_v22, %v1666_v6  ;;  %v934_v31 = vadd.f32 %v1387_v23, %v1669_v7  ;;  %v645_v32 = vpop.f32.mrb[1].mxu0  ;;  %v773_v33 = vpop.f32.mrb[1].mxu1  ;;  %v1240_v6 = vunpack.c.l.bf16 %v1801_v21  ;;  %v1822_v7 = vld [vmem:[%s2263_s0 + $0x40] sm:$0xff]   ;;  %v174_v22 = vmul.f32 %v1176_v42, %v1638_v46 }
  0xf7   :  { %v900_v36 = vadd.f32 %v645_v32, %v1674_v10  ;;  %v932_v37 = vadd.f32 %v773_v33, %v1677_v11  ;;  %v1356_v38 = vpop.f32.mrb[2].mxu0  ;;  %v1388_v39 = vpop.f32.mrb[2].mxu1  ;;  %v204_v33 = vmul.f32 %v1236_v54, %v1638_v46  ;;  %v1173_v20 = vunpack.c.h.bf16 %v1822_v7  ;;  %v1941_v54 = vld [vmem:[%s2263_s0 + $0xd0] sm:$0xff]  }
  0xf8   :  { %v966_v44 = vmax.f32 %v902_v30, 0.0  ;;  %v998_v10 = vmax.f32 %v934_v31, 0.0  ;;  %v903_v11 = vadd.f32 %v1356_v38, %v1680_v12  ;;  %v935_v45 = vadd.f32 %v1388_v39, %v1683_v13  ;;  %v648_v47 = vpop.f32.mrb[3].mxu0  ;;  %v776_v48 = vpop.f32.mrb[3].mxu1 }
  0xf9   :  { %v964_v49 = vmax.f32 %v900_v36, 0.0  ;;  %v996_v50 = vmax.f32 %v932_v37, 0.0  ;;  %v901_v51 = vadd.f32 %v648_v47, %v1692_v16  ;;  %v933_v52 = vadd.f32 %v776_v48, %v1695_v17 }
  0xfa   :  { %1030 = vst [vmem:[%s2266_s5 + $0x10] sm:$0xff] %v966_v44  ;;  %1062 = vst [vmem:[%s2266_s5 + $0x110] sm:$0xff] %v998_v10  ;;  %v967_v53 = vmax.f32 %v903_v11, 0.0  ;;  %v999_v12 = vmax.f32 %v935_v45, 0.0  ;;  %v1172_v13 = vunpack.c.l.bf16 %v1822_v7  ;;  %v206_v23 = vmul.f32 %v1240_v6, %v1638_v46 }
  0xfb   :  { %1028 = vst [vmem:[%s2266_s5] sm:$0xff] %v964_v49  ;;  %1060 = vst [vmem:[%s2266_s5 + $0x100] sm:$0xff] %v996_v50  ;;  %v965_v16 = vmax.f32 %v901_v51, 0.0  ;;  %v997_v17 = vmax.f32 %v933_v52, 0.0  ;;  %v1237_v21 = vunpack.c.h.bf16 %v1827_v43  ;;  %v1895_v43 = vadd.f32 %v1657_v61, %v203_v58  ;;  %v1912_v49 = vld [vmem:[%s2263_s0 + $0x58] sm:$0xff]  }
  0xfc   :  { %1031 = vst [vmem:[%s2266_s5 + $0x18] sm:$0xff] %v967_v53  ;;  %1063 = vst [vmem:[%s2266_s5 + $0x118] sm:$0xff] %v999_v12  ;;  %v172_v32 = vmul.f32 %v1172_v13, %v1638_v46  ;;  %v1904_v47 = vadd.f32 %v1657_v61, %v169_v2  ;;  %v1907_v48 = vadd.f32 %v1657_v61, %v201_v3  ;;  %v1917_v50 = vld [vmem:[%s2263_s0 + $0xd8] sm:$0xff]   ;;  %v1936_v13 = vld [vmem:[%s2263_s0 + $0x50] sm:$0xff]  }
  0xfd   :  { %1029 = vst [vmem:[%s2266_s5 + $0x8] sm:$0xff] %v965_v16  ;;  %1061 = vst [vmem:[%s2266_s5 + $0x108] sm:$0xff] %v997_v17  ;;  %v1359_v18 = vpop.f32.mrb[4].mxu0  ;;  %v1391_v19 = vpop.f32.mrb[4].mxu1  ;;  %v1926_v51 = vadd.f32 %v1657_v61, %v174_v22  ;;  %v1929_v52 = vadd.f32 %v1657_v61, %v206_v23  ;;  %v175_v53 = vmul.f32 %v1177_v24, %v1638_v46  ;;  %v1184_v24 = vunpack.c.l.bf16 %v1912_v49 }
  0xfe   :  { %v906_v28 = vadd.f32 %v1359_v18, %v1706_v26  ;;  %v938_v29 = vadd.f32 %v1391_v19, %v1709_v27  ;;  %v661_v30 = vpop.f32.mrb[5].mxu0  ;;  %v789_v31 = vpop.f32.mrb[5].mxu1  ;;  %v207_v12 = vmul.f32 %v1241_v25, %v1638_v46  ;;  %v1953_v58 = vadd.f32 %v1657_v61, %v204_v33 }
  0xff   :  { %v904_v36 = vadd.f32 %v661_v30, %v1724_v40  ;;  %v936_v37 = vadd.f32 %v789_v31, %v1727_v41  ;;  %v1360_v38 = vpop.f32.mrb[6].mxu0  ;;  %v1392_v39 = vpop.f32.mrb[6].mxu1  ;;  %v173_v2 = vmul.f32 %v1173_v20, %v1638_v46  ;;  %v205_v3 = vmul.f32 %v1237_v21, %v1638_v46 }
 0x100   :  { %v970_v42 = vmax.f32 %v906_v28, 0.0  ;;  %v1002_v26 = vmax.f32 %v938_v29, 0.0  ;;  %v907_v27 = vadd.f32 %v1360_v38, %v1750_v55  ;;  %v939_v6 = vadd.f32 %v1392_v39, %v1753_v56  ;;  %v664_v44 = vpop.f32.mrb[7].mxu0  ;;  %v792_v10 = vpop.f32.mrb[7].mxu1 }
 0x101   :  { %v968_v11 = vmax.f32 %v904_v36, 0.0  ;;  %v1000_v45 = vmax.f32 %v936_v37, 0.0  ;;  %v905_v40 = vadd.f32 %v664_v44, %v1758_v59  ;;  %v937_v41 = vadd.f32 %v792_v10, %v1761_v60 }
 0x102   :  { %1034 = vst [vmem:[%s2266_s5 + $0x30] sm:$0xff] %v970_v42  ;;  %1066 = vst [vmem:[%s2266_s5 + $0x130] sm:$0xff] %v1002_v26  ;;  %v971_v7 = vmax.f32 %v907_v27, 0.0  ;;  %v1003_v55 = vmax.f32 %v939_v6, 0.0  ;;  %v1892_v56 = vadd.f32 %v1657_v61, %v171_v57  ;;  %v1950_v57 = vadd.f32 %v1657_v61, %v172_v32 }
 0x103   :  { %1032 = vst [vmem:[%s2266_s5 + $0x20] sm:$0xff] %v968_v11  ;;  %1064 = vst [vmem:[%s2266_s5 + $0x120] sm:$0xff] %v1000_v45  ;;  %v969_v59 = vmax.f32 %v905_v40, 0.0  ;;  %v1001_v60 = vmax.f32 %v937_v41, 0.0  ;;  %v1248_v25 = vunpack.c.l.bf16 %v1917_v50  ;;  %v1180_v32 = vunpack.c.l.bf16 %v1936_v13  ;;  %v2006_v40 = vld [vmem:[%s2263_s0 + $0x68] sm:$0xff]  }
 0x104   :  { %1035 = vst [vmem:[%s2266_s5 + $0x38] sm:$0xff] %v971_v7  ;;  %1067 = vst [vmem:[%s2266_s5 + $0x138] sm:$0xff] %v1003_v55  ;;  %v1244_v33 = vunpack.c.l.bf16 %v1941_v54  ;;  %v1984_v27 = vadd.f32 %v1657_v61, %v175_v53  ;;  %v1987_v6 = vadd.f32 %v1657_v61, %v207_v12  ;;  %v1996_v44 = vadd.f32 %v1657_v61, %v173_v2  ;;  %v2011_v41 = vld [vmem:[%s2263_s0 + $0xe8] sm:$0xff]  }
 0x105   :  { %1033 = vst [vmem:[%s2266_s5 + $0x28] sm:$0xff] %v969_v59  ;;  %1065 = vst [vmem:[%s2266_s5 + $0x128] sm:$0xff] %v1001_v60  ;;  %v1363_v16 = vpop.f32.mrb[8].mxu0  ;;  %v1395_v17 = vpop.f32.mrb[8].mxu1  ;;  %v210_v26 = vmul.f32 %v1248_v25, %v1638_v46  ;;  %v1999_v10 = vadd.f32 %v1657_v61, %v205_v3  ;;  %v1185_v11 = vunpack.c.h.bf16 %v1912_v49  ;;  %v1249_v45 = vunpack.c.h.bf16 %v1917_v50 }
 0x106   :  { %v910_v18 = vadd.f32 %v1363_v16, %v1766_v0  ;;  %v942_v19 = vadd.f32 %v1395_v17, %v1769_v1  ;;  %v677_v22 = vpop.f32.mrb[9].mxu0  ;;  %v805_v23 = vpop.f32.mrb[9].mxu1  ;;  %v176_v59 = vmul.f32 %v1180_v32, %v1638_v46  ;;  %v208_v60 = vmul.f32 %v1244_v33, %v1638_v46 }
 0x107   :  { %v908_v28 = vadd.f32 %v677_v22, %v1774_v4  ;;  %v940_v29 = vadd.f32 %v805_v23, %v1777_v5  ;;  %v1364_v30 = vpop.f32.mrb[10].mxu0  ;;  %v1396_v31 = vpop.f32.mrb[10].mxu1  ;;  %v1181_v49 = vunpack.c.h.bf16 %v1936_v13  ;;  %v1245_v50 = vunpack.c.h.bf16 %v1941_v54  ;;  %v2043_v23 = vld [vmem:[%s2263_s0 + $0xe0] sm:$0xff]  }
 0x108   :  { %v974_v36 = vmax.f32 %v910_v18, 0.0  ;;  %v1006_v0 = vmax.f32 %v942_v19, 0.0  ;;  %v911_v1 = vadd.f32 %v1364_v30, %v1780_v8  ;;  %v943_v37 = vadd.f32 %v1396_v31, %v1783_v9  ;;  %v680_v38 = vpop.f32.mrb[11].mxu0  ;;  %v808_v39 = vpop.f32.mrb[11].mxu1 }
 0x109   :  { %v972_v20 = vmax.f32 %v908_v28, 0.0  ;;  %v1004_v21 = vmax.f32 %v940_v29, 0.0  ;;  %v909_v4 = vadd.f32 %v680_v38, %v1786_v14  ;;  %v941_v5 = vadd.f32 %v808_v39, %v1789_v15 }
 0x10a   :  { %1038 = vst [vmem:[%s2266_s5 + $0x50] sm:$0xff] %v974_v36  ;;  %1070 = vst [vmem:[%s2266_s5 + $0x150] sm:$0xff] %v1006_v0  ;;  %v975_v42 = vmax.f32 %v911_v1, 0.0  ;;  %v1007_v8 = vmax.f32 %v943_v37, 0.0  ;;  %v178_v9 = vmul.f32 %v1184_v24, %v1638_v46  ;;  %v2029_v3 = vadd.f32 %v1657_v61, %v210_v26 }
 0x10b   :  { %1036 = vst [vmem:[%s2266_s5 + $0x40] sm:$0xff] %v972_v20  ;;  %1068 = vst [vmem:[%s2266_s5 + $0x140] sm:$0xff] %v1004_v21  ;;  %v973_v14 = vmax.f32 %v909_v4, 0.0  ;;  %v1005_v15 = vmax.f32 %v941_v5, 0.0  ;;  %v1192_v54 = vunpack.c.l.bf16 %v2006_v40  ;;  %v1252_v0 = vunpack.c.l.bf16 %v2043_v23 }
 0x10c   :  { %1039 = vst [vmem:[%s2266_s5 + $0x58] sm:$0xff] %v975_v42  ;;  %1071 = vst [vmem:[%s2266_s5 + $0x158] sm:$0xff] %v1007_v8  ;;  %v2026_v2 = vadd.f32 %v1657_v61, %v178_v9  ;;  %v179_v1 = vmul.f32 %v1185_v11, %v1638_v46  ;;  %v211_v37 = vmul.f32 %v1249_v45, %v1638_v46  ;;  %v1193_v9 = vunpack.c.h.bf16 %v2006_v40 }
 0x10d   :  { %1037 = vst [vmem:[%s2266_s5 + $0x48] sm:$0xff] %v973_v14  ;;  %1069 = vst [vmem:[%s2266_s5 + $0x148] sm:$0xff] %v1005_v15  ;;  %v1367_v7 = vpop.f32.mrb[12].mxu0  ;;  %v1399_v55 = vpop.f32.mrb[12].mxu1  ;;  %v2072_v38 = vadd.f32 %v1657_v61, %v176_v59  ;;  %v2075_v39 = vadd.f32 %v1657_v61, %v208_v60  ;;  %v177_v20 = vmul.f32 %v1181_v49, %v1638_v46  ;;  %v1257_v26 = vunpack.c.h.bf16 %v2011_v41 }
 0x10e   :  { %v914_v53 = vadd.f32 %v1367_v7, %v1810_v34  ;;  %v946_v12 = vadd.f32 %v1399_v55, %v1813_v35  ;;  %v693_v16 = vpop.f32.mrb[13].mxu0  ;;  %v821_v17 = vpop.f32.mrb[13].mxu1  ;;  %v1256_v34 = vunpack.c.l.bf16 %v2011_v41  ;;  %v2038_v35 = vld [vmem:[%s2263_s0 + $0x60] sm:$0xff]   ;;  %v209_v21 = vmul.f32 %v1245_v50, %v1638_v46 }
 0x10f   :  { %v912_v18 = vadd.f32 %v693_v16, %v1856_v62  ;;  %v944_v19 = vadd.f32 %v821_v17, %v1859_v63  ;;  %v1368_v22 = vpop.f32.mrb[14].mxu0  ;;  %v1400_v13 = vpop.f32.mrb[14].mxu1  ;;  %v182_v42 = vmul.f32 %v1192_v54, %v1638_v46  ;;  %v212_v55 = vmul.f32 %v1252_v0, %v1638_v46 }
 0x110   :  { %v978_v24 = vmax.f32 %v914_v53, 0.0  ;;  %v1010_v62 = vmax.f32 %v946_v12, 0.0  ;;  %v915_v63 = vadd.f32 %v1368_v22, %v1892_v56  ;;  %v947_v25 = vadd.f32 %v1400_v13, %v1895_v43  ;;  %v696_v28 = vpop.f32.mrb[15].mxu0  ;;  %v824_v29 = vpop.f32.mrb[15].mxu1 }
 0x111   :  { %v976_v30 = vmax.f32 %v912_v18, 0.0  ;;  %v1008_v31 = vmax.f32 %v944_v19, 0.0  ;;  %v913_v32 = vadd.f32 %v696_v28, %v1904_v47  ;;  %v945_v33 = vadd.f32 %v824_v29, %v1907_v48  ;;  %v2140_v28 = vld [vmem:[%s2263_s0 + $0x70] sm:$0xff]  }
 0x112   :  { %1042 = vst [vmem:[%s2266_s5 + $0x70] sm:$0xff] %v978_v24  ;;  %1074 = vst [vmem:[%s2266_s5 + $0x170] sm:$0xff] %v1010_v62  ;;  %v979_v36 = vmax.f32 %v915_v63, 0.0  ;;  %v1011_v56 = vmax.f32 %v947_v25, 0.0  ;;  %v1188_v43 = vunpack.c.l.bf16 %v2038_v35  ;;  %v214_v8 = vmul.f32 %v1256_v34, %v1638_v46  ;;  %v2145_v29 = vld [vmem:[%s2263_s0 + $0xf0] sm:$0xff]  }
 0x113   :  { %1040 = vst [vmem:[%s2266_s5 + $0x60] sm:$0xff] %v976_v30  ;;  %1072 = vst [vmem:[%s2266_s5 + $0x160] sm:$0xff] %v1008_v31  ;;  %v977_v47 = vmax.f32 %v913_v32, 0.0  ;;  %v1009_v48 = vmax.f32 %v945_v33, 0.0  ;;  %v1189_v40 = vunpack.c.h.bf16 %v2038_v35  ;;  %v1253_v41 = vunpack.c.h.bf16 %v2043_v23  ;;  %v2120_v35 = vld [vmem:[%s2263_s0 + $0x78] sm:$0xff]  }
 0x114   :  { %1043 = vst [vmem:[%s2266_s5 + $0x78] sm:$0xff] %v979_v36  ;;  %1075 = vst [vmem:[%s2266_s5 + $0x178] sm:$0xff] %v1011_v56  ;;  %v180_v7 = vmul.f32 %v1188_v43, %v1638_v46  ;;  %v282_v13 = vadd.f32 %v1657_v61, %v211_v37  ;;  %v248_v54 = vadd.f32 %v1657_v61, %v177_v20  ;;  %v2125_v23 = vld [vmem:[%s2263_s0 + $0xf8] sm:$0xff]  }
 0x115   :  { %1041 = vst [vmem:[%s2266_s5 + $0x68] sm:$0xff] %v977_v47  ;;  %1073 = vst [vmem:[%s2266_s5 + $0x168] sm:$0xff] %v1009_v48  ;;  %v1371_v4 = vpop.f32.mrb[16].mxu0  ;;  %v1403_v5 = vpop.f32.mrb[16].mxu1  ;;  %v280_v34 = vadd.f32 %v1657_v61, %v209_v21  ;;  %v253_v24 = vadd.f32 %v1657_v61, %v182_v42  ;;  %v285_v62 = vadd.f32 %v1657_v61, %v214_v8  ;;  %v1264_v37 = vunpack.c.l.bf16 %v2125_v23 }
 0x116   :  { %v918_v14 = vadd.f32 %v1371_v4, %v1926_v51  ;;  %v950_v15 = vadd.f32 %v1403_v5, %v1929_v52  ;;  %v709_v11 = vpop.f32.mrb[17].mxu0  ;;  %v837_v45 = vpop.f32.mrb[17].mxu1  ;;  %v183_v63 = vmul.f32 %v1193_v9, %v1638_v46  ;;  %v215_v25 = vmul.f32 %v1257_v26, %v1638_v46 }
 0x117   :  { %v916_v59 = vadd.f32 %v709_v11, %v1950_v57  ;;  %v948_v60 = vadd.f32 %v837_v45, %v1953_v58  ;;  %v1372_v49 = vpop.f32.mrb[18].mxu0  ;;  %v1404_v50 = vpop.f32.mrb[18].mxu1  ;;  %v251_v32 = vadd.f32 %v1657_v61, %v180_v7  ;;  %v283_v33 = vadd.f32 %v1657_v61, %v212_v55 }
 0x118   :  { %v982_v53 = vmax.f32 %v918_v14, 0.0  ;;  %v1014_v51 = vmax.f32 %v950_v15, 0.0  ;;  %v919_v52 = vadd.f32 %v1372_v49, %v1984_v27  ;;  %v951_v12 = vadd.f32 %v1404_v50, %v1987_v6  ;;  %v712_v16 = vpop.f32.mrb[19].mxu0  ;;  %v840_v17 = vpop.f32.mrb[19].mxu1 }
 0x119   :  { %v980_v18 = vmax.f32 %v916_v59, 0.0  ;;  %v1012_v19 = vmax.f32 %v948_v60, 0.0  ;;  %v917_v57 = vadd.f32 %v712_v16, %v1996_v44  ;;  %v949_v58 = vadd.f32 %v840_v17, %v1999_v10 }
 0x11a   :  { %1046 = vst [vmem:[%s2266_s5 + $0x90] sm:$0xff] %v982_v53  ;;  %1078 = vst [vmem:[%s2266_s5 + $0x190] sm:$0xff] %v1014_v51  ;;  %v983_v22 = vmax.f32 %v919_v52, 0.0  ;;  %v1015_v27 = vmax.f32 %v951_v12, 0.0  ;;  %v250_v6 = vadd.f32 %v1657_v61, %v179_v1  ;;  %v181_v36 = vmul.f32 %v1189_v40, %v1638_v46 }
 0x11b   :  { %1044 = vst [vmem:[%s2266_s5 + $0x80] sm:$0xff] %v980_v18  ;;  %1076 = vst [vmem:[%s2266_s5 + $0x180] sm:$0xff] %v1012_v19  ;;  %v981_v44 = vmax.f32 %v917_v57, 0.0  ;;  %v1013_v10 = vmax.f32 %v949_v58, 0.0  ;;  %v213_v56 = vmul.f32 %v1253_v41, %v1638_v46  ;;  %v1200_v1 = vunpack.c.l.bf16 %v2120_v35 }
 0x11c   :  { %1047 = vst [vmem:[%s2266_s5 + $0x98] sm:$0xff] %v983_v22  ;;  %1079 = vst [vmem:[%s2266_s5 + $0x198] sm:$0xff] %v1015_v27  ;;  %v1196_v42 = vunpack.c.l.bf16 %v2140_v28  ;;  %v1260_v8 = vunpack.c.l.bf16 %v2145_v29  ;;  %v1201_v59 = vunpack.c.h.bf16 %v2120_v35  ;;  %v1265_v60 = vunpack.c.h.bf16 %v2125_v23 }
 0x11d   :  { %1045 = vst [vmem:[%s2266_s5 + $0x88] sm:$0xff] %v981_v44  ;;  %1077 = vst [vmem:[%s2266_s5 + $0x188] sm:$0xff] %v1013_v10  ;;  %v1375_v30 = vpop.f32.mrb[20].mxu0  ;;  %v1407_v31 = vpop.f32.mrb[20].mxu1  ;;  %v1197_v40 = vunpack.c.h.bf16 %v2140_v28  ;;  %v1261_v41 = vunpack.c.h.bf16 %v2145_v29  ;;  %v254_v53 = vadd.f32 %v1657_v61, %v183_v63  ;;  %v286_v51 = vadd.f32 %v1657_v61, %v215_v25 }
 0x11e   :  { %v922_v43 = vadd.f32 %v1375_v30, %v2026_v2  ;;  %v954_v0 = vadd.f32 %v1407_v31, %v2029_v3  ;;  %v725_v47 = vpop.f32.mrb[21].mxu0  ;;  %v853_v48 = vpop.f32.mrb[21].mxu1  ;;  %v252_v52 = vadd.f32 %v1657_v61, %v181_v36  ;;  %v284_v12 = vadd.f32 %v1657_v61, %v213_v56 }
 0x11f   :  { %v920_v20 = vadd.f32 %v725_v47, %v2072_v38  ;;  %v952_v21 = vadd.f32 %v853_v48, %v2075_v39  ;;  %v1376_v4 = vpop.f32.mrb[22].mxu0  ;;  %v1408_v5 = vpop.f32.mrb[22].mxu1  ;;  %v186_v18 = vmul.f32 %v1200_v1, %v1638_v46  ;;  %v218_v19 = vmul.f32 %v1264_v37, %v1638_v46 }
 0x120   :  { %v986_v9 = vmax.f32 %v922_v43, 0.0  ;;  %v1018_v2 = vmax.f32 %v954_v0, 0.0  ;;  %v923_v26 = vadd.f32 %v1376_v4, %v250_v6  ;;  %v955_v3 = vadd.f32 %v1408_v5, %v282_v13  ;;  %v728_v14 = vpop.f32.mrb[23].mxu0  ;;  %v856_v15 = vpop.f32.mrb[23].mxu1 }
 0x121   :  { %v984_v11 = vmax.f32 %v920_v20, 0.0  ;;  %v1016_v45 = vmax.f32 %v952_v21, 0.0  ;;  %v921_v7 = vadd.f32 %v728_v14, %v248_v54  ;;  %v953_v55 = vadd.f32 %v856_v15, %v280_v34 }
 0x122   :  { %1050 = vst [vmem:[%s2266_s5 + $0xb0] sm:$0xff] %v986_v9  ;;  %1082 = vst [vmem:[%s2266_s5 + $0x1b0] sm:$0xff] %v1018_v2  ;;  %v987_v38 = vmax.f32 %v923_v26, 0.0  ;;  %v1019_v39 = vmax.f32 %v955_v3, 0.0  ;;  %v184_v57 = vmul.f32 %v1196_v42, %v1638_v46  ;;  %v216_v58 = vmul.f32 %v1260_v8, %v1638_v46 }
 0x123   :  { %1048 = vst [vmem:[%s2266_s5 + $0xa0] sm:$0xff] %v984_v11  ;;  %1080 = vst [vmem:[%s2266_s5 + $0x1a0] sm:$0xff] %v1016_v45  ;;  %v985_v49 = vmax.f32 %v921_v7, 0.0  ;;  %v1017_v50 = vmax.f32 %v953_v55, 0.0  ;;  %v187_v44 = vmul.f32 %v1201_v59, %v1638_v46  ;;  %v219_v10 = vmul.f32 %v1265_v60, %v1638_v46 }
 0x124   :  { %1051 = vst [vmem:[%s2266_s5 + $0xb8] sm:$0xff] %v987_v38  ;;  %1083 = vst [vmem:[%s2266_s5 + $0x1b8] sm:$0xff] %v1019_v39  ;;  %v185_v63 = vmul.f32 %v1197_v40, %v1638_v46  ;;  %v217_v25 = vmul.f32 %v1261_v41, %v1638_v46  ;;  %v289_v47 = vadd.f32 %v1657_v61, %v218_v19 }
 0x125   :  { %1049 = vst [vmem:[%s2266_s5 + $0xa8] sm:$0xff] %v985_v49  ;;  %1081 = vst [vmem:[%s2266_s5 + $0x1a8] sm:$0xff] %v1017_v50  ;;  %v1379_v16 = vpop.f32.mrb[24].mxu0  ;;  %v1411_v17 = vpop.f32.mrb[24].mxu1  ;;  %v255_v37 = vadd.f32 %v1657_v61, %v184_v57  ;;  %v287_v20 = vadd.f32 %v1657_v61, %v216_v58  ;;  %v258_v21 = vadd.f32 %v1657_v61, %v187_v44 }
 0x126   :  { %v926_v22 = vadd.f32 %v1379_v16, %v253_v24  ;;  %v958_v27 = vadd.f32 %v1411_v17, %v285_v62  ;;  %v741_v6 = vpop.f32.mrb[25].mxu0  ;;  %v869_v13 = vpop.f32.mrb[25].mxu1  ;;  %v290_v4 = vadd.f32 %v1657_v61, %v219_v10  ;;  %v256_v8 = vadd.f32 %v1657_v61, %v185_v63 }
 0x127   :  { %v924_v54 = vadd.f32 %v741_v6, %v251_v32  ;;  %v956_v34 = vadd.f32 %v869_v13, %v283_v33  ;;  %v1380_v35 = vpop.f32.mrb[26].mxu0  ;;  %v1412_v23 = vpop.f32.mrb[26].mxu1  ;;  %v257_v33 = vadd.f32 %v1657_v61, %v186_v18  ;;  %v288_v9 = vadd.f32 %v1657_v61, %v217_v25 }
 0x128   :  { %v990_v28 = vmax.f32 %v926_v22, 0.0  ;;  %v1022_v29 = vmax.f32 %v958_v27, 0.0  ;;  %v927_v30 = vadd.f32 %v1380_v35, %v254_v53  ;;  %v959_v31 = vadd.f32 %v1412_v23, %v286_v51  ;;  %v744_v24 = vpop.f32.mrb[27].mxu0  ;;  %v872_v62 = vpop.f32.mrb[27].mxu1 }
 0x129   :  { %v988_v36 = vmax.f32 %v924_v54, 0.0  ;;  %v1020_v56 = vmax.f32 %v956_v34, 0.0  ;;  %v925_v43 = vadd.f32 %v744_v24, %v252_v52  ;;  %v957_v0 = vadd.f32 %v872_v62, %v284_v12 }
 0x12a   :  { %1054 = vst [vmem:[%s2266_s5 + $0xd0] sm:$0xff] %v990_v28  ;;  %1086 = vst [vmem:[%s2266_s5 + $0x1d0] sm:$0xff] %v1022_v29  ;;  %v991_v32 = vmax.f32 %v927_v30, 0.0  ;;  %v1023_v46 = vmax.f32 %v959_v31, 0.0 }
 0x12b   :  { %1052 = vst [vmem:[%s2266_s5 + $0xc0] sm:$0xff] %v988_v36  ;;  %1084 = vst [vmem:[%s2266_s5 + $0x1c0] sm:$0xff] %v1020_v56  ;;  %v989_v48 = vmax.f32 %v925_v43, 0.0  ;;  %v1021_v1 = vmax.f32 %v957_v0, 0.0 }
 0x12c   :  { %1055 = vst [vmem:[%s2266_s5 + $0xd8] sm:$0xff] %v991_v32  ;;  %1087 = vst [vmem:[%s2266_s5 + $0x1d8] sm:$0xff] %v1023_v46 }
 0x12d   :  { %1053 = vst [vmem:[%s2266_s5 + $0xc8] sm:$0xff] %v989_v48  ;;  %1085 = vst [vmem:[%s2266_s5 + $0x1c8] sm:$0xff] %v1021_v1  ;;  %v1383_v5 = vpop.f32.mrb[28].mxu0  ;;  %v1415_v42 = vpop.f32.mrb[28].mxu1 }
 0x12e   :  { %v930_v2 = vadd.f32 %v1383_v5, %v257_v33  ;;  %v962_v26 = vadd.f32 %v1415_v42, %v289_v47  ;;  %v757_v3 = vpop.f32.mrb[29].mxu0  ;;  %v885_v14 = vpop.f32.mrb[29].mxu1 }
 0x12f   :  { %v928_v15 = vadd.f32 %v757_v3, %v255_v37  ;;  %v960_v11 = vadd.f32 %v885_v14, %v287_v20  ;;  %v1384_v45 = vpop.f32.mrb[30].mxu0  ;;  %v1416_v7 = vpop.f32.mrb[30].mxu1 }
 0x130   :  { %v994_v55 = vmax.f32 %v930_v2, 0.0  ;;  %v1026_v38 = vmax.f32 %v962_v26, 0.0  ;;  %v931_v39 = vadd.f32 %v1384_v45, %v258_v21  ;;  %v963_v59 = vadd.f32 %v1416_v7, %v290_v4  ;;  %v760_v60 = vpop.f32.mrb[31].mxu0  ;;  %v888_v49 = vpop.f32.mrb[31].mxu1 }
 0x131   :  { %v992_v50 = vmax.f32 %v928_v15, 0.0  ;;  %v1024_v40 = vmax.f32 %v960_v11, 0.0  ;;  %v929_v41 = vadd.f32 %v760_v60, %v256_v8  ;;  %v961_v53 = vadd.f32 %v888_v49, %v288_v9 }
 0x132   :  { %1058 = vst [vmem:[%s2266_s5 + $0xf0] sm:$0xff] %v994_v55  ;;  %1090 = vst [vmem:[%s2266_s5 + $0x1f0] sm:$0xff] %v1026_v38  ;;  %v995_v61 = vmax.f32 %v931_v39, 0.0  ;;  %v1027_v51 = vmax.f32 %v963_v59, 0.0 }
 0x133   :  { %1056 = vst [vmem:[%s2266_s5 + $0xe0] sm:$0xff] %v992_v50  ;;  %1088 = vst [vmem:[%s2266_s5 + $0x1e0] sm:$0xff] %v1024_v40  ;;  %v993_v52 = vmax.f32 %v929_v41, 0.0  ;;  %v1025_v12 = vmax.f32 %v961_v53, 0.0 }
 0x134   :  { %1059 = vst [vmem:[%s2266_s5 + $0xf8] sm:$0xff] %v995_v61  ;;  %1091 = vst [vmem:[%s2266_s5 + $0x1f8] sm:$0xff] %v1027_v51 }
 0x135   :  { %1057 = vst [vmem:[%s2266_s5 + $0xe8] sm:$0xff] %v993_v52  ;;  %1089 = vst [vmem:[%s2266_s5 + $0x1e8] sm:$0xff] %v1025_v12 }

// kernel: bottleneck_forward.5
= control target key start
LH: loop header
LB: loop body
LE: loop exit
PB: predicated region body
PF: predicated region fallthrough
CT: control target
= control target key end

     0   :  { %s6573_s21 = smov 0   ;;  %s8029_s0 = inlined_call_operand.vmem [shape: bf16[2,256,128], index: 0, kind: input, shape index: {}]   ;;  %s8030_s1 = inlined_call_operand.vmem [shape: f32[1,128], index: 1, kind: input, shape index: {}]   ;;  %s8031_s2 = inlined_call_operand.vmem [shape: f32[1,128], index: 2, kind: input, shape index: {}]   ;;  %s8032_s3 = inlined_call_operand.vmem [shape: bf16[9,128,128], index: 3, kind: input, shape index: {}]   ;;  %s8033_s4 = inlined_call_operand.vmem [shape: bf16[2,256,128], index: 4, kind: output, shape index: {0}]   ;;  %s8034_s5 = inlined_call_operand.vmem [shape: f32[2,1,128], index: 5, kind: output, shape index: {1}]   ;;  %s8035_s6 = inlined_call_operand.vmem [shape: f32[2,1,128], index: 6, kind: output, shape index: {2}]  }
   0x1 LB: > { %s4789_s22 = sadd.s32 4294967295, %s6534_s21   ;;  %p4793_p0 = scmp.ge.s32.totalorder %s6534_s21, 1  ;;  %s6534_s21 = sphi %s6573_s21, %s17_s21  }
   0x2   : > { %p217_p1 = scmp.lt.s32.totalorder %s6534_s21, 3 }
   0x4   : > { %p218_p2 = pnand %p4793_p0, %p217_p1 }
   0x6   : > { %221 = sbr.rel (%p218_p2) target bundleno = 565 (0x235), region = 36 }
   0xd   : > { %v6448_v0 = vld [vmem:[%s8032_s3 + $0x40] sm:$0xff]   ;;  %v8038_v2 = vmov 0.0|0.0   ;;  %v6450_v3 = vld [vmem:[%s8032_s3 + $0x48] sm:$0xff]   ;;  %p253_p3 = scmp.lt.s32.totalorder %s4789_s22, 1  ;;  %v6452_v5 = vld [vmem:[%s8032_s3 + $0x50] sm:$0xff]   ;;  %v444_v15 = vlaneseq  ;;  %vm8091_vm5 = vmmov 1  }
   0xe   : > { %v6449_v1 = vld [vmem:[%s8032_s3 + $0x100] sm:$0xff]   ;;  %5750 = vmatprep.mubr.bf16.mxu1 %v8038_v2  ;;  %5734 = vmatprep.subr.bf16.mxu1 %v6448_v0  ;;  %v6451_v4 = vld [vmem:[%s8032_s3 + $0x108] sm:$0xff]   ;;  %v6453_v6 = vld [vmem:[%s8032_s3 + $0x110] sm:$0xff]  }
   0xf   : > { %5926 = vmatprep.subr.bf16.mxu0 %v6449_v1  ;;  %5735 = vmatpush3.bf16.msra.mxu1 %v6448_v0  ;;  %s8391_s22 = smov (!%p253_p3, %s4789_s22), 1  ;;  %v6454_v7 = vld [vmem:[%s8032_s3 + $0x58] sm:$0xff]   ;;  %v6456_v9 = vld [vmem:[%s8032_s3 + $0x60] sm:$0xff]   ;;  %v6458_v11 = vld [vmem:[%s8032_s3 + $0x68] sm:$0xff]   ;;  %v6647_v28 = vshrl.u32 %v444_v15, 7 }
  0x10   : > { %5927 = vmatpush3.bf16.msra.mxu0 %v6449_v1  ;;  %5736 = vmatprep.subr.bf16.mxu1 %v6450_v3  ;;  %v6455_v8 = vld [vmem:[%s8032_s3 + $0x118] sm:$0xff]   ;;  %s5310_s15 = sshll.u32 %s8391_s22, 7  ;;  %v6457_v10 = vld [vmem:[%s8032_s3 + $0x120] sm:$0xff]   ;;  %v6459_v16 = vld [vmem:[%s8032_s3 + $0x128] sm:$0xff]   ;;  %s265_s28 = scalar_lea.vmem %s8034_s5, %s8391_s22 }
  0x11   : > { %5928 = vmatprep.subr.bf16.mxu0 %v6451_v4  ;;  %s6620_s24 = scalar_lea.vmem %s8029_s0, %s5310_s15  ;;  %v6630_v14 = vld [vmem:[%s8030_s1] ss:$0 sm:$0xff]  ;;  %v6460_v27 = vld [vmem:[%s8032_s3 + $0x70] sm:$0xff]   ;;  %vm8080_vm0 = vcmp.lt.s32.totalorder %v6647_v28, 1  ;;  %v6462_v45 = vld [vmem:[%s8032_s3 + $0x78] sm:$0xff]   ;;  %vm8079_vm1 = vcmp.lt.s32.totalorder %v6647_v28, 7  ;;  %s7996_s26 = scalar_lea.vmem %s8033_s4, %s5310_s15 }
  0x12   : > { %v5345_v12 = vld [vmem:[%s6620_s24] sm:$0xff]   ;;  %v5502_v13 = vld [vmem:[%s6620_s24 + $0x78] sm:$0xff]   ;;  %v5488_v22 = vld [vmem:[%s6620_s24 + $0x8] sm:$0xff]   ;;  %s268_s7 = scalar_lea.vmem %s8035_s6, %s8391_s22 }
  0x13   : > { %5737 = vmatpush3.bf16.msra.mxu1 %v6450_v3  ;;  %v5346_v17 = vunpack.c.l.bf16 %v5345_v12  ;;  %v5347_v18 = vunpack.c.h.bf16 %v5345_v12  ;;  %v5407_v19 = vunpack.c.h.bf16 %v5502_v13  ;;  %v5406_v20 = vunpack.c.l.bf16 %v5502_v13  ;;  %v6638_v21 = vld [vmem:[%s8031_s2] ss:$0 sm:$0xff]  ;;  %v5489_v30 = vld [vmem:[%s6620_s24 + $0x10] sm:$0xff]   ;;  %v5490_v40 = vld [vmem:[%s6620_s24 + $0x18] sm:$0xff]  }
  0x14   : > { %5929 = vmatpush3.bf16.msra.mxu0 %v6451_v4  ;;  %5738 = vmatprep.subr.bf16.mxu1 %v6452_v5  ;;  %v5350_v26 = vunpack.c.l.bf16 %v5488_v22  ;;  %v5351_v29 = vunpack.c.h.bf16 %v5488_v22  ;;  %v6461_v32 = vld [vmem:[%s8032_s3 + $0x130] sm:$0xff]   ;;  %v5354_v38 = vunpack.c.l.bf16 %v5489_v30  ;;  %v5355_v39 = vunpack.c.h.bf16 %v5489_v30  ;;  %v6463_v50 = vld [vmem:[%s8032_s3 + $0x138] sm:$0xff]   ;;  %v5491_v57 = vld [vmem:[%s6620_s24 + $0x20] sm:$0xff]  }
  0x15   : > { %5930 = vmatprep.subr.bf16.mxu0 %v6453_v6  ;;  %v341_v23 = vmul.f32 %v5346_v17, %v6630_v14  ;;  %v342_v24 = vmul.f32 %v5347_v18, %v6630_v14  ;;  %v372_v25 = vmul.f32 %v5407_v19, %v6630_v14  ;;  %v6651_v31 = vmul.f32 %v5406_v20, %v6630_v14  ;;  %v5492_v62 = vld [vmem:[%s6620_s24 + $0x28] sm:$0xff]   ;;  %v6464_v0 = vld [vmem:[%s8032_s3] sm:$0xff]  }
  0x16   : > { %v343_v36 = vmul.f32 %v5350_v26, %v6630_v14  ;;  %v344_v37 = vmul.f32 %v5351_v29, %v6630_v14  ;;  %v345_v47 = vmul.f32 %v5354_v38, %v6630_v14  ;;  %v346_v48 = vmul.f32 %v5355_v39, %v6630_v14  ;;  %v6465_v3 = vld [vmem:[%s8032_s3 + $0x140] sm:$0xff]   ;;  %v6466_v20 = vld [vmem:[%s8032_s3 + $0x148] sm:$0xff]   ;;  %v6468_v39 = vld [vmem:[%s8032_s3 + $0x150] sm:$0xff]  }
  0x17   : > { %5739 = vmatpush3.bf16.msra.mxu1 %v6452_v5  ;;  %v380_v33 = vadd.f32 %v6638_v21, %v341_v23  ;;  %v381_v34 = vadd.f32 %v6638_v21, %v342_v24  ;;  %v411_v35 = vadd.f32 %v6638_v21, %v372_v25  ;;  %v5358_v49 = vunpack.c.l.bf16 %v5490_v40  ;;  %v6467_v23 = vld [vmem:[%s8032_s3 + $0x8] sm:$0xff]  }
  0x18   : > { %5931 = vmatpush3.bf16.msra.mxu0 %v6453_v6  ;;  %5740 = vmatprep.subr.bf16.mxu1 %v6454_v7  ;;  %v382_v44 = vadd.f32 %v6638_v21, %v343_v36  ;;  %v383_v46 = vadd.f32 %v6638_v21, %v344_v37  ;;  %v384_v60 = vadd.f32 %v6638_v21, %v345_v47  ;;  %v5359_v61 = vunpack.c.h.bf16 %v5490_v40 }
  0x19   : > { %5932 = vmatprep.subr.bf16.mxu0 %v6455_v8  ;;  %v6663_v41 = vmax.f32 %v380_v33, 0.0  ;;  %v6665_v42 = vmax.f32 %v381_v34, 0.0  ;;  %v6667_v43 = vmax.f32 %v411_v35, 0.0  ;;  %v385_v1 = vadd.f32 %v6638_v21, %v346_v48  ;;  %v5494_v34 = vld [vmem:[%s6620_s24 + $0x38] sm:$0xff]  }
  0x1a   : > { %v6684_v55 = vmax.f32 %v382_v44, 0.0  ;;  %v6686_v56 = vmax.f32 %v383_v46, 0.0  ;;  %v6708_v4 = vmax.f32 %v384_v60, 0.0  ;;  %v347_v5 = vmul.f32 %v5358_v49, %v6630_v14 }
  0x1b   : > { %5741 = vmatpush3.bf16.msra.mxu1 %v6454_v7  ;;  %v861_v51 = vrot.slane %v6663_v41, 7  ;;  %v8040_v52 = vrot.slane %v6665_v42, 7  ;;  %v8036_v53 = vrot.slane %v6667_v43, 7  ;;  %v1247_v54 = vpack.c.bf16 %v6665_v42, %v6663_v41 }
  0x1c   : > { %5933 = vmatpush3.bf16.msra.mxu0 %v6455_v8  ;;  %5742 = vmatprep.subr.bf16.mxu1 %v6456_v9  ;;  %v348_v6 = vmul.f32 %v5359_v61, %v6630_v14  ;;  %v5362_v7 = vunpack.c.l.bf16 %v5491_v57  ;;  %v5493_v8 = vld [vmem:[%s6620_s24 + $0x30] sm:$0xff]   ;;  %v5366_v12 = vunpack.c.l.bf16 %v5492_v62  ;;  %v386_v13 = vadd.f32 %v6638_v21, %v347_v5  ;;  %v5496_v61 = vld [vmem:[%s6620_s24 + $0x48] sm:$0xff]  }
  0x1d   : > { %5934 = vmatprep.subr.bf16.mxu0 %v6457_v10  ;;  %v924_v58 = vsel %vm8080_vm0, %v861_v51, %v8040_v52  ;;  %v925_v59 = vsel %vm8080_vm0, %v8036_v53, %v861_v51  ;;  %5942 = vmatprep.mubr.bf16.mxu0 %v1247_v54  ;;  %v5367_v17 = vunpack.c.h.bf16 %v5492_v62  ;;  %v5370_v19 = vunpack.c.l.bf16 %v5493_v8  ;;  %v5500_v53 = vld [vmem:[%s6620_s24 + $0x68] sm:$0xff]  }
  0x1e   : > { %v6699_v63 = vpack.c.bf16 %v924_v58, %v925_v59  ;;  %v387_v15 = vadd.f32 %v6638_v21, %v348_v6  ;;  %v351_v26 = vmul.f32 %v5366_v12, %v6630_v14  ;;  %v6737_v29 = vmax.f32 %v386_v13, 0.0  ;;  %v5495_v59 = vld [vmem:[%s6620_s24 + $0x40] sm:$0xff]  }
  0x1f   : > { %5743 = vmatpush3.bf16.msra.mxu1 %v6456_v9  ;;  %v6715_v9 = vpack.c.bf16 %v6686_v56, %v6684_v55  ;;  %v352_v33 = vmul.f32 %v5367_v17, %v6630_v14  ;;  %v353_v37 = vmul.f32 %v5370_v19, %v6630_v14  ;;  %v6758_v40 = vadd.s32 8, %v6647_v28 }
  0x20   : > { %5935 = vmatpush3.bf16.msra.mxu0 %v6457_v10  ;;  %5744 = vmatprep.subr.bf16.mxu1 %v6458_v11  ;;  %8141 = vst [vmem:[#allocation2_spill] sm:$0xff] %v6699_v63  ;;  %v6717_v10 = vmax.f32 %v385_v1, 0.0  ;;  %v6739_v30 = vmax.f32 %v387_v15, 0.0  ;;  %v390_v44 = vadd.f32 %v6638_v21, %v351_v26  ;;  %v5374_v47 = vunpack.c.l.bf16 %v5494_v34  ;;  %v6476_v15 = vld [vmem:[%s8032_s3 + $0x20] sm:$0xff]  }
  0x21   : > { %5936 = vmatprep.subr.bf16.mxu0 %v6459_v16  ;;  %8142 = vst [vmem:[#allocation3_spill] sm:$0xff] %v6715_v9  ;;  %v391_v46 = vadd.f32 %v6638_v21, %v352_v33  ;;  %v5375_v48 = vunpack.c.h.bf16 %v5494_v34  ;;  %v488_v58 = vand.u32 15, %v6758_v40  ;;  %v448_v60 = vadd.s32 24, %v6647_v28 }
  0x22   : > { %v6728_v22 = vpack.c.bf16 %v6717_v10, %v6708_v4  ;;  %v450_v62 = vadd.s32 40, %v6647_v28  ;;  %v5379_v12 = vunpack.c.h.bf16 %v5495_v59  ;;  %v5383_v17 = vunpack.c.h.bf16 %v5496_v61 }
  0x23   : > { %5745 = vmatpush3.bf16.msra.mxu1 %v6458_v11  ;;  %v5363_v11 = vunpack.c.h.bf16 %v5491_v57  ;;  %v6473_v57 = vld [vmem:[%s8032_s3 + $0x18] sm:$0xff]   ;;  %v6789_v1 = vmax.f32 %v391_v46, 0.0  ;;  %v356_v5 = vmul.f32 %v5375_v48, %v6630_v14  ;;  %v502_v13 = vand.u32 15, %v448_v60 }
  0x24   : > { %5937 = vmatpush3.bf16.msra.mxu0 %v6459_v16  ;;  %5746 = vmatprep.subr.bf16.mxu1 %v6460_v27  ;;  %v349_v16 = vmul.f32 %v5362_v7, %v6630_v14  ;;  %8143 = vst [vmem:[#allocation4_spill] sm:$0xff] %v6728_v22  ;;  %v1698_v26 = vrot.slane %v6665_v42, 1  ;;  %v1699_v34 = vrot.slane %v6684_v55, 1  ;;  %v1701_v40 = vrot.slane %v6708_v4, 1 }
  0x25   : > { %5938 = vmatprep.subr.bf16.mxu0 %v6461_v32  ;;  %v350_v18 = vmul.f32 %v5363_v11, %v6630_v14  ;;  %v5378_v11 = vunpack.c.l.bf16 %v5495_v59  ;;  %v360_v46 = vmul.f32 %v5383_v17, %v6630_v14  ;;  %vm6845_vm2 = vcmp.le.s32.totalorder %v488_v58, 14  ;;  %v5498_v59 = vld [vmem:[%s6620_s24 + $0x58] sm:$0xff]   ;;  %v6480_v17 = vld [vmem:[%s8032_s3 + $0x30] sm:$0xff]  }
  0x26   : > { %v388_v24 = vadd.f32 %v6638_v21, %v349_v16  ;;  %v5382_v16 = vunpack.c.l.bf16 %v5496_v61  ;;  %vm6849_vm3 = vcmp.le.s32.totalorder %v502_v13, 14  ;;  %v6855_v60 = vadd.s32 72, %v6647_v28  ;;  %v6474_v61 = vld [vmem:[%s8032_s3 + $0x170] sm:$0xff]   ;;  %vm6898_vm6 = vmpackc.low %vm6845_vm2, %vm8091_vm5 }
  0x27   : > { %5747 = vmatpush3.bf16.msra.mxu1 %v6460_v27  ;;  %v389_v25 = vadd.f32 %v6638_v21, %v350_v18  ;;  %v5371_v27 = vunpack.c.h.bf16 %v5493_v8  ;;  %v6471_v8 = vld [vmem:[%s8032_s3 + $0x160] sm:$0xff]   ;;  %v516_v18 = vand.u32 15, %v450_v62  ;;  %v1759_v62 = vsel %vm8079_vm1, %v1698_v26, %v1699_v34  ;;  %vm6955_vm7 = vmpackc.low %vm6849_vm3, %vm8091_vm5 }
  0x28   : > { %5939 = vmatpush3.bf16.msra.mxu0 %v6461_v32  ;;  %5748 = vmatprep.subr.bf16.mxu1 %v6462_v45  ;;  %v6470_v32 = vld [vmem:[%s8032_s3 + $0x10] sm:$0xff]   ;;  %v6747_v35 = vmax.f32 %v388_v24, 0.0  ;;  %v6811_v24 = vadd.s32 56, %v6647_v28 }
  0x29   : > { %5940 = vmatprep.subr.bf16.mxu0 %v6463_v50  ;;  %v6749_v36 = vmax.f32 %v389_v25, 0.0  ;;  %v354_v38 = vmul.f32 %v5371_v27, %v6630_v14  ;;  %v8037_v25 = vrot.slane %v6663_v41, 1  ;;  %v1700_v27 = vrot.slane %v6686_v56, 1 }
  0x2a   : > { %vm6864_vm4 = vcmp.le.s32.totalorder %v516_v18, 14 }
  0x2b   : > { %5749 = vmatpush3.bf16.msra.mxu1 %v6462_v45  ;;  %v6763_v45 = vpack.c.bf16 %v6739_v30, %v6737_v29  ;;  %v6768_v49 = vpack.c.bf16 %v6749_v36, %v6747_v35  ;;  %v393_v51 = vadd.f32 %v6638_v21, %v354_v38  ;;  %v358_v38 = vmul.f32 %v5379_v12, %v6630_v14  ;;  %vm6964_vm8 = vmpackc.low %vm6864_vm4, %vm8091_vm5 }
  0x2c   : > { %5941 = vmatpush3.bf16.msra.mxu0 %v6463_v50  ;;  %5782 = vmatprep.subr.bf16.mxu1 %v6464_v0  ;;  %v392_v50 = vadd.f32 %v6638_v21, %v353_v37  ;;  %v357_v37 = vmul.f32 %v5378_v11, %v6630_v14  ;;  %v399_v12 = vadd.f32 %v6638_v21, %v360_v46  ;;  %v6482_v46 = vld [vmem:[%s8032_s3 + $0x38] sm:$0xff]  }
  0x2d   : > { %5974 = vmatprep.subr.bf16.mxu0 %v6465_v3  ;;  %8144 = vst [vmem:[#allocation5_spill] sm:$0xff] %v6763_v45  ;;  %8145 = vst [vmem:[#allocation6_spill] sm:$0xff] %v6768_v49  ;;  %v6796_v7 = vmax.f32 %v393_v51, 0.0  ;;  %v1760_v51 = vsel %vm8079_vm1, %v8037_v25, %v1698_v26  ;;  %v5391_v26 = vunpack.c.h.bf16 %v5498_v59 }
  0x2e   : > { %5751 = vmatmul.mubr.bf16.vlgmr.msra.gmra.mrb[0].mxu1 %v1247_v54  ;;  %v6469_v54 = vld [vmem:[%s8032_s3 + $0x158] sm:$0xff]   ;;  %v6794_v6 = vmax.f32 %v392_v50, 0.0  ;;  %v396_v58 = vadd.f32 %v6638_v21, %v357_v37  ;;  %v6887_v37 = vpack.c.bf16 %v1759_v62, %v1760_v51  ;;  %v6910_v62 = vmax.f32 %v399_v12, 0.0 }
  0x2f   : > { %5943 = vmatmul.mubr.bf16.vlgmr.msra.gmra.mrb[0].mxu0 %v6715_v9  ;;  %5783 = vmatpush3.bf16.msra.mxu1 %v6464_v0  ;;  %v6787_v0 = vmax.f32 %v390_v44, 0.0  ;;  %v359_v44 = vmul.f32 %v5382_v16, %v6630_v14  ;;  %v530_v16 = vand.u32 15, %v6811_v24  ;;  %v1758_v24 = vsel %vm8079_vm1, %v1699_v34, %v1700_v27 }
  0x30   : > { %5975 = vmatpush3.bf16.msra.mxu0 %v6465_v3  ;;  %5754 = vmatprep.mubr.bf16.mxu1 %v6715_v9  ;;  %v355_v3 = vmul.f32 %v5374_v47, %v6630_v14  ;;  %v6821_v33 = vpack.c.bf16 %v6796_v7, %v6794_v6  ;;  %v6478_v47 = vld [vmem:[%s8032_s3 + $0x28] sm:$0xff]  }
  0x31   : > { %5976 = vmatprep.subr.bf16.mxu0 %v6466_v20  ;;  %5946 = vmatprep.mubr.bf16.mxu0 %v6728_v22  ;;  %v6806_v19 = vpack.c.bf16 %v6789_v1, %v6787_v0  ;;  %v398_v11 = vadd.f32 %v6638_v21, %v359_v44  ;;  %v5499_v44 = vld [vmem:[%s6620_s24 + $0x60] sm:$0xff]   ;;  %vm6970_vm9 = vcmp.le.s32.totalorder %v530_v16, 14 }
  0x32   : > { %5784 = vmatprep.subr.bf16.mxu1 %v6467_v23  ;;  %8147 = vst [vmem:[#allocation8_spill] sm:$0xff] %v6821_v33  ;;  %v5395_v25 = vunpack.c.h.bf16 %v5499_v44  ;;  %vm7044_vm11 = vmpackc.low %vm6970_vm9, %vm8091_vm5 }
  0x33   : > { %5785 = vmatpush3.bf16.msra.mxu1 %v6467_v23  ;;  %8146 = vst [vmem:[#allocation7_spill] sm:$0xff] %v6806_v19  ;;  %v395_v23 = vadd.f32 %v6638_v21, %v356_v5 }
  0x34   : > { %5977 = vmatpush3.bf16.msra.mxu0 %v6466_v20  ;;  %5786 = vmatprep.subr.bf16.mxu1 %v6470_v32  ;;  %v394_v20 = vadd.f32 %v6638_v21, %v355_v3  ;;  %v397_v3 = vadd.f32 %v6638_v21, %v358_v38  ;;  %v1702_v38 = vrot.slane %v6717_v10, 1 }
  0x35   : > { %5978 = vmatprep.subr.bf16.mxu0 %v6468_v39  ;;  %v6838_v50 = vmax.f32 %v395_v23, 0.0  ;;  %v5390_v23 = vunpack.c.l.bf16 %v5498_v59  ;;  %v6908_v59 = vmax.f32 %v398_v11, 0.0  ;;  %v544_v11 = vand.u32 15, %v6855_v60 }
  0x36   : > { %5755 = vmatmul.mubr.bf16.gmra.mrb[4].mxu1 %v6728_v22  ;;  %v6836_v48 = vmax.f32 %v394_v20, 0.0  ;;  %v6475_v20 = vld [vmem:[%s8032_s3 + $0x178] sm:$0xff]   ;;  %v6904_v34 = vmax.f32 %v397_v3, 0.0 }
  0x37   : > { %5947 = vmatmul.mubr.bf16.gmra.mrb[4].mxu0 %v6763_v45  ;;  %5758 = vmatprep.mubr.bf16.mxu1 %v6763_v45  ;;  %v363_v3 = vmul.f32 %v5390_v23, %v6630_v14  ;;  %v6934_v23 = vld [vmem:[%s8032_s3 + $0x80] sm:$0xff]   ;;  %v6947_v2 = vpack.c.bf16 %v6910_v62, %v6908_v59  ;;  %vm6983_vm10 = vcmp.le.s32.totalorder %v544_v11, 14  ;;  %v8174_v45 = vmov 0 }
  0x38   : > { %5979 = vmatpush3.bf16.msra.mxu0 %v6468_v39  ;;  %5950 = vmatprep.mubr.bf16.mxu0 %v6768_v49  ;;  %v5497_v39 = vld [vmem:[%s6620_s24 + $0x50] sm:$0xff]   ;;  %v6880_v18 = vpack.c.bf16 %v6838_v50, %v6836_v48  ;;  %v8175_v45 = vsel %vm7044_vm11, 4294967295, %v8174_v45  ;;  %vm7059_vm13 = vmpackc.low %vm6983_vm10, %vm8091_vm5 }
  0x39   : > { %5980 = vmatprep.subr.bf16.mxu0 %v6469_v54  ;;  %5787 = vmatpush3.bf16.msra.mxu1 %v6470_v32  ;;  %v6472_v32 = vld [vmem:[%s8032_s3 + $0x168] sm:$0xff]   ;;  %v5387_v13 = vunpack.c.h.bf16 %v5497_v39  ;;  %8159 = vst [vmem:[#allocation12_spill] sm:$0xff] %v6947_v2  ;;  %8176 = vst [vmem:[#allocation18_spill] sm:$0xff] %v8175_v45  ;;  %v1716_v45 = vrot.slane %v6910_v62, 1 }
  0x3a   : > { %5788 = vmatprep.subr.bf16.mxu1 %v6473_v57  ;;  %8154 = vst [vmem:[#allocation9_spill] sm:$0xff] %v6880_v18 }
  0x3c   : > { %5981 = vmatpush3.bf16.msra.mxu0 %v6469_v54  ;;  %v362_v54 = vmul.f32 %v5387_v13, %v6630_v14  ;;  %v1704_v13 = vrot.slane %v6739_v30, 1 }
  0x3d   : > { %5982 = vmatprep.subr.bf16.mxu0 %v6471_v8  ;;  %5789 = vmatpush3.bf16.msra.mxu1 %v6473_v57 }
  0x3e   : > { %5759 = vmatmul.mubr.bf16.gmra.mrb[8].mxu1 %v6768_v49  ;;  %5790 = vmatprep.subr.bf16.mxu1 %v6476_v15  ;;  %v401_v52 = vadd.f32 %v6638_v21, %v362_v54  ;;  %v8162_v54 = vmov 0 }
  0x3f   : > { %5951 = vmatmul.mubr.bf16.gmra.mrb[8].mxu0 %v6806_v19  ;;  %5762 = vmatprep.mubr.bf16.mxu1 %v6806_v19  ;;  %v8163_v54 = vsel %vm6964_vm8, 4294967295, %v8162_v54  ;;  %v8169_v19 = vrot.slane %v6787_v0, 1 }
  0x40   : > { %5983 = vmatpush3.bf16.msra.mxu0 %v6471_v8  ;;  %5954 = vmatprep.mubr.bf16.mxu0 %v6821_v33  ;;  %v5386_v8 = vunpack.c.l.bf16 %v5497_v39  ;;  %v1703_v39 = vrot.slane %v6737_v29, 1 }
  0x41   : > { %5984 = vmatprep.subr.bf16.mxu0 %v6472_v32  ;;  %5791 = vmatpush3.bf16.msra.mxu1 %v6476_v15  ;;  %v1757_v15 = vsel %vm8079_vm1, %v1700_v27, %v1701_v40  ;;  %v6902_v27 = vmax.f32 %v396_v58, 0.0 }
  0x42   : > { %5792 = vmatprep.subr.bf16.mxu1 %v6478_v47  ;;  %v361_v51 = vmul.f32 %v5386_v8, %v6630_v14  ;;  %v6915_v58 = vpack.c.bf16 %v1757_v15, %v1758_v24  ;;  %v364_v8 = vmul.f32 %v5391_v26, %v6630_v14  ;;  %v1755_v12 = vsel %vm8079_vm1, %v1702_v38, %v1703_v39 }
  0x43   : > { %v1705_v15 = vrot.slane %v6747_v35, 1  ;;  %v5394_v24 = vunpack.c.l.bf16 %v5499_v44  ;;  %v6938_v60 = vpack.c.bf16 %v6904_v34, %v6902_v27  ;;  %v5398_v44 = vunpack.c.l.bf16 %v5500_v53 }
  0x44   : > { %5985 = vmatpush3.bf16.msra.mxu0 %v6472_v32  ;;  %v8155_v32 = vmov 0  ;;  %v400_v26 = vadd.f32 %v6638_v21, %v361_v51  ;;  %v5399_v51 = vunpack.c.h.bf16 %v5500_v53 }
  0x45   : > { %5986 = vmatprep.subr.bf16.mxu0 %v6474_v61  ;;  %v8156_v32 = vsel %vm6898_vm6, 4294967295, %v8155_v32  ;;  %5793 = vmatpush3.bf16.msra.mxu1 %v6478_v47  ;;  %v6477_v47 = vld [vmem:[%s8032_s3 + $0x180] sm:$0xff]   ;;  %8158 = vst [vmem:[#allocation11_spill] sm:$0xff] %v6938_v60  ;;  %v365_v53 = vmul.f32 %v5394_v24, %v6630_v14  ;;  %v1753_v5 = vsel %vm8079_vm1, %v1704_v13, %v1705_v15 }
  0x46   : > { %8157 = vst [vmem:[#allocation10_spill] sm:$0xff] %v8156_v32  ;;  %5763 = vmatmul.mubr.bf16.gmra.mrb[12].mxu1 %v6821_v33  ;;  %5794 = vmatprep.subr.bf16.mxu1 %v6480_v17  ;;  %v1706_v32 = vrot.slane %v6749_v36, 1  ;;  %v6990_v24 = vmax.f32 %v400_v26, 0.0  ;;  %v6992_v33 = vmax.f32 %v401_v52, 0.0  ;;  %v368_v11 = vmul.f32 %v5399_v51, %v6630_v14 }
  0x47   : > { %5955 = vmatmul.mubr.bf16.gmra.mrb[12].mxu0 %v6880_v18  ;;  %5766 = vmatprep.mubr.bf16.mxu1 %v6880_v18  ;;  %v8179_v18 = vmov 0 }
  0x48   : > { %5987 = vmatpush3.bf16.msra.mxu0 %v6474_v61  ;;  %5990 = vmatprep.mubr.msk.bf16.mxu0 %vm6898_vm6, %v6887_v37  ;;  %v1756_v61 = vsel %vm8079_vm1, %v1701_v40, %v1702_v38  ;;  %v8160_v40 = vmov 0  ;;  %v403_v38 = vadd.f32 %v6638_v21, %v364_v8  ;;  %v1754_v8 = vsel %vm8079_vm1, %v1703_v39, %v1704_v13 }
  0x49   : > { %5988 = vmatprep.subr.bf16.mxu0 %v6475_v20  ;;  %5795 = vmatpush3.bf16.msra.mxu1 %v6480_v17  ;;  %v8161_v40 = vsel %vm6955_vm7, 4294967295, %v8160_v40  ;;  %v402_v17 = vadd.f32 %v6638_v21, %v363_v3  ;;  %v6968_v57 = vpack.c.bf16 %v1755_v12, %v1756_v61  ;;  %v6479_v3 = vld [vmem:[%s8032_s3 + $0x188] sm:$0xff]   ;;  %v366_v12 = vmul.f32 %v5395_v25, %v6630_v14  ;;  %v5501_v61 = vld [vmem:[%s6620_s24 + $0x70] sm:$0xff]  }
  0x4a   : > { %5796 = vmatprep.subr.bf16.mxu1 %v6482_v46  ;;  %v1751_v49 = vsel %vm8079_vm1, %v1706_v32, %v8169_v19  ;;  %v1752_v39 = vsel %vm8079_vm1, %v1705_v15, %v1706_v32  ;;  %v7007_v52 = vmax.f32 %v403_v38, 0.0  ;;  %v404_v19 = vadd.f32 %v6638_v21, %v365_v53 }
  0x4b   : > { %8164 = vst [vmem:[#allocation13_spill] sm:$0xff] %v6968_v57  ;;  %v7005_v25 = vmax.f32 %v402_v17, 0.0  ;;  %v5402_v13 = vunpack.c.l.bf16 %v5501_v61  ;;  %v5403_v15 = vunpack.c.h.bf16 %v5501_v61  ;;  %v7015_v26 = vpack.c.bf16 %v1753_v5, %v1754_v8 }
  0x4c   : > { %5989 = vmatpush3.bf16.msra.mxu0 %v6475_v20  ;;  %v456_v20 = vadd.s32 88, %v6647_v28  ;;  %v405_v17 = vadd.f32 %v6638_v21, %v366_v12  ;;  %v1708_v38 = vrot.slane %v6789_v1, 1  ;;  %v7025_v51 = vpack.c.bf16 %v6992_v33, %v6990_v24 }
  0x4d   : > { %6022 = vmatprep.subr.bf16.mxu0 %v6477_v47  ;;  %5797 = vmatpush3.bf16.msra.mxu1 %v6482_v46  ;;  %v367_v46 = vmul.f32 %v5398_v44, %v6630_v14  ;;  %8170 = vst [vmem:[#allocation14_spill] sm:$0xff] %v7015_v26  ;;  %v1709_v44 = vrot.slane %v6794_v6, 1  ;;  %v458_v53 = vadd.s32 104, %v6647_v28  ;;  %v1711_v5 = vrot.slane %v6836_v48, 1 }
  0x4e   : > { %5767 = vmatmul.mubr.bf16.gmra.mrb[16].mxu1 %v6938_v60  ;;  %5830 = vmatprep.subr.bf16.mxu1 %v6934_v23  ;;  %v558_v32 = vand.u32 15, %v456_v20  ;;  %8171 = vst [vmem:[#allocation15_spill] sm:$0xff] %v7025_v51  ;;  %v1710_v20 = vrot.slane %v6796_v7, 1  ;;  %v7032_v8 = vpack.c.bf16 %v7007_v52, %v7005_v25  ;;  %v7034_v12 = vpack.c.bf16 %v1751_v49, %v1752_v39  ;;  %v6483_v60 = vld [vmem:[%s8032_s3 + $0x198] sm:$0xff]  }
  0x4f   : > { %5991 = vmatmul.mubr.msk.bf16.vlgmr.msra.gmra.mrb[0].mxu0 %vm6955_vm7, %v6915_v58  ;;  %5770 = vmatprep.mubr.bf16.mxu1 %v6947_v2  ;;  %v406_v61 = vadd.f32 %v6638_v21, %v367_v46  ;;  %v407_v2 = vadd.f32 %v6638_v21, %v368_v11  ;;  %v7048_v22 = vmax.f32 %v404_v19, 0.0  ;;  %v369_v39 = vmul.f32 %v5402_v13, %v6630_v14 }
  0x50   : > { %6023 = vmatpush3.bf16.msra.mxu0 %v6477_v47  ;;  %5994 = vmatprep.mubr.msk.bf16.mxu0 %vm6964_vm8, %v6968_v57  ;;  %v6481_v47 = vld [vmem:[%s8032_s3 + $0x190] sm:$0xff]   ;;  %8172 = vst [vmem:[#allocation16_spill] sm:$0xff] %v7032_v8  ;;  %8173 = vst [vmem:[#allocation17_spill] sm:$0xff] %v7034_v12  ;;  %vm7050_vm12 = vcmp.le.s32.totalorder %v558_v32, 14  ;;  %v370_v46 = vmul.f32 %v5403_v15, %v6630_v14  ;;  %v8180_v18 = vsel %vm7059_vm13, 4294967295, %v8179_v18  ;;  %v7063_v11 = vmax.f32 %v405_v17, 0.0 }
  0x51   : > { %6024 = vmatprep.subr.bf16.mxu0 %v6479_v3  ;;  %8181 = vst [vmem:[#allocation19_spill] sm:$0xff] %v8180_v18  ;;  %v8182_v19 = vrot.slane %v6787_v0, 1  ;;  %v572_v16 = vand.u32 15, %v458_v53  ;;  %v1747_v13 = vsel %vm8079_vm1, %v1710_v20, %v1711_v5  ;;  %v1748_v15 = vsel %vm8079_vm1, %v1709_v44, %v1710_v20  ;;  %vm7130_vm15 = vmpackc.low %vm7050_vm12, %vm8091_vm5 }
  0x52   : > { %v460_v17 = vadd.s32 120, %v6647_v28  ;;  %v1712_v53 = vrot.slane %v6838_v50, 1  ;;  %v865_v14 = vrot.slane %v6708_v4, 7  ;;  %v409_v20 = vadd.f32 %v6638_v21, %v370_v46 }
  0x53   : > { %v1750_v32 = vsel %vm8079_vm1, %v8182_v19, %v1708_v38  ;;  %v7084_v19 = vmax.f32 %v407_v2, 0.0  ;;  %v7097_v2 = vpack.c.bf16 %v7063_v11, %v7048_v22  ;;  %v462_v4 = vadd.s32 136, %v6647_v28 }
  0x54   : > { %6025 = vmatpush3.bf16.msra.mxu0 %v6479_v3  ;;  %v1749_v3 = vsel %vm8079_vm1, %v1708_v38, %v1709_v44  ;;  %v7082_v38 = vmax.f32 %v406_v61, 0.0  ;;  %v408_v44 = vadd.f32 %v6638_v21, %v369_v39  ;;  %v8185_v39 = vrot.slane %v6686_v56, 7 }
  0x55   : > { %6026 = vmatprep.subr.bf16.mxu0 %v6481_v47  ;;  %8183 = vst [vmem:[#allocation20_spill] sm:$0xff] %v7097_v2  ;;  %vm7109_vm14 = vcmp.le.s32.totalorder %v572_v16, 14  ;;  %v7113_v9 = vpack.c.bf16 %v1747_v13, %v1748_v15  ;;  %v8191_v13 = vmov 0  ;;  %v8194_v49 = vmov 0 }
  0x56   : > { %5771 = vmatmul.mubr.bf16.gmra.mrb[20].mxu1 %v7025_v51  ;;  %v1713_v51 = vrot.slane %v6902_v27, 1  ;;  %v921_v46 = vsel %vm8080_vm0, %v8185_v39, %v865_v14  ;;  %v7121_v18 = vpack.c.bf16 %v7084_v19, %v7082_v38  ;;  %v1715_v39 = vrot.slane %v6908_v59, 1  ;;  %vm7148_vm2 = vmpackc.low %vm7109_vm14, %vm8091_vm5 }
  0x57   : > { %5995 = vmatmul.mubr.msk.bf16.gmra.mrb[4].mxu0 %vm7044_vm11, %v7015_v26  ;;  %5774 = vmatprep.mubr.bf16.mxu1 %v7032_v8  ;;  %v7099_v8 = vpack.c.bf16 %v1749_v3, %v1750_v32  ;;  %8188 = vst [vmem:[#allocation22_spill] sm:$0xff] %v7113_v9  ;;  %v586_v3 = vand.u32 15, %v460_v17  ;;  %v8189_v32 = vrot.slane %v6717_v10, 7  ;;  %v1714_v26 = vrot.slane %v6904_v34, 1 }
  0x58   : > { %5998 = vmatprep.mubr.msk.bf16.mxu0 %vm7059_vm13, %v7034_v12  ;;  %6027 = vmatpush3.bf16.msra.mxu0 %v6481_v47  ;;  %v6485_v47 = vld [vmem:[%s8032_s3 + $0x1a0] sm:$0xff]   ;;  %8190 = vst [vmem:[#allocation23_spill] sm:$0xff] %v7121_v18  ;;  %v8192_v13 = vsel %vm7130_vm15, 4294967295, %v8191_v13  ;;  %v7134_v15 = vmax.f32 %v408_v44, 0.0  ;;  %v1745_v17 = vsel %vm8079_vm1, %v1712_v53, %v1713_v51  ;;  %v8195_v49 = vsel %vm7148_vm2, 4294967295, %v8194_v49 }
  0x59   : > { %8184 = vst [vmem:[#allocation21_spill] sm:$0xff] %v7099_v8  ;;  %6028 = vmatprep.subr.bf16.mxu0 %v6483_v60  ;;  %v920_v12 = vsel %vm8080_vm0, %v865_v14, %v8189_v32  ;;  %8193 = vst [vmem:[#allocation24_spill] sm:$0xff] %v8192_v13  ;;  %v7136_v14 = vmax.f32 %v409_v20, 0.0  ;;  %v1746_v32 = vsel %vm8079_vm1, %v1711_v5, %v1712_v53  ;;  %v600_v44 = vand.u32 15, %v462_v4 }
  0x5a   : > { %v7125_v16 = vpack.c.bf16 %v920_v12, %v921_v46  ;;  %v6487_v12 = vld [vmem:[%s8032_s3 + $0x1a8] sm:$0xff]   ;;  %8196 = vst [vmem:[#allocation25_spill] sm:$0xff] %v8195_v49  ;;  %v447_v20 = vadd.s32 16, %v6647_v28  ;;  %v464_v46 = vadd.s32 152, %v6647_v28  ;;  %v1743_v53 = vsel %vm8079_vm1, %v1714_v26, %v1715_v39 }
  0x5b   : > { %v1744_v61 = vsel %vm8079_vm1, %v1713_v51, %v1714_v26  ;;  %v1717_v4 = vrot.slane %v6990_v24, 1  ;;  %v7173_v5 = vpack.c.bf16 %v7136_v14, %v7134_v15  ;;  %vm7175_vm3 = vcmp.le.s32.totalorder %v586_v3, 14 }
  0x5c   : > { %6029 = vmatpush3.bf16.msra.mxu0 %v6483_v60  ;;  %v449_v60 = vadd.s32 32, %v6647_v28  ;;  %v869_v26 = vrot.slane %v6747_v35, 7  ;;  %vm7185_vm4 = vcmp.le.s32.totalorder %v600_v44, 14  ;;  %v466_v49 = vadd.s32 168, %v6647_v28  ;;  %vm7212_vm9 = vmpackc.low %vm7175_vm3, %vm8091_vm5 }
  0x5d   : > { %6030 = vmatprep.subr.bf16.mxu0 %v6485_v47  ;;  %8197 = vst [vmem:[#allocation26_spill] sm:$0xff] %v7173_v5  ;;  %v7191_v13 = vpack.c.bf16 %v1743_v53, %v1744_v61  ;;  %v8203_v35 = vrot.slane %v6739_v30, 7  ;;  %v1741_v44 = vsel %vm8079_vm1, %v1716_v45, %v1717_v4  ;;  %v8204_v57 = vrot.slane %v6665_v42, 7  ;;  %vm7227_vm10 = vmpackc.low %vm7185_vm4, %vm8091_vm5 }
  0x5e   : > { %5775 = vmatmul.mubr.bf16.gmra.mrb[24].mxu1 %v7097_v2  ;;  %v863_v2 = vrot.slane %v6684_v55, 7  ;;  %v6489_v55 = vld [vmem:[%s8032_s3 + $0x1b0] sm:$0xff]   ;;  %v8205_v53 = vrot.slane %v6749_v36, 7  ;;  %v8209_v61 = vrot.slane %v6686_v56, 7  ;;  %v628_v56 = vand.u32 15, %v466_v49 }
  0x5f   : > { %5999 = vmatmul.mubr.msk.bf16.gmra.mrb[8].mxu0 %vm7130_vm15, %v7099_v8  ;;  %5778 = vmatprep.mubr.bf16.mxu1 %v7121_v18  ;;  %v7179_v8 = vpack.c.bf16 %v1745_v17, %v1746_v32  ;;  %8202 = vst [vmem:[#allocation27_spill] sm:$0xff] %v7191_v13  ;;  %v614_v17 = vand.u32 15, %v464_v46  ;;  %v917_v32 = vsel %vm8080_vm0, %v8203_v35, %v869_v26  ;;  %v8210_v18 = vmov 0 }
  0x60   : > { %6002 = vmatprep.mubr.msk.bf16.mxu0 %vm7148_vm2, %v7113_v9  ;;  %6031 = vmatpush3.bf16.msra.mxu0 %v6485_v47  ;;  %v495_v9 = vand.u32 15, %v447_v20  ;;  %v509_v47 = vand.u32 15, %v449_v60  ;;  %v1742_v20 = vsel %vm8079_vm1, %v1715_v39, %v1716_v45  ;;  %v923_v3 = vsel %vm8080_vm0, %v8204_v57, %v863_v2 }
  0x61   : > { %6032 = vmatprep.subr.bf16.mxu0 %v6487_v12  ;;  %v916_v46 = vsel %vm8080_vm0, %v869_v26, %v8205_v53  ;;  %v8206_v60 = vmov 0  ;;  %v922_v42 = vsel %vm8080_vm0, %v863_v2, %v8209_v61  ;;  %v1718_v45 = vrot.slane %v6992_v33, 1 }
  0x62   : > { %v8207_v60 = vsel %vm7212_vm9, 4294967295, %v8206_v60  ;;  %v1719_v57 = vrot.slane %v7005_v25, 1  ;;  %v7222_v39 = vpack.c.bf16 %v916_v46, %v917_v32  ;;  %v8211_v18 = vsel %vm7227_vm10, 4294967295, %v8210_v18 }
  0x63   : > { %8208 = vst [vmem:[#allocation28_spill] sm:$0xff] %v8207_v60  ;;  %8212 = vst [vmem:[#allocation29_spill] sm:$0xff] %v8211_v18  ;;  %vm7231_vm12 = vcmp.ge.s32.totalorder %v495_v9, 1  ;;  %v8082_v2 = vrot.slane %v6789_v1, 7  ;;  %vm7240_vm14 = vcmp.le.s32.totalorder %v614_v17, 14  ;;  %v7244_v35 = vpack.c.bf16 %v1741_v44, %v1742_v20 }
  0x64   : > { %6033 = vmatpush3.bf16.msra.mxu0 %v6487_v12  ;;  %v6491_v12 = vld [vmem:[%s8032_s3 + $0x1b8] sm:$0xff]   ;;  %vm7246_vm3 = vcmp.ge.s32.totalorder %v509_v47, 1  ;;  %v410_v49 = vadd.f32 %v6638_v21, %v6651_v31  ;;  %v8219_v32 = vmov 0.0|0.0   ;;  %v7256_v53 = vpack.c.bf16 %v922_v42, %v923_v3 }
  0x65   : > { %6034 = vmatprep.subr.bf16.mxu0 %v6489_v55  ;;  %v451_v17 = vadd.s32 48, %v6647_v28  ;;  %v873_v44 = vrot.slane %v6794_v6, 7  ;;  %v8081_v47 = vrot.slane %v6796_v7, 7  ;;  %v1739_v21 = vsel %vm8079_vm1, %v1718_v45, %v1719_v57 }
  0x66   : > { %5779 = vmatmul.mubr.bf16.gmra.mrb[28].mxu1 %v7173_v5  ;;  %v1740_v31 = vsel %vm8079_vm1, %v1717_v4, %v1718_v45  ;;  %v468_v20 = vadd.s32 184, %v6647_v28  ;;  %v7269_v3 = vmax.f32 %v410_v49, 0.0  ;;  %vm7271_vm4 = vcmp.le.s32.totalorder %v628_v56, 14  ;;  %vm7292_vm1 = vmpackc.low %vm8091_vm5, %vm7231_vm12 }
  0x67   : > { %6003 = vmatmul.mubr.msk.bf16.gmra.mrb[12].mxu0 %vm7212_vm9, %v7179_v8  ;;  %5798 = vmatprep.mubr.bf16.mxu1 %v8219_v32  ;;  %v453_v6 = vadd.s32 64, %v6647_v28  ;;  %v912_v61 = vsel %vm8080_vm0, %v873_v44, %v8081_v47  ;;  %v913_v4 = vsel %vm8080_vm0, %v8082_v2, %v873_v44  ;;  %v8222_v42 = vmov 0  ;;  %vm7304_vm0 = vmpackc.low %vm7240_vm14, %vm8091_vm5 }
  0x68   : > { %6006 = vmatprep.mubr.msk.bf16.mxu0 %vm7227_vm10, %v7191_v13  ;;  %6035 = vmatpush3.bf16.msra.mxu0 %v6489_v55  ;;  %v7287_v55 = vld [vmem:[%s8032_s3 + $0x1c0] sm:$0xff]   ;;  %v8223_v42 = vsel %vm7292_vm1, 4294967295, %v8222_v42  ;;  %v470_v45 = vadd.s32 200, %v6647_v28  ;;  %v8088_v56 = vrot.slane %v7269_v3, 1  ;;  %v7298_v49 = vpack.c.bf16 %v912_v61, %v913_v4  ;;  %vm7315_vm12 = vmpackc.low %vm8091_vm5, %vm7246_vm3 }
  0x69   : > { %6036 = vmatprep.subr.bf16.mxu0 %v6491_v12  ;;  %v1728_v44 = vrot.slane %v6667_v43, 1  ;;  %v8224_v47 = vmov 0  ;;  %v7308_v26 = vpack.c.bf16 %v1739_v21, %v1740_v31  ;;  %v523_v2 = vand.u32 15, %v451_v17  ;;  %vm7331_vm3 = vmpackc.low %vm7271_vm4, %vm8091_vm5 }
  0x6a   : > { %v8225_v47 = vsel %vm7304_vm0, 4294967295, %v8224_v47  ;;  %v1720_v5 = vrot.slane %v7007_v52, 1  ;;  %v1721_v13 = vrot.slane %v7048_v22, 1  ;;  %v8227_v61 = vmov 0 }
  0x6b   : > { %8226 = vst [vmem:[#allocation30_spill] sm:$0xff] %v8225_v47  ;;  %v8228_v61 = vsel %vm7315_vm12, 4294967295, %v8227_v61  ;;  %v642_v4 = vand.u32 15, %v468_v20  ;;  %v867_v51 = vrot.slane %v6737_v29, 7  ;;  %vm8229_vm14 = vcmp.lt.s32.totalorder %v6647_v28, 7  ;;  %v6486_v29 = vld [vmem:[%s8032_s3 + $0x88] sm:$0xff]  }
  0x6c   : > { %v1730_v21 = vsel %vm8229_vm14, %v8088_v56, %v1728_v44  ;;  %v8230_v17 = vrot.slane %v6663_v41, 1  ;;  %vm8231_vm6 = vmmov %vm8229_vm14  ;;  %6037 = vmatpush3.bf16.msra.mxu0 %v6491_v12  ;;  %v8232_v9 = vmov 0  ;;  %v537_v20 = vand.u32 15, %v453_v6 }
  0x6d   : > { %v8233_v9 = vsel %vm7331_vm3, 4294967295, %v8232_v9  ;;  %v1722_v56 = vrot.slane %v7063_v11, 1  ;;  %v1723_v41 = vrot.slane %v7082_v38, 1  ;;  %6070 = vmatprep.subr.bf16.mxu0 %v7287_v55  ;;  %v656_v12 = vand.u32 15, %v470_v45  ;;  %vm8238_vm4 = vmmov %vm8229_vm14 }
  0x6e   : > { %v1761_v31 = vsel %vm8231_vm6, %v1728_v44, %v8230_v17  ;;  %8234 = vst [vmem:[#allocation31_spill] sm:$0xff] %v8233_v9  ;;  %5799 = vmatmul.mubr.msk.bf16.vlgmr.msra.gmra.mrb[0].mxu1 %vm7292_vm1, %v6699_v63  ;;  %vm7350_vm6 = vcmp.ge.s32.totalorder %v523_v2, 1  ;;  %v1737_v6 = vsel %vm8238_vm4, %v1720_v5, %v1721_v13  ;;  %vm8239_vm14 = vmmov %vm8238_vm4  ;;  %vm1785_vm5 = vcmp.le.s32.totalorder %v642_v4, 14 }
  0x6f   : > { %v7340_v18 = vpack.c.bf16 %v1761_v31, %v1730_v21  ;;  %6007 = vmatmul.mubr.msk.bf16.gmra.mrb[16].mxu0 %vm7304_vm0, %v7244_v35  ;;  %5831 = vmatpush3.bf16.msra.mxu1 %v6934_v23  ;;  %v1738_v44 = vsel %vm8239_vm14, %v1719_v57, %v1720_v5  ;;  %v455_v21 = vadd.s32 80, %v6647_v28  ;;  %v8240_v23 = vrot.slane %v6739_v30, 7  ;;  %v6488_v57 = vld [vmem:[%s8032_s3 + $0x90] sm:$0xff]  }
  0x70   : > { %5802 = vmatprep.mubr.msk.bf16.mxu1 %vm7315_vm12, %v7256_v53  ;;  %6010 = vmatprep.mubr.msk.bf16.mxu0 %vm7331_vm3, %v7308_v26  ;;  %vm8241_vm0 = vcmp.lt.s32.totalorder %v6647_v28, 1  ;;  %v8242_v45 = vrot.slane %v6717_v10, 7  ;;  %v472_v17 = vadd.s32 216, %v6647_v28  ;;  %vm966_vm14 = vcmp.ge.s32.totalorder %v537_v20, 1 }
  0x71   : > { %8235 = vst [vmem:[#allocation32_spill] sm:$0xff] %v7340_v18  ;;  %v918_v2 = vsel %vm8241_vm0, %v867_v51, %v8240_v23  ;;  %vm8243_vm4 = vmmov %vm8241_vm0  ;;  %5832 = vmatprep.subr.bf16.mxu1 %v6486_v29  ;;  %vm8244_vm3 = vcmp.lt.s32.totalorder %v6647_v28, 7  ;;  %v457_v31 = vadd.s32 96, %v6647_v28  ;;  %vm8246_vm0 = vmmov 1  }
  0x72   : > { %v919_v5 = vsel %vm8243_vm4, %v8242_v45, %v867_v51  ;;  %v1735_v4 = vsel %vm8244_vm3, %v1722_v56, %v1723_v41  ;;  %vm8245_vm10 = vmmov %vm8244_vm3  ;;  %v8247_v10 = vmov 0  ;;  %v7389_v51 = vpack.c.bf16 %v1737_v6, %v1738_v44  ;;  %v8379_v6 = vld [vmem:[#allocation30_spill] sm:$0xff] }
  0x73   : > { %v1736_v30 = vsel %vm8245_vm10, %v1721_v13, %v1722_v56  ;;  %vm7385_vm4 = vmpackc.low %vm8246_vm0, %vm7350_vm6  ;;  %vm1787_vm9 = vcmp.le.s32.totalorder %v656_v12, 14  ;;  %v474_v20 = vadd.s32 232, %v6647_v28  ;;  %v8250_v23 = vmov 0  ;;  %5833 = vmatpush3.bf16.msra.mxu1 %v6486_v29 }
  0x74   : > { %v8248_v10 = vsel %vm7385_vm4, 4294967295, %v8247_v10  ;;  %8249 = vst [vmem:[#allocation33_spill] sm:$0xff] %v7389_v51  ;;  %vm7393_vm2 = vmpackc.low %vm1785_vm5, %vm8246_vm0  ;;  %v7397_v13 = vpack.c.bf16 %v918_v2, %v919_v5  ;;  %v551_v56 = vand.u32 15, %v455_v21  ;;  %v1724_v46 = vrot.slane %v7084_v19, 1  ;;  %5834 = vmatprep.subr.bf16.mxu1 %v6488_v57  ;;  %v6490_v5 = vld [vmem:[%s8032_s3 + $0x98] sm:$0xff]  }
  0x75   : > { %v8251_v23 = vsel %vm7393_vm2, 4294967295, %v8250_v23  ;;  %v1725_v45 = vrot.slane %v7134_v15, 1  ;;  %vm7402_vm10 = vmpackc.low %vm8246_vm0, %vm966_vm14  ;;  %v7406_v12 = vpack.c.bf16 %v1735_v4, %v1736_v30  ;;  %v670_v44 = vand.u32 15, %v472_v17 }
  0x76   : > { %8252 = vst [vmem:[#allocation34_spill] sm:$0xff] %v8251_v23  ;;  %v871_v63 = vrot.slane %v6787_v0, 7  ;;  %vm7410_vm5 = vmpackc.low %vm1787_vm9, %vm8246_vm0  ;;  %v8256_v29 = vmov 0  ;;  %v565_v21 = vand.u32 15, %v457_v31  ;;  %v1726_v2 = vrot.slane %v7136_v14, 1  ;;  %5803 = vmatmul.mubr.msk.bf16.gmra.mrb[4].mxu1 %vm7385_vm4, %v7125_v16 }
  0x77   : > { %8255 = vst [vmem:[#allocation35_spill] sm:$0xff] %v7406_v12  ;;  %v8257_v29 = vsel %vm7410_vm5, 4294967295, %v8256_v29  ;;  %v684_v4 = vand.u32 15, %v474_v20  ;;  %6011 = vmatmul.mubr.msk.bf16.gmra.mrb[20].mxu0 %vm7393_vm2, %v7389_v51  ;;  %5806 = vmatprep.mubr.msk.bf16.mxu1 %vm7402_vm10, %v7397_v13  ;;  %vm7427_vm9 = vcmp.ge.s32.totalorder %v551_v56, 1  ;;  %v1733_v17 = vsel %vm8244_vm3, %v1724_v46, %v1725_v45  ;;  %vm8260_vm6 = vmmov %vm8244_vm3 }
  0x78   : > { %v1734_v30 = vsel %vm8260_vm6, %v1723_v41, %v1724_v46  ;;  %v459_v31 = vadd.s32 112, %v6647_v28  ;;  %6014 = vmatprep.mubr.msk.bf16.mxu0 %vm7410_vm5, %v7406_v12  ;;  %vm1789_vm14 = vcmp.le.s32.totalorder %v670_v44, 14  ;;  %5835 = vmatpush3.bf16.msra.mxu1 %v6488_v57  ;;  %v8261_v20 = vrot.slane %v6789_v1, 7 }
  0x79   : > { %vm8262_vm2 = vcmp.lt.s32.totalorder %v6647_v28, 1  ;;  %v8263_v51 = vrot.slane %v6749_v36, 7  ;;  %v476_v41 = vadd.s32 248, %v6647_v28  ;;  %vm970_vm6 = vcmp.ge.s32.totalorder %v565_v21, 1  ;;  %5836 = vmatprep.subr.bf16.mxu1 %v6490_v5  ;;  %v6492_v36 = vld [vmem:[%s8032_s3 + $0xa0] sm:$0xff]  }
  0x7a   : > { %v914_v56 = vsel %vm8262_vm2, %v871_v63, %v8261_v20  ;;  %vm8264_vm3 = vmmov %vm8262_vm2  ;;  %v8265_v46 = vrot.slane %v7269_v3, 1  ;;  %vm8266_vm15 = vcmp.lt.s32.totalorder %v6647_v28, 7  ;;  %v461_v1 = vadd.s32 128, %v6647_v28 }
  0x7b   : > { %v915_v23 = vsel %vm8264_vm3, %v8263_v51, %v871_v63  ;;  %vm8267_vm5 = vmmov %vm8266_vm15  ;;  %vm1791_vm3 = vcmp.le.s32.totalorder %v684_v4, 14  ;;  %v8270_v51 = vmov 0  ;;  %v579_v21 = vand.u32 15, %v459_v31 }
  0x7c   : > { %v1731_v12 = vsel %vm8266_vm15, %v1726_v2, %v8265_v46  ;;  %v1732_v57 = vsel %vm8267_vm5, %v1725_v45, %v1726_v2  ;;  %vm7461_vm2 = vmpackc.low %vm8246_vm0, %vm7427_vm9  ;;  %v7470_v45 = vpack.c.bf16 %v1733_v17, %v1734_v30  ;;  %v7472_v44 = vpack.c.bf16 %v914_v56, %v915_v23  ;;  %5837 = vmatpush3.bf16.msra.mxu1 %v6490_v5  ;;  %v6494_v30 = vld [vmem:[%s8032_s3 + $0xa8] sm:$0xff]  }
  0x7d   : > { %vm7466_vm15 = vmpackc.low %vm1789_vm14, %vm8246_vm0  ;;  %v7479_v0 = vpack.c.bf16 %v1731_v12, %v1732_v57  ;;  %v698_v20 = vand.u32 15, %v476_v41  ;;  %v875_v4 = vrot.slane %v6836_v48, 7  ;;  %v876_v46 = vrot.slane %v6838_v50, 7  ;;  %5838 = vmatprep.subr.bf16.mxu1 %v6492_v36  ;;  %v6496_v41 = vld [vmem:[%s8032_s3 + $0xb0] sm:$0xff]  }
  0x7e   : > { %v8271_v51 = vsel %vm7466_vm15, 4294967295, %v8270_v51  ;;  %vm7475_vm5 = vmpackc.low %vm8246_vm0, %vm970_vm6  ;;  %v8274_v17 = vmov 0  ;;  %v593_v23 = vand.u32 15, %v461_v1  ;;  %5807 = vmatmul.mubr.msk.bf16.gmra.mrb[8].mxu1 %vm7461_vm2, %v7222_v39  ;;  %v481_v12 = vand.u32 15, %v6647_v28 }
  0x7f   : > { %vm7484_vm9 = vmpackc.low %vm1791_vm3, %vm8246_vm0  ;;  %6015 = vmatmul.mubr.msk.bf16.gmra.mrb[24].mxu0 %vm7466_vm15, %v7470_v45  ;;  %5810 = vmatprep.mubr.msk.bf16.mxu1 %vm7475_vm5, %v7472_v44  ;;  %vm972_vm14 = vcmp.ge.s32.totalorder %v579_v21, 1  ;;  %vm1793_vm6 = vcmp.le.s32.totalorder %v698_v20, 14  ;;  %vm8277_vm3 = vcmp.lt.s32.totalorder %v6647_v28, 1  ;;  %v8278_v50 = vrot.slane %v6796_v7, 7 }
  0x80   : > { %v8275_v17 = vsel %vm7484_vm9, 4294967295, %v8274_v17  ;;  %6018 = vmatprep.mubr.msk.bf16.mxu0 %vm7484_vm9, %v7479_v0  ;;  %v910_v48 = vsel %vm8277_vm3, %v875_v4, %v876_v46  ;;  %vm8279_vm13 = vmmov %vm8277_vm3  ;;  %v463_v31 = vadd.s32 144, %v6647_v28  ;;  %5839 = vmatpush3.bf16.msra.mxu1 %v6492_v36  ;;  %vm974_vm15 = vcmp.ge.s32.totalorder %v593_v23, 1 }
  0x81   : > { %8276 = vst [vmem:[#allocation36_spill] sm:$0xff] %v8275_v17  ;;  %v911_v5 = vsel %vm8279_vm13, %v8278_v50, %v875_v4  ;;  %v465_v56 = vadd.s32 160, %v6647_v28  ;;  %5840 = vmatprep.subr.bf16.mxu1 %v6494_v30  ;;  %vm7516_vm9 = vmpackc.low %vm8246_vm0, %vm972_vm14  ;;  %vm958_vm3 = vcmp.ge.s32.totalorder %v481_v12, 1  ;;  %v8282_v7 = vmov 0 }
  0x82   : > { %vm7521_vm11 = vmpackc.low %vm1793_vm6, %vm8246_vm0  ;;  %v7525_v1 = vpack.c.bf16 %v910_v48, %v911_v5  ;;  %v877_v36 = vrot.slane %v6902_v27, 7  ;;  %v878_v21 = vrot.slane %v6904_v34, 7  ;;  %v607_v4 = vand.u32 15, %v463_v31  ;;  %v6498_v27 = vld [vmem:[%s8032_s3 + $0xb8] sm:$0xff]  }
  0x83   : > { %v8283_v7 = vsel %vm7521_vm11, 4294967295, %v8282_v7  ;;  %vm7530_vm13 = vmpackc.low %vm8246_vm0, %vm974_vm15  ;;  %v879_v23 = vrot.slane %v6908_v59, 7  ;;  %v880_v12 = vrot.slane %v6910_v62, 7  ;;  %v8286_v50 = vmov 0 }
  0x84   : > { %5841 = vmatpush3.bf16.msra.mxu1 %v6494_v30  ;;  %vm7537_vm14 = vmpackc.low %vm8246_vm0, %vm958_vm3  ;;  %v621_v48 = vand.u32 15, %v465_v56  ;;  %vm8288_vm15 = vcmp.lt.s32.totalorder %v6647_v28, 1  ;;  %vm976_vm3 = vcmp.ge.s32.totalorder %v607_v4, 1  ;;  %v467_v5 = vadd.s32 176, %v6647_v28 }
  0x85   : > { %v8287_v50 = vsel %vm7537_vm14, 4294967295, %v8286_v50  ;;  %5842 = vmatprep.subr.bf16.mxu1 %v6496_v41  ;;  %v908_v34 = vsel %vm8288_vm15, %v877_v36, %v878_v21  ;;  %vm8289_vm6 = vmmov %vm8288_vm15  ;;  %v469_v31 = vadd.s32 192, %v6647_v28  ;;  %v882_v4 = vrot.slane %v6992_v33, 7 }
  0x86   : > { %5811 = vmatmul.mubr.msk.bf16.gmra.mrb[12].mxu1 %vm7516_vm9, %v7298_v49  ;;  %v909_v59 = vsel %vm8289_vm6, %v876_v46, %v877_v36  ;;  %vm8290_vm8 = vmmov %vm8289_vm6  ;;  %vm978_vm7 = vcmp.ge.s32.totalorder %v621_v48, 1  ;;  %v7569_v46 = vld [vmem:[%s8032_s3 + $0xc0] sm:$0xff]   ;;  %v635_v48 = vand.u32 15, %v467_v5 }
  0x87   : > { %6019 = vmatmul.mubr.msk.bf16.gmra.mrb[28].mxu0 %vm7521_vm11, %v7340_v18  ;;  %5814 = vmatprep.mubr.msk.bf16.mxu1 %vm7530_vm13, %v7525_v1  ;;  %v906_v62 = vsel %vm8290_vm8, %v879_v23, %v880_v12  ;;  %vm8291_vm11 = vmmov %vm8289_vm6  ;;  %v7571_v56 = vpack.c.bf16 %v908_v34, %v909_v59  ;;  %v883_v34 = vrot.slane %v7005_v25, 7  ;;  %v884_v59 = vrot.slane %v7007_v52, 7 }
  0x88   : > { %6038 = vmatprep.mubr.msk.bf16.mxu0 %vm7537_vm14, %v7256_v53  ;;  %v907_v30 = vsel %vm8291_vm11, %v878_v21, %v879_v23  ;;  %5843 = vmatpush3.bf16.msra.mxu1 %v6496_v41  ;;  %vm7574_vm15 = vmpackc.low %vm8246_vm0, %vm976_vm3  ;;  %v881_v41 = vrot.slane %v6990_v24, 7 }
  0x89   : > { %5844 = vmatprep.subr.bf16.mxu1 %v6498_v27  ;;  %v7578_v21 = vpack.c.bf16 %v906_v62, %v907_v30  ;;  %vm7583_vm8 = vmpackc.low %vm8246_vm0, %vm978_vm7  ;;  %v6495_v62 = vld [vmem:[%s8032_s3 + $0x1c8] sm:$0xff]   ;;  %v649_v30 = vand.u32 15, %v469_v31 }
  0x8a   : > { %vm8296_vm7 = vmmov %vm8289_vm6 }
  0x8b   : > { %v904_v33 = vsel %vm8296_vm7, %v881_v41, %v882_v4  ;;  %vm8297_vm11 = vmmov %vm8289_vm6  ;;  %vm980_vm6 = vcmp.ge.s32.totalorder %v635_v48, 1  ;;  %v886_v48 = vrot.slane %v7063_v11, 7 }
  0x8c   : > { %5845 = vmatpush3.bf16.msra.mxu1 %v6498_v27  ;;  %v905_v24 = vsel %vm8297_vm11, %v880_v12, %v881_v41  ;;  %vm8298_vm3 = vmmov %vm8296_vm7  ;;  %v471_v27 = vadd.s32 208, %v6647_v28  ;;  %vm982_vm7 = vcmp.ge.s32.totalorder %v649_v30, 1  ;;  %v6497_v12 = vld [vmem:[%s8032_s3 + $0x1d0] sm:$0xff]  }
  0x8d   : > { %5878 = vmatprep.subr.bf16.mxu1 %v7569_v46  ;;  %v902_v25 = vsel %vm8298_vm3, %v883_v34, %v884_v59  ;;  %v7619_v5 = vpack.c.bf16 %v904_v33, %v905_v24  ;;  %vm7622_vm11 = vmpackc.low %vm8246_vm0, %vm980_vm6  ;;  %v887_v33 = vrot.slane %v7082_v38, 7  ;;  %v888_v24 = vrot.slane %v7084_v19, 7 }
  0x8e   : > { %5815 = vmatmul.mubr.msk.bf16.gmra.mrb[16].mxu1 %vm7574_vm15, %v7571_v56  ;;  %v663_v30 = vand.u32 15, %v471_v27  ;;  %vm8304_vm6 = vmmov %vm8298_vm3 }
  0x8f   : > { %6039 = vmatmul.mubr.msk.bf16.vlgmr.msra.gmra.mrb[0].mxu0 %vm7292_vm1, %v7125_v16  ;;  %5818 = vmatprep.mubr.msk.bf16.mxu1 %vm7583_vm8, %v7578_v21  ;;  %vm8299_vm1 = vmmov %vm8298_vm3 }
  0x90   : > { %6071 = vmatpush3.bf16.msra.mxu0 %v7287_v55  ;;  %6042 = vmatprep.mubr.msk.bf16.mxu0 %vm7315_vm12, %v7397_v13  ;;  %v903_v52 = vsel %vm8299_vm1, %v882_v4, %v883_v34  ;;  %v473_v55 = vadd.s32 224, %v6647_v28  ;;  %v885_v4 = vrot.slane %v7048_v22, 7  ;;  %vm7631_vm1 = vmpackc.low %vm8246_vm0, %vm982_vm7  ;;  %vm984_vm7 = vcmp.ge.s32.totalorder %v663_v30, 1  ;;  %v6503_v30 = vld [vmem:[%s8032_s3 + $0x1e8] sm:$0xff]  }
  0x91   : > { %6072 = vmatprep.subr.bf16.mxu0 %v6495_v62  ;;  %v7626_v41 = vpack.c.bf16 %v902_v25, %v903_v52  ;;  %v6499_v25 = vld [vmem:[%s8032_s3 + $0x1d8] sm:$0xff]   ;;  %vm8305_vm12 = vmmov %vm8298_vm3 }
  0x92   : > { %v677_v18 = vand.u32 15, %v473_v55  ;;  %v900_v22 = vsel %vm8304_vm6, %v885_v4, %v886_v48  ;;  %v901_v11 = vsel %vm8298_vm3, %v884_v59, %v885_v4  ;;  %v898_v38 = vsel %vm8305_vm12, %v887_v33, %v888_v24  ;;  %v6501_v59 = vld [vmem:[%s8032_s3 + $0x1e0] sm:$0xff]   ;;  %vm7667_vm6 = vmpackc.low %vm8246_vm0, %vm984_vm7 }
  0x93   : > { %v7664_v52 = vpack.c.bf16 %v900_v22, %v901_v11  ;;  %v889_v55 = vrot.slane %v7134_v15, 7  ;;  %v890_v4 = vrot.slane %v7136_v14, 7  ;;  %v8313_v22 = vmov 0  ;;  %v6509_v11 = vld [vmem:[%s8032_s3 + $0x200] sm:$0xff]  }
  0x94   : > { %6073 = vmatpush3.bf16.msra.mxu0 %v6495_v62  ;;  %v475_v62 = vadd.s32 240, %v6647_v28  ;;  %vm986_vm14 = vcmp.ge.s32.totalorder %v677_v18, 1  ;;  %v8309_v18 = vmov 0 }
  0x95   : > { %6074 = vmatprep.subr.bf16.mxu0 %v6497_v12  ;;  %vm7676_vm12 = vmpackc.low %vm8246_vm0, %vm986_vm14 }
  0x96   : > { %5819 = vmatmul.mubr.msk.bf16.gmra.mrb[20].mxu1 %vm7622_vm11, %v7619_v5  ;;  %v8310_v18 = vsel %vm7676_vm12, 4294967295, %v8309_v18  ;;  %vm8312_vm14 = vmmov %vm8298_vm3 }
  0x97   : > { %6043 = vmatmul.mubr.msk.bf16.gmra.mrb[4].mxu0 %vm7385_vm4, %v7222_v39  ;;  %5822 = vmatprep.mubr.msk.bf16.mxu1 %vm7631_vm1, %v7626_v41  ;;  %vm8306_vm4 = vmmov %vm8298_vm3  ;;  %v897_v14 = vsel %vm8312_vm14, %v888_v24, %v889_v55  ;;  %v6507_v24 = vld [vmem:[%s8032_s3 + $0x1f8] sm:$0xff]  }
  0x98   : > { %6046 = vmatprep.mubr.msk.bf16.mxu0 %vm7402_vm10, %v7472_v44  ;;  %6075 = vmatpush3.bf16.msra.mxu0 %v6497_v12  ;;  %v899_v19 = vsel %vm8306_vm4, %v886_v48, %v887_v33  ;;  %v691_v48 = vand.u32 15, %v475_v62  ;;  %vm8311_vm4 = vmmov %vm8298_vm3  ;;  %v6505_v33 = vld [vmem:[%s8032_s3 + $0x1f0] sm:$0xff]   ;;  %v8318_v62 = vld [vmem:[#allocation13_spill] sm:$0xff] }
  0x99   : > { %6076 = vmatprep.subr.bf16.mxu0 %v6499_v25  ;;  %v7671_v12 = vpack.c.bf16 %v898_v38, %v899_v19  ;;  %v896_v15 = vsel %vm8311_vm4, %v889_v55, %v890_v4  ;;  %v6502_v38 = vld [vmem:[%s8032_s3 + $0xc8] sm:$0xff]   ;;  %vm8317_vm4 = vnez %v8163_v54  ;;  %v6504_v19 = vld [vmem:[%s8032_s3 + $0xd0] sm:$0xff]   ;;  %v8321_v55 = vld [vmem:[#allocation14_spill] sm:$0xff] }
  0x9a   : > { %vm988_vm3 = vcmp.ge.s32.totalorder %v691_v48, 1  ;;  %v8322_v48 = vld [vmem:[#allocation19_spill] sm:$0xff]  ;;  %v8377_v54 = vld [vmem:[#allocation29_spill] sm:$0xff] }
  0x9b   : > { %vm7705_vm7 = vmpackc.low %vm8246_vm0, %vm988_vm3  ;;  %vm8316_vm0 = vnez %v8161_v40  ;;  %vm8323_vm3 = vnez %v8322_v48  ;;  %v8375_v40 = vld [vmem:[#allocation28_spill] sm:$0xff] }
  0x9c   : > { %6077 = vmatpush3.bf16.msra.mxu0 %v6499_v25  ;;  %v7702_v25 = vpack.c.bf16 %v896_v15, %v897_v14  ;;  %v8314_v22 = vsel %vm7705_vm7, 4294967295, %v8313_v22 }
  0x9d   : > { %6078 = vmatprep.subr.bf16.mxu0 %v6501_v59  ;;  %8315 = vst [vmem:[#allocation37_spill] sm:$0xff] %v8314_v22  ;;  %v8328_v22 = vld [vmem:[#allocation24_spill] sm:$0xff] }
  0x9e   : > { %5823 = vmatmul.mubr.msk.bf16.gmra.mrb[24].mxu1 %vm7667_vm6, %v7664_v52 }
  0x9f   : > { %6047 = vmatmul.mubr.msk.bf16.gmra.mrb[8].mxu0 %vm7461_vm2, %v7298_v49  ;;  %5826 = vmatprep.mubr.msk.bf16.mxu1 %vm7676_vm12, %v7671_v12 }
  0xa0   : > { %6050 = vmatprep.mubr.msk.bf16.mxu0 %vm7475_vm5, %v7525_v1  ;;  %6079 = vmatpush3.bf16.msra.mxu0 %v6501_v59  ;;  %v8319_v59 = vld [vmem:[#allocation18_spill] sm:$0xff] }
  0xa1   : > { %6080 = vmatprep.subr.bf16.mxu0 %v6503_v30  ;;  %vm8320_vm14 = vnez %v8319_v59 }
  0xa4   : > { %6081 = vmatpush3.bf16.msra.mxu0 %v6503_v30  ;;  %v8324_v30 = vrot.slane %v6667_v43, 7 }
  0xa5   : > { %6082 = vmatprep.subr.bf16.mxu0 %v6505_v33 }
  0xa6   : > { %5827 = vmatmul.mubr.msk.bf16.gmra.mrb[28].mxu1 %vm7705_vm7, %v7702_v25  ;;  %vm8325_vm7 = vcmp.lt.s32.totalorder %v6647_v28, 1  ;;  %v8330_v28 = vld [vmem:[#allocation21_spill] sm:$0xff] }
  0xa7   : > { %6051 = vmatmul.mubr.msk.bf16.gmra.mrb[12].mxu0 %vm7516_vm9, %v7571_v56  ;;  %5846 = vmatprep.mubr.bf16.mxu1 %v8219_v32 }
  0xa8   : > { %6054 = vmatprep.mubr.msk.bf16.mxu0 %vm7530_vm13, %v7578_v21  ;;  %6083 = vmatpush3.bf16.msra.mxu0 %v6505_v33  ;;  %v6508_v33 = vld [vmem:[%s8032_s3 + $0xe0] sm:$0xff]  }
  0xa9   : > { %6084 = vmatprep.subr.bf16.mxu0 %v6507_v24 }
  0xac   : > { %6085 = vmatpush3.bf16.msra.mxu0 %v6507_v24 }
  0xad   : > { %6118 = vmatprep.subr.bf16.mxu0 %v6509_v11 }
  0xae   : > { %5847 = vmatmul.mubr.msk.bf16.vlgmr.msra.gmra.mrb[0].mxu1 %vm8316_vm0, %v6887_v37  ;;  %v891_v37 = vrot.slane %v7269_v3, 7 }
  0xaf   : > { %6055 = vmatmul.mubr.msk.bf16.gmra.mrb[16].mxu0 %vm7574_vm15, %v7619_v5  ;;  %5879 = vmatpush3.bf16.msra.mxu1 %v7569_v46  ;;  %v6506_v46 = vld [vmem:[%s8032_s3 + $0xd8] sm:$0xff]  }
  0xb0   : > { %5850 = vmatprep.mubr.msk.bf16.mxu1 %vm8317_vm4, %v6915_v58  ;;  %6058 = vmatprep.mubr.msk.bf16.mxu0 %vm7583_vm8, %v7626_v41  ;;  %v894_v15 = vsel %vm8325_vm7, %v891_v37, %v8324_v30  ;;  %v8333_v30 = vld [vmem:[#allocation22_spill] sm:$0xff] }
  0xb1   : > { %5880 = vmatprep.subr.bf16.mxu1 %v6502_v38 }
  0xb3   : > { %5881 = vmatpush3.bf16.msra.mxu1 %v6502_v38  ;;  %v6510_v38 = vld [vmem:[%s8032_s3 + $0xe8] sm:$0xff]  }
  0xb4   : > { %5882 = vmatprep.subr.bf16.mxu1 %v6504_v19 }
  0xb6   : > { %5851 = vmatmul.mubr.msk.bf16.gmra.mrb[4].mxu1 %vm8320_vm14, %v8318_v62  ;;  %vm8326_vm14 = vmmov %vm8325_vm7 }
  0xb7   : > { %6059 = vmatmul.mubr.msk.bf16.gmra.mrb[20].mxu0 %vm7622_vm11, %v7664_v52  ;;  %5854 = vmatprep.mubr.msk.bf16.mxu1 %vm8323_vm3, %v8321_v55  ;;  %v895_v14 = vsel %vm8326_vm14, %v890_v4, %v891_v37  ;;  %vm8329_vm3 = vnez %v8328_v22  ;;  %v8331_v4 = vld [vmem:[#allocation25_spill] sm:$0xff]  ;;  %v6512_v37 = vld [vmem:[%s8032_s3 + $0xf0] sm:$0xff]   ;;  %vm8334_vm14 = vnez %v8207_v60  ;;  %v8338_v60 = vld [vmem:[#allocation27_spill] sm:$0xff] }
  0xb8   : > { %6062 = vmatprep.mubr.msk.bf16.mxu0 %vm7631_vm1, %v7671_v12  ;;  %5883 = vmatpush3.bf16.msra.mxu1 %v6504_v19  ;;  %v7769_v24 = vpack.c.bf16 %v894_v15, %v895_v14  ;;  %v8327_v19 = vld [vmem:[#allocation17_spill] sm:$0xff]  ;;  %vm8332_vm7 = vnez %v8331_v4  ;;  %v8337_v14 = vld [vmem:[#allocation3_spill] sm:$0xff] }
  0xb9   : > { %5884 = vmatprep.subr.bf16.mxu1 %v6506_v46  ;;  %v8335_v15 = vld [vmem:[#allocation29_spill] sm:$0xff] }
  0xbc   : > { %5885 = vmatpush3.bf16.msra.mxu1 %v6506_v46  ;;  %v6514_v46 = vld [vmem:[%s8032_s3 + $0xf8] sm:$0xff]  }
  0xbd   : > { %5886 = vmatprep.subr.bf16.mxu1 %v6508_v33 }
  0xbe   : > { %5855 = vmatmul.mubr.msk.bf16.gmra.mrb[8].mxu1 %vm8329_vm3, %v8327_v19 }
  0xbf   : > { %6063 = vmatmul.mubr.msk.bf16.gmra.mrb[24].mxu0 %vm7667_vm6, %v7702_v25  ;;  %5858 = vmatprep.mubr.msk.bf16.mxu1 %vm8332_vm7, %v8330_v28  ;;  %vm8336_vm7 = vnez %v8335_v15  ;;  %v8340_v15 = vld [vmem:[#allocation4_spill] sm:$0xff] }
  0xc0   : > { %6066 = vmatprep.mubr.msk.bf16.mxu0 %vm7676_vm12, %v7769_v24  ;;  %5887 = vmatpush3.bf16.msra.mxu1 %v6508_v33  ;;  %v6511_v33 = vld [vmem:[%s8032_s3 + $0x208] sm:$0xff]   ;;  %vm8359_vm12 = vnez %v8223_v42  ;;  %v6522_v42 = vld [vmem:[%s8032_s3 + $0x110] sm:$0xff]  }
  0xc1   : > { %5888 = vmatprep.subr.bf16.mxu1 %v6510_v38 }
  0xc4   : > { %5889 = vmatpush3.bf16.msra.mxu1 %v6510_v38  ;;  %v6520_v38 = vld [vmem:[%s8032_s3 + $0x100] sm:$0xff]  }
  0xc5   : > { %5890 = vmatprep.subr.bf16.mxu1 %v6512_v37 }
  0xc6   : > { %5859 = vmatmul.mubr.msk.bf16.gmra.mrb[12].mxu1 %vm8334_vm14, %v8333_v30  ;;  %vm8339_vm14 = vnez %v8225_v47  ;;  %v8349_v47 = vld [vmem:[#allocation35_spill] sm:$0xff] }
  0xc7   : > { %6067 = vmatmul.mubr.bf16.gmra.mrb[28].mxu0 %v8219_v32  ;;  %5862 = vmatprep.mubr.msk.bf16.mxu1 %vm8336_vm7, %v7179_v8  ;;  %vm8341_vm7 = vnez %v8233_v9  ;;  %v8345_v9 = vld [vmem:[#allocation6_spill] sm:$0xff] }
  0xc8   : > { %6086 = vmatprep.mubr.bf16.mxu0 %v8337_v14  ;;  %5891 = vmatpush3.bf16.msra.mxu1 %v6512_v37  ;;  %v8342_v37 = vld [vmem:[#allocation5_spill] sm:$0xff] }
  0xc9   : > { %5892 = vmatprep.subr.bf16.mxu1 %v6514_v46  ;;  %v6515_v14 = vld [vmem:[%s8032_s3 + $0x218] sm:$0xff]  }
  0xcc   : > { %5893 = vmatpush3.bf16.msra.mxu1 %v6514_v46  ;;  %v6513_v46 = vld [vmem:[%s8032_s3 + $0x210] sm:$0xff]  }
  0xcd   : > { %6166 = vmatprep.subr.bf16.mxu1 %v6520_v38 }
  0xce   : > { %5863 = vmatmul.mubr.msk.bf16.gmra.mrb[16].mxu1 %vm8339_vm14, %v8338_v60 }
  0xcf   : > { %6087 = vmatmul.mubr.bf16.vlgmr.msra.gmra.mrb[0].mxu0 %v8340_v15  ;;  %5866 = vmatprep.mubr.msk.bf16.mxu1 %vm8341_vm7, %v7244_v35  ;;  %v8343_v15 = vld [vmem:[#allocation34_spill] sm:$0xff]  ;;  %vm8347_vm7 = vnez %v8257_v29 }
  0xd0   : > { %6119 = vmatpush3.bf16.msra.mxu0 %v6509_v11  ;;  %6090 = vmatprep.mubr.bf16.mxu0 %v8342_v37  ;;  %vm8344_vm14 = vnez %v8343_v15  ;;  %v8346_v11 = vld [vmem:[#allocation33_spill] sm:$0xff]  ;;  %v8348_v37 = vld [vmem:[#allocation7_spill] sm:$0xff] }
  0xd1   : > { %6120 = vmatprep.subr.bf16.mxu0 %v6511_v33  ;;  %v6517_v15 = vld [vmem:[%s8032_s3 + $0x228] sm:$0xff]  }
  0xd4   : > { %6121 = vmatpush3.bf16.msra.mxu0 %v6511_v33  ;;  %v6516_v33 = vld [vmem:[%s8032_s3 + $0x220] sm:$0xff]  }
  0xd5   : > { %6122 = vmatprep.subr.bf16.mxu0 %v6513_v46 }
  0xd6   : > { %5867 = vmatmul.mubr.msk.bf16.gmra.mrb[20].mxu1 %vm8344_vm14, %v7308_v26  ;;  %vm8350_vm14 = vnez %v8271_v51 }
  0xd7   : > { %6091 = vmatmul.mubr.bf16.gmra.mrb[4].mxu0 %v8345_v9  ;;  %5870 = vmatprep.mubr.msk.bf16.mxu1 %vm8347_vm7, %v8346_v11  ;;  %v8351_v9 = vld [vmem:[#allocation8_spill] sm:$0xff]  ;;  %vm8352_vm7 = vnez %v8275_v17  ;;  %v8356_v17 = vld [vmem:[#allocation2_spill] sm:$0xff] }
  0xd8   : > { %6094 = vmatprep.mubr.bf16.mxu0 %v8348_v37  ;;  %6123 = vmatpush3.bf16.msra.mxu0 %v6513_v46  ;;  %v8353_v46 = vld [vmem:[#allocation9_spill] sm:$0xff] }
  0xd9   : > { %6124 = vmatprep.subr.bf16.mxu0 %v6515_v14  ;;  %v6519_v37 = vld [vmem:[%s8032_s3 + $0x238] sm:$0xff]  }
  0xdc   : > { %6125 = vmatpush3.bf16.msra.mxu0 %v6515_v14  ;;  %v6518_v14 = vld [vmem:[%s8032_s3 + $0x230] sm:$0xff]  }
  0xdd   : > { %6126 = vmatprep.subr.bf16.mxu0 %v6516_v33 }
  0xde   : > { %5871 = vmatmul.mubr.msk.bf16.gmra.mrb[24].mxu1 %vm8350_vm14, %v8349_v47  ;;  %vm8354_vm14 = vnez %v8283_v7  ;;  %v8362_v7 = vld [vmem:[#allocation16_spill] sm:$0xff] }
  0xdf   : > { %6095 = vmatmul.mubr.bf16.gmra.mrb[8].mxu0 %v8351_v9  ;;  %5874 = vmatprep.mubr.msk.bf16.mxu1 %vm8352_vm7, %v7470_v45  ;;  %v8355_v9 = vld [vmem:[#allocation11_spill] sm:$0xff]  ;;  %vm8357_vm7 = vnez %v8287_v50  ;;  %v2581_v50 = vpack.c.bf16 %v6667_v43, %v7269_v3  ;;  %v6526_v3 = vld [vmem:[%s8032_s3 + $0x130] sm:$0xff]  }
  0xe0   : > { %6098 = vmatprep.mubr.bf16.mxu0 %v8353_v46  ;;  %6127 = vmatpush3.bf16.msra.mxu0 %v6516_v33  ;;  %v8358_v33 = vld [vmem:[#allocation12_spill] sm:$0xff]  ;;  %v6525_v43 = vld [vmem:[%s8032_s3 + $0x128] sm:$0xff]  }
  0xe1   : > { %6128 = vmatprep.subr.bf16.mxu0 %v6517_v15 }
  0xe4   : > { %6129 = vmatpush3.bf16.msra.mxu0 %v6517_v15  ;;  %v8360_v15 = vld [vmem:[#allocation15_spill] sm:$0xff] }
  0xe5   : > { %6130 = vmatprep.subr.bf16.mxu0 %v6518_v14 }
  0xe6   : > { %5875 = vmatmul.mubr.msk.bf16.gmra.mrb[28].mxu1 %vm8354_vm14, %v7479_v0  ;;  %vm8361_vm14 = vnez %v8228_v61  ;;  %v6523_v61 = vld [vmem:[%s8032_s3 + $0x118] sm:$0xff]  }
  0xe7   : > { %6099 = vmatmul.mubr.bf16.gmra.mrb[12].mxu0 %v8355_v9  ;;  %5894 = vmatprep.mubr.msk.bf16.mxu1 %vm8357_vm7, %v8356_v17  ;;  %v6521_v17 = vld [vmem:[%s8032_s3 + $0x108] sm:$0xff]  }
  0xe8   : > { %6102 = vmatprep.mubr.bf16.mxu0 %v8358_v33  ;;  %6131 = vmatpush3.bf16.msra.mxu0 %v6518_v14 }
  0xe9   : > { %6132 = vmatprep.subr.bf16.mxu0 %v6519_v37 }
  0xec   : > { %6133 = vmatpush3.bf16.msra.mxu0 %v6519_v37 }
  0xee   : > { %5895 = vmatmul.mubr.msk.bf16.vlgmr.msra.gmra.mrb[0].mxu1 %vm8359_vm12, %v7256_v53  ;;  %vm8363_vm12 = vnez %v8248_v10  ;;  %v8364_v53 = vld [vmem:[#allocation20_spill] sm:$0xff]  ;;  %v6524_v10 = vld [vmem:[%s8032_s3 + $0x120] sm:$0xff]  }
  0xef   : > { %6103 = vmatmul.mubr.bf16.gmra.mrb[16].mxu0 %v8360_v15  ;;  %6174 = vmatpush3.bf16.msra.mxu1 %v6520_v38 }
  0xf0   : > { %5898 = vmatprep.mubr.msk.bf16.mxu1 %vm8361_vm14, %v7125_v16  ;;  %6106 = vmatprep.mubr.bf16.mxu0 %v8362_v7  ;;  %v8365_v16 = vld [vmem:[#allocation23_spill] sm:$0xff] }
  0xf1   : > { %6167 = vmatprep.subr.bf16.mxu1 %v6521_v17 }
  0xf3   : > { %6175 = vmatpush3.bf16.msra.mxu1 %v6521_v17 }
  0xf4   : > { %6168 = vmatprep.subr.bf16.mxu1 %v6522_v42 }
  0xf6   : > { %5899 = vmatmul.mubr.msk.bf16.gmra.mrb[4].mxu1 %vm8363_vm12, %v7397_v13  ;;  %v6527_v13 = vld [vmem:[%s8032_s3 + $0x138] sm:$0xff]  }
  0xf7   : > { %6107 = vmatmul.mubr.bf16.gmra.mrb[20].mxu0 %v8364_v53  ;;  %5902 = vmatprep.mubr.msk.bf16.mxu1 %vm7402_vm10, %v7222_v39  ;;  %v8366_v39 = vld [vmem:[#allocation26_spill] sm:$0xff] }
  0xf8   : > { %6110 = vmatprep.mubr.bf16.mxu0 %v8365_v16  ;;  %6176 = vmatpush3.bf16.msra.mxu1 %v6522_v42 }
  0xf9   : > { %6169 = vmatprep.subr.bf16.mxu1 %v6523_v61 }
  0xfc   : > { %6177 = vmatpush3.bf16.msra.mxu1 %v6523_v61 }
  0xfd   : > { %6170 = vmatprep.subr.bf16.mxu1 %v6524_v10 }
  0xfe   : > { %5903 = vmatmul.mubr.msk.bf16.gmra.mrb[8].mxu1 %vm7461_vm2, %v7472_v44  ;;  %vm8369_vm2 = vnez %v8319_v59 }
  0xff   : > { %6111 = vmatmul.mubr.bf16.gmra.mrb[24].mxu0 %v8366_v39  ;;  %5906 = vmatprep.mubr.msk.bf16.mxu1 %vm7475_vm5, %v7298_v49  ;;  %v8367_v49 = vld [vmem:[#allocation10_spill] sm:$0xff]  ;;  %vm8370_vm5 = vnez %v8322_v48 }
 0x100   : > { %6114 = vmatprep.mubr.bf16.mxu0 %v2581_v50  ;;  %6178 = vmatpush3.bf16.msra.mxu1 %v6524_v10  ;;  %vm8368_vm10 = vnez %v8367_v49 }
 0x101   : > { %6171 = vmatprep.subr.bf16.mxu1 %v6525_v43 }
 0x104   : > { %6179 = vmatpush3.bf16.msra.mxu1 %v6525_v43 }
 0x105   : > { %6172 = vmatprep.subr.bf16.mxu1 %v6526_v3 }
 0x106   : > { %5907 = vmatmul.mubr.msk.bf16.gmra.mrb[12].mxu1 %vm7516_vm9, %v7525_v1  ;;  %vm8371_vm9 = vnez %v8310_v18 }
 0x107   : > { %6115 = vmatmul.mubr.bf16.gmra.mrb[28].mxu0 %v8219_v32  ;;  %5910 = vmatprep.mubr.msk.bf16.mxu1 %vm7530_vm13, %v7571_v56  ;;  %vm8372_vm13 = vnez %v8331_v4 }
 0x108   : > { %6134 = vmatprep.mubr.msk.bf16.mxu0 %vm8368_vm10, %v6915_v58  ;;  %6180 = vmatpush3.bf16.msra.mxu1 %v6526_v3  ;;  %v8373_v58 = vld [vmem:[#allocation37_spill] sm:$0xff] }
 0x109   : > { %6173 = vmatprep.subr.bf16.mxu1 %v6527_v13 }
 0x10c   : > { %6181 = vmatpush3.bf16.msra.mxu1 %v6527_v13 }
 0x10e   : > { %5911 = vmatmul.mubr.msk.bf16.gmra.mrb[16].mxu1 %vm7574_vm15, %v7578_v21  ;;  %vm8374_vm15 = vnez %v8373_v58 }
 0x10f   : > { %6135 = vmatmul.mubr.msk.bf16.vlgmr.msra.gmra.mrb[0].mxu0 %vm8316_vm0, %v8318_v62  ;;  %5914 = vmatprep.mubr.msk.bf16.mxu1 %vm7583_vm8, %v7619_v5  ;;  %vm8376_vm8 = vnez %v8375_v40 }
 0x110   : > { %6138 = vmatprep.mubr.msk.bf16.mxu0 %vm8317_vm4, %v8321_v55  ;;  %vm8385_vm4 = vnez %v8257_v29 }
 0x116   : > { %5915 = vmatmul.mubr.msk.bf16.gmra.mrb[20].mxu1 %vm7622_vm11, %v7626_v41  ;;  %vm8378_vm11 = vnez %v8377_v54 }
 0x117   : > { %6139 = vmatmul.mubr.msk.bf16.gmra.mrb[4].mxu0 %vm8369_vm2, %v8327_v19  ;;  %5918 = vmatprep.mubr.msk.bf16.mxu1 %vm7631_vm1, %v7664_v52  ;;  %vm8380_vm1 = vnez %v8379_v6 }
 0x118   : > { %6142 = vmatprep.mubr.msk.bf16.mxu0 %vm8370_vm5, %v8330_v28 }
 0x11e   : > { %5919 = vmatmul.mubr.msk.bf16.gmra.mrb[24].mxu1 %vm7667_vm6, %v7671_v12 }
 0x11f   : > { %6143 = vmatmul.mubr.msk.bf16.gmra.mrb[8].mxu0 %vm8329_vm3, %v8333_v30  ;;  %5922 = vmatprep.mubr.msk.bf16.mxu1 %vm8371_vm9, %v7702_v25  ;;  %vm8386_vm3 = vnez %v8271_v51 }
 0x120   : > { %6146 = vmatprep.mubr.msk.bf16.mxu0 %vm8372_vm13, %v7179_v8  ;;  %v8381_v8 = vld [vmem:[#allocation31_spill] sm:$0xff] }
 0x121   : > { %vm8382_vm6 = vnez %v8381_v8 }
 0x126   : > { %5923 = vmatmul.mubr.msk.bf16.gmra.mrb[28].mxu1 %vm8374_vm15, %v7769_v24 }
 0x127   : > { %6147 = vmatmul.mubr.msk.bf16.gmra.mrb[12].mxu0 %vm8376_vm8, %v8338_v60  ;;  %5958 = vmatprep.mubr.bf16.mxu1 %v8355_v9  ;;  %v8383_v60 = vld [vmem:[#allocation34_spill] sm:$0xff] }
 0x128   : > { %6150 = vmatprep.mubr.msk.bf16.mxu0 %vm8378_vm11, %v7244_v35  ;;  %vm8384_vm0 = vnez %v8383_v60  ;;  %v8387_v35 = vld [vmem:[#allocation32_spill] sm:$0xff] }
 0x12e   : > { %5959 = vmatmul.mubr.bf16.vlgmr.msra.gmra.mrb[16].mxu1 %v8358_v33 }
 0x12f   : > { %6151 = vmatmul.mubr.msk.bf16.gmra.mrb[16].mxu0 %vm8380_vm1, %v7308_v26  ;;  %5962 = vmatprep.mubr.bf16.mxu1 %v8360_v15  ;;  %v8388_v26 = vld [vmem:[#allocation36_spill] sm:$0xff] }
 0x130   : > { %6154 = vmatprep.mubr.msk.bf16.mxu0 %vm8382_vm6, %v8346_v11  ;;  %vm8389_vm7 = vnez %v8388_v26 }
 0x136   : > { %5963 = vmatmul.mubr.bf16.gmra.mrb[20].mxu1 %v8362_v7 }
 0x137   : > { %6155 = vmatmul.mubr.msk.bf16.gmra.mrb[20].mxu0 %vm8384_vm0, %v8349_v47  ;;  %5966 = vmatprep.mubr.bf16.mxu1 %v8364_v53 }
 0x138   : > { %6158 = vmatprep.mubr.msk.bf16.mxu0 %vm8385_vm4, %v7470_v45 }
 0x13e   : > { %5967 = vmatmul.mubr.bf16.gmra.mrb[24].mxu1 %v8365_v16 }
 0x13f   : > { %6159 = vmatmul.mubr.msk.bf16.gmra.mrb[24].mxu0 %vm8386_vm3, %v7479_v0  ;;  %5970 = vmatprep.mubr.bf16.mxu1 %v8366_v39 }
 0x140   : > { %6162 = vmatprep.mubr.msk.bf16.mxu0 %vm8389_vm7, %v8387_v35 }
 0x146   : > { %5971 = vmatmul.mubr.bf16.gmra.mrb[28].mxu1 %v2581_v50 }
 0x147   : > { %6163 = vmatmul.mubr.bf16.gmra.mrb[28].mxu0 %v8219_v32 }
 0x1c1   : > { %v5896_v47 = vpop.f32.mrb[0].mxu1 }
 0x1c2   : > { %v2407_v63 = vpop.f32.mrb[1].mxu1 }
 0x1c3   : > { %v5897_v44 = vpop.f32.mrb[2].mxu1 }
 0x1c4   : > { %v2410_v29 = vpop.f32.mrb[3].mxu1 }
 0x1c9   : > { %v5900_v45 = vpop.f32.mrb[4].mxu1 }
 0x1ca   : > { %v2423_v2 = vpop.f32.mrb[5].mxu1 }
 0x1cb   : > { %v5901_v57 = vpop.f32.mrb[6].mxu1 }
 0x1cc   : > { %v2426_v1 = vpop.f32.mrb[7].mxu1 }
 0x1d1   : > { %v5904_v51 = vpop.f32.mrb[8].mxu1 }
 0x1d2   : > { %v2439_v0 = vpop.f32.mrb[9].mxu1 }
 0x1d3   : > { %v5905_v20 = vpop.f32.mrb[10].mxu1 }
 0x1d4   : > { %v2442_v56 = vpop.f32.mrb[11].mxu1 }
 0x1d9   : > { %v7983_v36 = vpop.f32.mrb[12].mxu1 }
 0x1da   : > { %v7985_v21 = vpop.f32.mrb[13].mxu1 }
 0x1db   : > { %v7987_v23 = vpop.f32.mrb[14].mxu1 }
 0x1dc   : > { %v7989_v32 = vpop.f32.mrb[15].mxu1 }
 0x1e2   : > { %v6136_v5 = vpop.f32.mrb[0].mxu0 }
 0x1e3   : > { %v6182_v31 = vadd.f32 %v6136_v5, %v5896_v47  ;;  %v4257_v41 = vpop.f32.mrb[1].mxu0 }
 0x1e4   : > { %v6183_v34 = vadd.f32 %v4257_v41, %v2407_v63  ;;  %v6137_v52 = vpop.f32.mrb[2].mxu0 }
 0x1e5   : > { %v6184_v27 = vadd.f32 %v6137_v52, %v5897_v44  ;;  %v4260_v12 = vpop.f32.mrb[3].mxu0  ;;  %v4616_v48 = vmul.f32 %v6182_v31, %v6182_v31 }
 0x1e6   : > { %v6185_v18 = vadd.f32 %v4260_v12, %v2410_v29  ;;  %v4614_v22 = vmul.f32 %v6183_v34, %v6183_v34 }
 0x1e7   : > { %v5416_v25 = vpack.c.bf16 %v6184_v27, %v6182_v31  ;;  %v4617_v38 = vmul.f32 %v6184_v27, %v6184_v27 }
 0x1e8   : > { %v5411_v62 = vpack.c.bf16 %v6185_v18, %v6183_v34  ;;  %v4576_v59 = vadd.f32 %v6185_v18, %v6183_v34  ;;  %v4615_v55 = vmul.f32 %v6185_v18, %v6185_v18 }
 0x1e9   : > { %5503 = vst [vmem:[%s7996_s26 + $0x8] sm:$0xff] %v5416_v25  }
 0x1ea   : > { %5412 = vst [vmem:[%s7996_s26] sm:$0xff] %v5411_v62   ;;  %v4577_v24 = vadd.f32 %v6182_v31, %v4576_v59  ;;  %v4646_v19 = vadd.f32 %v4615_v55, %v4614_v22  ;;  %v6140_v28 = vpop.f32.mrb[4].mxu0 }
 0x1eb   : > { %v6186_v4 = vadd.f32 %v6140_v28, %v5900_v45  ;;  %v4273_v30 = vpop.f32.mrb[5].mxu0 }
 0x1ec   : > { %v4647_v11 = vadd.f32 %v4646_v19, %v4616_v48  ;;  %v6187_v46 = vadd.f32 %v4273_v30, %v2423_v2  ;;  %v4578_v14 = vadd.f32 %v6184_v27, %v4577_v24  ;;  %v6141_v37 = vpop.f32.mrb[6].mxu0 }
 0x1ed   : > { %v6188_v9 = vadd.f32 %v6141_v37, %v5901_v57  ;;  %v4276_v33 = vpop.f32.mrb[7].mxu0  ;;  %v4620_v39 = vmul.f32 %v6186_v4, %v6186_v4 }
 0x1ee   : > { %v4579_v15 = vadd.f32 %v6187_v46, %v4578_v14  ;;  %v4618_v7 = vmul.f32 %v6187_v46, %v6187_v46  ;;  %v4648_v17 = vadd.f32 %v4647_v11, %v4617_v38  ;;  %v6189_v42 = vadd.f32 %v4276_v33, %v2426_v1 }
 0x1ef   : > { %v5426_v53 = vpack.c.bf16 %v6188_v9, %v6186_v4  ;;  %v4621_v40 = vmul.f32 %v6188_v9, %v6188_v9 }
 0x1f0   : > { %v4649_v16 = vadd.f32 %v4648_v17, %v4618_v7  ;;  %v5421_v61 = vpack.c.bf16 %v6189_v42, %v6187_v46  ;;  %v4580_v50 = vadd.f32 %v6189_v42, %v4579_v15  ;;  %v4619_v10 = vmul.f32 %v6189_v42, %v6189_v42 }
 0x1f1   : > { %5505 = vst [vmem:[%s7996_s26 + $0x18] sm:$0xff] %v5426_v53  }
 0x1f2   : > { %5504 = vst [vmem:[%s7996_s26 + $0x10] sm:$0xff] %v5421_v61   ;;  %v4581_v43 = vadd.f32 %v6186_v4, %v4580_v50  ;;  %v4650_v3 = vadd.f32 %v4649_v16, %v4619_v10  ;;  %v6144_v49 = vpop.f32.mrb[8].mxu0 }
 0x1f3   : > { %v6190_v13 = vadd.f32 %v6144_v49, %v5904_v51  ;;  %v4289_v58 = vpop.f32.mrb[9].mxu0 }
 0x1f4   : > { %v4651_v54 = vadd.f32 %v4650_v3, %v4620_v39  ;;  %v6191_v6 = vadd.f32 %v4289_v58, %v2439_v0  ;;  %v4582_v8 = vadd.f32 %v6188_v9, %v4581_v43  ;;  %v6145_v60 = vpop.f32.mrb[10].mxu0 }
 0x1f5   : > { %v6192_v35 = vadd.f32 %v6145_v60, %v5905_v20  ;;  %v4292_v26 = vpop.f32.mrb[11].mxu0  ;;  %v4624_v51 = vmul.f32 %v6190_v13, %v6190_v13 }
 0x1f6   : > { %v4583_v47 = vadd.f32 %v6191_v6, %v4582_v8  ;;  %v4622_v63 = vmul.f32 %v6191_v6, %v6191_v6  ;;  %v4652_v44 = vadd.f32 %v4651_v54, %v4621_v40  ;;  %v6193_v29 = vadd.f32 %v4292_v26, %v2442_v56 }
 0x1f7   : > { %v5436_v45 = vpack.c.bf16 %v6192_v35, %v6190_v13  ;;  %v4625_v20 = vmul.f32 %v6192_v35, %v6192_v35 }
 0x1f8   : > { %v4653_v2 = vadd.f32 %v4652_v44, %v4622_v63  ;;  %v5431_v57 = vpack.c.bf16 %v6193_v29, %v6191_v6  ;;  %v4584_v1 = vadd.f32 %v6193_v29, %v4583_v47  ;;  %v4623_v5 = vmul.f32 %v6193_v29, %v6193_v29 }
 0x1f9   : > { %5507 = vst [vmem:[%s7996_s26 + $0x28] sm:$0xff] %v5436_v45  }
 0x1fa   : > { %5506 = vst [vmem:[%s7996_s26 + $0x20] sm:$0xff] %v5431_v57   ;;  %v4585_v31 = vadd.f32 %v6190_v13, %v4584_v1  ;;  %v4654_v41 = vadd.f32 %v4653_v2, %v4623_v5  ;;  %v6148_v0 = vpop.f32.mrb[12].mxu0 }
 0x1fb   : > { %v6194_v34 = vadd.f32 %v6148_v0, %v7983_v36  ;;  %v4305_v52 = vpop.f32.mrb[13].mxu0 }
 0x1fc   : > { %v4655_v27 = vadd.f32 %v4654_v41, %v4624_v51  ;;  %v6195_v12 = vadd.f32 %v4305_v52, %v7985_v21  ;;  %v4586_v56 = vadd.f32 %v6192_v35, %v4585_v31  ;;  %v6149_v18 = vpop.f32.mrb[14].mxu0 }
 0x1fd   : > { %v6196_v25 = vadd.f32 %v6149_v18, %v7987_v23  ;;  %v4308_v22 = vpop.f32.mrb[15].mxu0  ;;  %v4628_v38 = vmul.f32 %v6194_v34, %v6194_v34 }
 0x1fe   : > { %v4587_v62 = vadd.f32 %v6195_v12, %v4586_v56  ;;  %v4626_v59 = vmul.f32 %v6195_v12, %v6195_v12  ;;  %v4656_v55 = vadd.f32 %v4655_v27, %v4625_v20  ;;  %v6197_v48 = vadd.f32 %v4308_v22, %v7989_v32 }
 0x1ff   : > { %v5446_v24 = vpack.c.bf16 %v6196_v25, %v6194_v34  ;;  %v4629_v33 = vmul.f32 %v6196_v25, %v6196_v25 }
 0x200   : > { %v4657_v19 = vadd.f32 %v4656_v55, %v4626_v59  ;;  %v5441_v36 = vpack.c.bf16 %v6197_v48, %v6195_v12  ;;  %v4588_v28 = vadd.f32 %v6197_v48, %v4587_v62  ;;  %v4627_v4 = vmul.f32 %v6197_v48, %v6197_v48 }
 0x201   : > { %5509 = vst [vmem:[%s7996_s26 + $0x38] sm:$0xff] %v5446_v24   ;;  %v5960_v30 = vpop.f32.mrb[16].mxu1 }
 0x202   : > { %5508 = vst [vmem:[%s7996_s26 + $0x30] sm:$0xff] %v5441_v36   ;;  %v4589_v21 = vadd.f32 %v6194_v34, %v4588_v28  ;;  %v4658_v11 = vadd.f32 %v4657_v19, %v4627_v4  ;;  %v6152_v46 = vpop.f32.mrb[16].mxu0  ;;  %v2745_v14 = vpop.f32.mrb[17].mxu1 }
 0x203   : > { %v6198_v23 = vadd.f32 %v6152_v46, %v5960_v30  ;;  %v4321_v37 = vpop.f32.mrb[17].mxu0  ;;  %v5961_v9 = vpop.f32.mrb[18].mxu1 }
 0x204   : > { %v4659_v15 = vadd.f32 %v4658_v11, %v4628_v38  ;;  %v6199_v32 = vadd.f32 %v4321_v37, %v2745_v14  ;;  %v4590_v7 = vadd.f32 %v6196_v25, %v4589_v21  ;;  %v6153_v17 = vpop.f32.mrb[18].mxu0  ;;  %v2748_v42 = vpop.f32.mrb[19].mxu1 }
 0x205   : > { %v6200_v53 = vadd.f32 %v6153_v17, %v5961_v9  ;;  %v4324_v16 = vpop.f32.mrb[19].mxu0  ;;  %v4632_v54 = vmul.f32 %v6198_v23, %v6198_v23 }
 0x206   : > { %v4591_v61 = vadd.f32 %v6199_v32, %v4590_v7  ;;  %v4630_v50 = vmul.f32 %v6199_v32, %v6199_v32  ;;  %v4660_v10 = vadd.f32 %v4659_v15, %v4629_v33  ;;  %v6201_v39 = vadd.f32 %v4324_v16, %v2748_v42 }
 0x207   : > { %v5456_v43 = vpack.c.bf16 %v6200_v53, %v6198_v23  ;;  %v4633_v44 = vmul.f32 %v6200_v53, %v6200_v53 }
 0x208   : > { %v4661_v3 = vadd.f32 %v4660_v10, %v4630_v50  ;;  %v5451_v49 = vpack.c.bf16 %v6201_v39, %v6199_v32  ;;  %v4592_v13 = vadd.f32 %v6201_v39, %v4591_v61  ;;  %v4631_v58 = vmul.f32 %v6201_v39, %v6201_v39 }
 0x209   : > { %5511 = vst [vmem:[%s7996_s26 + $0x48] sm:$0xff] %v5456_v43   ;;  %v5964_v40 = vpop.f32.mrb[20].mxu1 }
 0x20a   : > { %5510 = vst [vmem:[%s7996_s26 + $0x40] sm:$0xff] %v5451_v49   ;;  %v4593_v6 = vadd.f32 %v6198_v23, %v4592_v13  ;;  %v4662_v8 = vadd.f32 %v4661_v3, %v4631_v58  ;;  %v6156_v60 = vpop.f32.mrb[20].mxu0  ;;  %v2761_v35 = vpop.f32.mrb[21].mxu1 }
 0x20b   : > { %v6202_v26 = vadd.f32 %v6156_v60, %v5964_v40  ;;  %v4337_v47 = vpop.f32.mrb[21].mxu0  ;;  %v5965_v63 = vpop.f32.mrb[22].mxu1 }
 0x20c   : > { %v4663_v29 = vadd.f32 %v4662_v8, %v4632_v54  ;;  %v6203_v45 = vadd.f32 %v4337_v47, %v2761_v35  ;;  %v4594_v2 = vadd.f32 %v6200_v53, %v4593_v6  ;;  %v6157_v57 = vpop.f32.mrb[22].mxu0  ;;  %v2764_v1 = vpop.f32.mrb[23].mxu1 }
 0x20d   : > { %v6204_v5 = vadd.f32 %v6157_v57, %v5965_v63  ;;  %v4340_v51 = vpop.f32.mrb[23].mxu0  ;;  %v4636_v25 = vmul.f32 %v6202_v26, %v6202_v26 }
 0x20e   : > { %v4595_v31 = vadd.f32 %v6203_v45, %v4594_v2  ;;  %v4634_v41 = vmul.f32 %v6203_v45, %v6203_v45  ;;  %v4664_v0 = vadd.f32 %v4663_v29, %v4633_v44  ;;  %v6205_v34 = vadd.f32 %v4340_v51, %v2764_v1 }
 0x20f   : > { %v5466_v52 = vpack.c.bf16 %v6204_v5, %v6202_v26  ;;  %v4637_v36 = vmul.f32 %v6204_v5, %v6204_v5 }
 0x210   : > { %v4665_v20 = vadd.f32 %v4664_v0, %v4634_v41  ;;  %v5461_v27 = vpack.c.bf16 %v6205_v34, %v6203_v45  ;;  %v4596_v12 = vadd.f32 %v6205_v34, %v4595_v31  ;;  %v4635_v56 = vmul.f32 %v6205_v34, %v6205_v34 }
 0x211   : > { %5513 = vst [vmem:[%s7996_s26 + $0x58] sm:$0xff] %v5466_v52   ;;  %v5968_v18 = vpop.f32.mrb[24].mxu1 }
 0x212   : > { %5512 = vst [vmem:[%s7996_s26 + $0x50] sm:$0xff] %v5461_v27   ;;  %v4597_v22 = vadd.f32 %v6202_v26, %v4596_v12  ;;  %v4666_v62 = vadd.f32 %v4665_v20, %v4635_v56  ;;  %v6160_v59 = vpop.f32.mrb[24].mxu0  ;;  %v2777_v55 = vpop.f32.mrb[25].mxu1 }
 0x213   : > { %v6206_v48 = vadd.f32 %v6160_v59, %v5968_v18  ;;  %v4353_v24 = vpop.f32.mrb[25].mxu0  ;;  %v5969_v19 = vpop.f32.mrb[26].mxu1 }
 0x214   : > { %v4667_v28 = vadd.f32 %v4666_v62, %v4636_v25  ;;  %v6207_v4 = vadd.f32 %v4353_v24, %v2777_v55  ;;  %v4598_v30 = vadd.f32 %v6204_v5, %v4597_v22  ;;  %v6161_v38 = vpop.f32.mrb[26].mxu0  ;;  %v2780_v21 = vpop.f32.mrb[27].mxu1 }
 0x215   : > { %v6208_v11 = vadd.f32 %v6161_v38, %v5969_v19  ;;  %v4356_v46 = vpop.f32.mrb[27].mxu0  ;;  %v4640_v53 = vmul.f32 %v6206_v48, %v6206_v48 }
 0x216   : > { %v4599_v14 = vadd.f32 %v6207_v4, %v4598_v30  ;;  %v4638_v23 = vmul.f32 %v6207_v4, %v6207_v4  ;;  %v4668_v37 = vadd.f32 %v4667_v28, %v4637_v36  ;;  %v6209_v9 = vadd.f32 %v4356_v46, %v2780_v21 }
 0x217   : > { %v5476_v33 = vpack.c.bf16 %v6208_v11, %v6206_v48  ;;  %v4641_v49 = vmul.f32 %v6208_v11, %v6208_v11 }
 0x218   : > { %v4669_v15 = vadd.f32 %v4668_v37, %v4638_v23  ;;  %v5471_v32 = vpack.c.bf16 %v6209_v9, %v6207_v4  ;;  %v4600_v7 = vadd.f32 %v6209_v9, %v4599_v14  ;;  %v4639_v17 = vmul.f32 %v6209_v9, %v6209_v9 }
 0x219   : > { %5515 = vst [vmem:[%s7996_s26 + $0x68] sm:$0xff] %v5476_v33   ;;  %v5972_v42 = vpop.f32.mrb[28].mxu1 }
 0x21a   : > { %5514 = vst [vmem:[%s7996_s26 + $0x60] sm:$0xff] %v5471_v32   ;;  %v4601_v16 = vadd.f32 %v6206_v48, %v4600_v7  ;;  %v4670_v61 = vadd.f32 %v4669_v15, %v4639_v17  ;;  %v6164_v50 = vpop.f32.mrb[28].mxu0  ;;  %v2793_v10 = vpop.f32.mrb[29].mxu1 }
 0x21b   : > { %v6210_v39 = vadd.f32 %v6164_v50, %v5972_v42  ;;  %v4369_v43 = vpop.f32.mrb[29].mxu0  ;;  %v5973_v3 = vpop.f32.mrb[30].mxu1 }
 0x21c   : > { %v4671_v13 = vadd.f32 %v4670_v61, %v4640_v53  ;;  %v6211_v58 = vadd.f32 %v4369_v43, %v2793_v10  ;;  %v4602_v40 = vadd.f32 %v6208_v11, %v4601_v16  ;;  %v6165_v54 = vpop.f32.mrb[30].mxu0  ;;  %v2796_v6 = vpop.f32.mrb[31].mxu1 }
 0x21d   : > { %v6212_v8 = vadd.f32 %v6165_v54, %v5973_v3  ;;  %v4372_v60 = vpop.f32.mrb[31].mxu0  ;;  %v4644_v1 = vmul.f32 %v6210_v39, %v6210_v39 }
 0x21e   : > { %v4603_v35 = vadd.f32 %v6211_v58, %v4602_v40  ;;  %v4642_v26 = vmul.f32 %v6211_v58, %v6211_v58  ;;  %v4672_v47 = vadd.f32 %v4671_v13, %v4641_v49  ;;  %v6213_v63 = vadd.f32 %v4372_v60, %v2796_v6 }
 0x21f   : > { %v5486_v44 = vpack.c.bf16 %v6212_v8, %v6210_v39  ;;  %v4645_v31 = vmul.f32 %v6212_v8, %v6212_v8 }
 0x220   : > { %v4673_v29 = vadd.f32 %v4672_v47, %v4642_v26  ;;  %v5481_v45 = vpack.c.bf16 %v6213_v63, %v6211_v58  ;;  %v4604_v2 = vadd.f32 %v6213_v63, %v4603_v35  ;;  %v4643_v57 = vmul.f32 %v6213_v63, %v6213_v63 }
 0x221   : > { %5517 = vst [vmem:[%s7996_s26 + $0x78] sm:$0xff] %v5486_v44  }
 0x222   : > { %5516 = vst [vmem:[%s7996_s26 + $0x70] sm:$0xff] %v5481_v45   ;;  %v4605_v5 = vadd.f32 %v6210_v39, %v4604_v2  ;;  %v4674_v51 = vadd.f32 %v4673_v29, %v4643_v57 }
 0x224   : > { %v4606_v41 = vadd.f32 %v6212_v8, %v4605_v5  ;;  %v4675_v0 = vadd.f32 %v4674_v51, %v4644_v1 }
 0x226   : > { %v4607_v34 = vrot.slane %v4606_v41, 4  ;;  %v4676_v52 = vadd.f32 %v4675_v0, %v4645_v31 }
 0x228   : > { %v4608_v20 = vadd.f32 %v4607_v34, %v4606_v41  ;;  %v4677_v27 = vrot.slane %v4676_v52, 4 }
 0x22a   : > { %v4609_v12 = vrot.slane %v4608_v20, 2  ;;  %v4678_v56 = vadd.f32 %v4677_v27, %v4676_v52 }
 0x22c   : > { %v4610_v18 = vadd.f32 %v4609_v12, %v4608_v20  ;;  %v4679_v25 = vrot.slane %v4678_v56, 2 }
 0x22e   : > { %v4611_v22 = vrot.slane %v4610_v18, 1  ;;  %v4680_v62 = vadd.f32 %v4679_v25, %v4678_v56 }
 0x230   : > { %v4612_v59 = vadd.f32 %v4611_v22, %v4610_v18  ;;  %v4681_v55 = vrot.slane %v4680_v62, 1 }
 0x232   : > { %4613 = vst [vmem:[%s265_s28] sm:$0x1] %v4612_v59  ;;  %v4682_v48 = vadd.f32 %v4681_v55, %v4680_v62 }
 0x234   : > { %4683 = vst [vmem:[%s268_s7] sm:$0x1] %v4682_v48 }
 0x235 PF: > { %s17_s21 = sadd.s32 1, %s6534_s21  }
 0x236   : > { %p14_p4 = scmp.ge.s32.totalorder %s17_s21, 4  }
 0x238   :  { %16 = sbr.rel (!%p14_p4) target bundleno = 1 (0x1), region = 98 }

</bundles_post_ra>
